<compile_context>
chip_gen: v6e
topology: v6e:2x2x1
jax: 0.10.0
libtpu: 0.0.40
codegen_flags: <defaults>
</compile_context>

<pallas_src>
import functools

import jax
import jax.numpy as jnp
from jax import lax
from jax.experimental import pallas as pl
from jax.experimental.pallas import tpu as pltpu


# ---------------------------------------------------------------------------
# In-kernel helpers (traced inside the Pallas kernel; all data stays in VMEM)
# ---------------------------------------------------------------------------

def _group_norm(x, gamma, beta, G, GT, eps, apply_silu):
    """GroupNorm over a full (N, C) slab. G:(C,NG) / GT:(NG,C) one-hot group maps.
    Two-pass statistics (mean first, then centered second moment)."""
    n, c = x.shape
    ng = G.shape[1]
    inv_cnt = 1.0 / float(n * (c // ng))
    sum_c = jnp.sum(x, axis=0, keepdims=True)                                # (1, C)
    mean_g = jnp.dot(sum_c, G, preferred_element_type=jnp.float32) * inv_cnt  # (1, NG)
    mean_c = jnp.dot(mean_g, GT, preferred_element_type=jnp.float32)          # (1, C)
    xc = x - mean_c
    ssq_c = jnp.sum(xc * xc, axis=0, keepdims=True)                           # (1, C)
    var_g = jnp.dot(ssq_c, G, preferred_element_type=jnp.float32) * inv_cnt   # (1, NG)
    rstd_g = lax.rsqrt(var_g + eps)
    rstd_c = jnp.dot(rstd_g, GT, preferred_element_type=jnp.float32)          # (1, C)
    y = xc * rstd_c * gamma + beta
    if apply_silu:
        y = y * jax.nn.sigmoid(y)
    return y


def _conv3x3(y, col, w_ref, bias, H, W):
    """3x3 / stride 1 / zero-pad 1 conv on an (N, C) slab, entirely in VMEM.
    w_ref: (9, C, Cout) bf16 pre-stacked taps (dh-major, dw-minor).
    9 accumulated MXU dots -- no (N, 9C) lane concat."""
    N, C = y.shape
    Cout = w_ref.shape[2]
    P = 2 * W                                                  # zero rows each side
    z = jnp.zeros((P, C), y.dtype)
    yext = jnp.concatenate([z, y, z], axis=0)                  # (N + 4W, C)
    left_ok = col >= 1                                         # (N, 1) bool
    right_ok = col <= (W - 2)
    acc = jnp.zeros((N, Cout), jnp.float32)
    tap = 0
    for dh in (-1, 0, 1):
        for dw in (-1, 0, 1):
            start = P + dh * W + dw
            blk = yext[start:start + N, :]
            if dw == -1:
                blk = jnp.where(left_ok, blk, 0.0)
            elif dw == 1:
                blk = jnp.where(right_ok, blk, 0.0)
            acc = acc + jnp.dot(blk.astype(jnp.bfloat16), w_ref[tap],
                                preferred_element_type=jnp.float32)
            tap += 1
    return acc + bias


# ---------------------------------------------------------------------------
# Single fused kernel: ResNet1 (+temb) -> ResNet2 (+1x1) -> GN + MHA + residual
# ---------------------------------------------------------------------------

def _downs_block_kernel(x_ref, temb_ref, col_ref,
                        G_in_ref, GT_in_ref, G_out_ref, GT_out_ref,
                        gn1_g_ref, gn1_b_ref, conv1_w_ref, conv1_b_ref,
                        gn2_g_ref, gn2_b_ref, conv2_w_ref, conv2_b_ref,
                        res_w_ref, res_b_ref,
                        gna_g_ref, gna_b_ref,
                        wq_ref, wk_ref, wv_ref, bq_ref, bk_ref, bv_ref,
                        wout_ref, bout_ref,
                        o_ref, *, H, W, num_heads, eps, out_pad):
    N = H * W
    col = col_ref[...]                                          # (N, 1) int32
    x = x_ref[0].astype(jnp.float32)                            # (N, Cin)

    # --- ResNet block 1: GN + SiLU -> Conv3x3 -> + time-embedding (precomputed) ---
    y1 = _group_norm(x, gn1_g_ref[...], gn1_b_ref[...],
                     G_in_ref[...], GT_in_ref[...], eps, apply_silu=True)
    h1 = _conv3x3(y1, col, conv1_w_ref, conv1_b_ref[...], H, W)        # (N, Cout)
    h1 = h1 + temb_ref[0]                                              # (1, Cout) bcast

    # --- ResNet block 2: GN + SiLU -> Conv3x3 -> + Conv1x1(conv2 output) ---
    y2 = _group_norm(h1, gn2_g_ref[...], gn2_b_ref[...],
                     G_out_ref[...], GT_out_ref[...], eps, apply_silu=True)
    h2 = _conv3x3(y2, col, conv2_w_ref, conv2_b_ref[...], H, W)        # (N, Cout)
    res = jnp.dot(h2.astype(jnp.bfloat16), res_w_ref[...],
                  preferred_element_type=jnp.float32) + res_b_ref[...]
    h2 = h2 + res

    # --- Attention block: GN -> per-head MHA -> residual add ---
    xn = _group_norm(h2, gna_g_ref[...], gna_b_ref[...],
                     G_out_ref[...], GT_out_ref[...], eps, apply_silu=False)
    xn_b = xn.astype(jnp.bfloat16)
    qs, ks, vs = [], [], []
    for h in range(num_heads):                                  # weights pre-split per head
        qs.append(jnp.dot(xn_b, wq_ref[h], preferred_element_type=jnp.float32) + bq_ref[h])
        ks.append(jnp.dot(xn_b, wk_ref[h], preferred_element_type=jnp.float32) + bk_ref[h])
        vs.append(jnp.dot(xn_b, wv_ref[h], preferred_element_type=jnp.float32) + bv_ref[h])
    qh = jnp.stack(qs, axis=0)                                  # (nh, N, hd), scale folded in
    kh = jnp.stack(ks, axis=0)
    vh = jnp.stack(vs, axis=0)
    logits = jnp.einsum("hqd,hkd->hqk", qh.astype(jnp.bfloat16), kh.astype(jnp.bfloat16),
                        preferred_element_type=jnp.float32)     # (nh, N, N)
    logits = logits - jnp.max(logits, axis=-1, keepdims=True)
    p = jnp.exp(logits)
    p = p * pl.reciprocal(jnp.sum(p, axis=-1, keepdims=True), approx=True)
    ctx = jnp.einsum("hqk,hkd->hqd", p.astype(jnp.bfloat16), vh.astype(jnp.bfloat16),
                     preferred_element_type=jnp.float32)        # (nh, N, hd)
    proj = jnp.einsum("hqd,hdc->hqc", ctx.astype(jnp.bfloat16), wout_ref[...],
                      preferred_element_type=jnp.float32)       # (nh, N, Cout)
    attn_out = jnp.sum(proj, axis=0) + bout_ref[...]            # (N, Cout)

    out = h2 + attn_out                                         # (N, Cout) f32
    if out_pad > 0:                                             # lane-dense (128-mult) store
        out = jnp.concatenate([out, jnp.zeros((N, out_pad), jnp.float32)], axis=-1)
    o_ref[0] = out


# ---------------------------------------------------------------------------
# pallas_call wrapper
# ---------------------------------------------------------------------------

def _vmem_limit_bytes():
    # ~3/4 of physical VMEM: ~48 MiB on v7x (64 MiB), ~96 MiB on v5e/v6e (128 MiB).
    try:
        info = pltpu.get_tpu_info()
        cap = getattr(info, "vmem_capacity_bytes", None)
        if cap:
            return int(cap) * 3 // 4
    except Exception:
        pass
    return 32 * 1024 * 1024


def _fused_downs_block(x, temb, col, p, *, H, W, num_heads, c_pad, eps=1e-5):
    B, N, Cin = x.shape
    Cout = p["conv1_b"].shape[1]

    def shared(a):
        nd = a.ndim
        return pl.BlockSpec(tuple(a.shape), lambda b, _nd=nd: (0,) * _nd)

    def batched(a):
        nd = a.ndim
        blk = (1,) + tuple(a.shape[1:])
        return pl.BlockSpec(blk, lambda b, _nd=nd: (b,) + (0,) * (_nd - 1))

    weights = [p["G_in"], p["GT_in"], p["G_out"], p["GT_out"],
               p["gn1_g"], p["gn1_b"], p["conv1_w"], p["conv1_b"],
               p["gn2_g"], p["gn2_b"], p["conv2_w"], p["conv2_b"],
               p["res_w"], p["res_b"], p["gna_g"], p["gna_b"],
               p["wq"], p["wk"], p["wv"], p["bq"], p["bk"], p["bv"],
               p["wout"], p["bout"]]

    kern = functools.partial(_downs_block_kernel, H=H, W=W, num_heads=num_heads,
                             eps=eps, out_pad=c_pad - Cout)
    return pl.pallas_call(
        kern,
        out_shape=jax.ShapeDtypeStruct((B, N, c_pad), jnp.float32),
        grid=(B,),
        in_specs=[batched(x), batched(temb), shared(col)] + [shared(w) for w in weights],
        out_specs=pl.BlockSpec((1, N, c_pad), lambda b: (b, 0, 0)),
        compiler_params=pltpu.CompilerParams(
            dimension_semantics=("parallel",),
            vmem_limit_bytes=_vmem_limit_bytes()),
    )(x, temb, col, *weights)


# ---------------------------------------------------------------------------
# One-time parameter preprocessing (all relayouts hoisted out of the forward)
# ---------------------------------------------------------------------------

def preprocess_params(raw, num_groups=8, num_heads=2):
    cout, cin = raw["conv1_w"].shape[:2]
    assert cin % num_groups == 0 and cout % num_groups == 0
    assert cout % num_heads == 0
    assert cin == cout, "reference forward's residual_connection(out) needs Cin == Cout"
    hd = cout // num_heads

    def onehot(c):
        g = (jnp.arange(c)[:, None] // (c // num_groups)
             == jnp.arange(num_groups)[None, :]).astype(jnp.float32)
        return g, g.T

    def conv_stack(w):   # torch (Cout, Cin, 3, 3) -> (9, Cin, Cout), tap = (dh+1)*3+(dw+1)
        co, ci = w.shape[:2]
        return jnp.transpose(w, (2, 3, 1, 0)).reshape(9, ci, co).astype(jnp.bfloat16)

    row = lambda v: v.reshape(1, -1).astype(jnp.float32)
    G_in, GT_in = onehot(cin)
    G_out, GT_out = onehot(cout)

    # MultiheadAttention weights pre-split per head; 1/sqrt(hd) folded into q weight+bias.
    ipw = raw["in_proj_w"].astype(jnp.float32)        # (3C, C)
    ipb = raw["in_proj_b"].astype(jnp.float32)        # (3C,)
    scale = 1.0 / float(hd) ** 0.5

    def head_split(wfull, bfull, s=1.0):              # wfull (C, C) torch (out,in): y = x @ W.T
        w_h = jnp.stack([wfull[h * hd:(h + 1) * hd, :].T for h in range(num_heads)], 0)
        b_h = jnp.stack([bfull[h * hd:(h + 1) * hd].reshape(1, hd) for h in range(num_heads)], 0)
        return (w_h * s).astype(jnp.bfloat16), (b_h * s).astype(jnp.float32)

    wq, bq = head_split(ipw[:cout], ipb[:cout], scale)
    wk, bk = head_split(ipw[cout:2 * cout], ipb[cout:2 * cout])
    wv, bv = head_split(ipw[2 * cout:], ipb[2 * cout:])
    opw = raw["out_proj_w"].astype(jnp.float32)       # (C, C): out = concat(heads) @ opw.T
    wout = jnp.stack([opw[:, h * hd:(h + 1) * hd].T for h in range(num_heads)],
                     0).astype(jnp.bfloat16)          # (nh, hd, C)

    return {
        "G_in": G_in, "GT_in": GT_in, "G_out": G_out, "GT_out": GT_out,
        "gn1_g": row(raw["gn1_g"]), "gn1_b": row(raw["gn1_b"]),
        "conv1_w": conv_stack(raw["conv1_w"]), "conv1_b": row(raw["conv1_b"]),
        "time_w": raw["time_w"].T.astype(jnp.float32), "time_b": row(raw["time_b"]),
        "gn2_g": row(raw["gn2_g"]), "gn2_b": row(raw["gn2_b"]),
        "conv2_w": conv_stack(raw["conv2_w"]), "conv2_b": row(raw["conv2_b"]),
        "res_w": raw["res_w"][:, :, 0, 0].T.astype(jnp.bfloat16), "res_b": row(raw["res_b"]),
        "gna_g": row(raw["gna_g"]), "gna_b": row(raw["gna_b"]),
        "wq": wq, "wk": wk, "wv": wv, "bq": bq, "bk": bk, "bv": bv,
        "wout": wout, "bout": row(raw["out_proj_b"]),
    }


# ---------------------------------------------------------------------------
# DownsBlock forward
# ---------------------------------------------------------------------------

def downs_block_forward(params, x_nchw, time_embedding, *, num_heads):
    B, Cin, H, W = x_nchw.shape
    N = H * W
    Cout = params["conv1_b"].shape[1]

    x = jnp.transpose(x_nchw, (0, 2, 3, 1)).reshape(B, N, Cin).astype(jnp.bfloat16)
    col = (jnp.arange(N, dtype=jnp.int32) % W).reshape(N, 1)      # constant under jit

    # time-embedding network (SiLU -> Linear) hoisted to XLA: (B, 1, Cout)
    t = time_embedding.astype(jnp.float32)
    temb = jnp.dot(t * jax.nn.sigmoid(t), params["time_w"]) + params["time_b"]
    temb = temb.reshape(B, 1, Cout)

    c_pad = ((Cout + 127) // 128) * 128                           # lane-dense output width
    out_padded = _fused_downs_block(x, temb, col, params, H=H, W=W,
                                    num_heads=num_heads, c_pad=c_pad)   # (B, N, c_pad) f32
    out = out_padded[:, :, :Cout]
    return jnp.transpose(out.reshape(B, H, W, Cout), (0, 3, 1, 2))


# ---------------------------------------------------------------------------
# Deterministic parameter init (shapes mirror the nn.Module's __init__)
# ---------------------------------------------------------------------------

def init_params(key, cin, cout, emb_dim):
    ks = jax.random.split(key, 12)
    w = lambda k, shape, s=0.1: s * jax.random.normal(k, shape, jnp.float32)
    b = lambda k, shape, s=0.02: s * jax.random.normal(k, shape, jnp.float32)
    return {
        "gn1_g": jnp.ones((cin,), jnp.float32), "gn1_b": jnp.zeros((cin,), jnp.float32),
        "conv1_w": w(ks[0], (cout, cin, 3, 3)), "conv1_b": b(ks[1], (cout,)),
        "time_w": w(ks[2], (cout, emb_dim)), "time_b": b(ks[3], (cout,)),
        "gn2_g": jnp.ones((cout,), jnp.float32), "gn2_b": jnp.zeros((cout,), jnp.float32),
        "conv2_w": w(ks[4], (cout, cout, 3, 3)), "conv2_b": b(ks[5], (cout,)),
        "res_w": w(ks[6], (cout, cin, 1, 1)), "res_b": b(ks[7], (cout,)),
        "gna_g": jnp.ones((cout,), jnp.float32), "gna_b": jnp.zeros((cout,), jnp.float32),
        "in_proj_w": w(ks[8], (3 * cout, cout)), "in_proj_b": b(ks[9], (3 * cout,)),
        "out_proj_w": w(ks[10], (cout, cout)), "out_proj_b": b(ks[11], (cout,)),
    }


if __name__ == "__main__":
    B, Cin, Cout, H, W = 2, 16, 16, 8, 8          # Cin == Cout (see residual note)
    emb_dim, num_heads = 32, 2

    key = jax.random.PRNGKey(0)
    kx, kt, kp = jax.random.split(key, 3)
    x = jax.random.normal(kx, (B, Cin, H, W), jnp.float32)
    time_embedding = jax.random.normal(kt, (B, emb_dim), jnp.float32)

    raw = init_params(kp, Cin, Cout, emb_dim)
    params = preprocess_params(raw, num_groups=8, num_heads=num_heads)

    fwd = jax.jit(functools.partial(downs_block_forward, num_heads=num_heads))
    y = jax.block_until_ready(fwd(params, x, time_embedding))
    assert y.shape == (B, Cout, H, W)
    assert bool(jnp.all(jnp.isfinite(y)))
    print("KERNEL_OK")
</pallas_src>

<mosaic_0001>
module attributes {stable_mosaic.version = 11 : i64} {
  func.func @_downs_block_kernel(%arg0: i32, %arg1: memref<1x64x16xbf16, #tpu.memory_space<vmem>>, %arg2: memref<1x1x16xf32, #tpu.memory_space<vmem>>, %arg3: memref<64x1xi32, #tpu.memory_space<vmem>>, %arg4: memref<16x8xf32, #tpu.memory_space<vmem>>, %arg5: memref<8x16xf32, #tpu.memory_space<vmem>>, %arg6: memref<16x8xf32, #tpu.memory_space<vmem>>, %arg7: memref<8x16xf32, #tpu.memory_space<vmem>>, %arg8: memref<1x16xf32, #tpu.memory_space<vmem>>, %arg9: memref<1x16xf32, #tpu.memory_space<vmem>>, %arg10: memref<9x16x16xbf16, #tpu.memory_space<vmem>>, %arg11: memref<1x16xf32, #tpu.memory_space<vmem>>, %arg12: memref<1x16xf32, #tpu.memory_space<vmem>>, %arg13: memref<1x16xf32, #tpu.memory_space<vmem>>, %arg14: memref<9x16x16xbf16, #tpu.memory_space<vmem>>, %arg15: memref<1x16xf32, #tpu.memory_space<vmem>>, %arg16: memref<16x16xbf16, #tpu.memory_space<vmem>>, %arg17: memref<1x16xf32, #tpu.memory_space<vmem>>, %arg18: memref<1x16xf32, #tpu.memory_space<vmem>>, %arg19: memref<1x16xf32, #tpu.memory_space<vmem>>, %arg20: memref<2x16x8xbf16, #tpu.memory_space<vmem>>, %arg21: memref<2x16x8xbf16, #tpu.memory_space<vmem>>, %arg22: memref<2x16x8xbf16, #tpu.memory_space<vmem>>, %arg23: memref<2x1x8xf32, #tpu.memory_space<vmem>>, %arg24: memref<2x1x8xf32, #tpu.memory_space<vmem>>, %arg25: memref<2x1x8xf32, #tpu.memory_space<vmem>>, %arg26: memref<2x8x16xbf16, #tpu.memory_space<vmem>>, %arg27: memref<1x16xf32, #tpu.memory_space<vmem>>, %arg28: memref<1x64x128xf32, #tpu.memory_space<vmem>>) attributes {dimension_semantics = [#tpu.dimension_semantics<parallel>], iteration_bounds = array<i64: 2>, scalar_prefetch = 0 : i64, scratch_operands = 0 : i64, tpu.core_type = #tpu.core_type<tc>, window_params = [{transform_indices = @transform_0, window_bounds = array<i64: 1, 64, 16>}, {transform_indices = @transform_1, window_bounds = array<i64: 1, 1, 16>}, {pipeline_mode = #tpu.pipeline_mode<synchronous>, transform_indices = @transform_2, window_bounds = array<i64: 64, 1>}, {pipeline_mode = #tpu.pipeline_mode<synchronous>, transform_indices = @transform_3, window_bounds = array<i64: 16, 8>}, {pipeline_mode = #tpu.pipeline_mode<synchronous>, transform_indices = @transform_4, window_bounds = array<i64: 8, 16>}, {pipeline_mode = #tpu.pipeline_mode<synchronous>, transform_indices = @transform_5, window_bounds = array<i64: 16, 8>}, {pipeline_mode = #tpu.pipeline_mode<synchronous>, transform_indices = @transform_6, window_bounds = array<i64: 8, 16>}, {pipeline_mode = #tpu.pipeline_mode<synchronous>, transform_indices = @transform_7, window_bounds = array<i64: 1, 16>}, {pipeline_mode = #tpu.pipeline_mode<synchronous>, transform_indices = @transform_8, window_bounds = array<i64: 1, 16>}, {pipeline_mode = #tpu.pipeline_mode<synchronous>, transform_indices = @transform_9, window_bounds = array<i64: 9, 16, 16>}, {pipeline_mode = #tpu.pipeline_mode<synchronous>, transform_indices = @transform_10, window_bounds = array<i64: 1, 16>}, {pipeline_mode = #tpu.pipeline_mode<synchronous>, transform_indices = @transform_11, window_bounds = array<i64: 1, 16>}, {pipeline_mode = #tpu.pipeline_mode<synchronous>, transform_indices = @transform_12, window_bounds = array<i64: 1, 16>}, {pipeline_mode = #tpu.pipeline_mode<synchronous>, transform_indices = @transform_13, window_bounds = array<i64: 9, 16, 16>}, {pipeline_mode = #tpu.pipeline_mode<synchronous>, transform_indices = @transform_14, window_bounds = array<i64: 1, 16>}, {pipeline_mode = #tpu.pipeline_mode<synchronous>, transform_indices = @transform_15, window_bounds = array<i64: 16, 16>}, {pipeline_mode = #tpu.pipeline_mode<synchronous>, transform_indices = @transform_16, window_bounds = array<i64: 1, 16>}, {pipeline_mode = #tpu.pipeline_mode<synchronous>, transform_indices = @transform_17, window_bounds = array<i64: 1, 16>}, {pipeline_mode = #tpu.pipeline_mode<synchronous>, transform_indices = @transform_18, window_bounds = array<i64: 1, 16>}, {pipeline_mode = #tpu.pipeline_mode<synchronous>, transform_indices = @transform_19, window_bounds = array<i64: 2, 16, 8>}, {pipeline_mode = #tpu.pipeline_mode<synchronous>, transform_indices = @transform_20, window_bounds = array<i64: 2, 16, 8>}, {pipeline_mode = #tpu.pipeline_mode<synchronous>, transform_indices = @transform_21, window_bounds = array<i64: 2, 16, 8>}, {pipeline_mode = #tpu.pipeline_mode<synchronous>, transform_indices = @transform_22, window_bounds = array<i64: 2, 1, 8>}, {pipeline_mode = #tpu.pipeline_mode<synchronous>, transform_indices = @transform_23, window_bounds = array<i64: 2, 1, 8>}, {pipeline_mode = #tpu.pipeline_mode<synchronous>, transform_indices = @transform_24, window_bounds = array<i64: 2, 1, 8>}, {pipeline_mode = #tpu.pipeline_mode<synchronous>, transform_indices = @transform_25, window_bounds = array<i64: 2, 8, 16>}, {pipeline_mode = #tpu.pipeline_mode<synchronous>, transform_indices = @transform_26, window_bounds = array<i64: 1, 16>}, {transform_indices = @transform_27, window_bounds = array<i64: 1, 64, 128>}]} {
    %c0 = arith.constant 0 : index
    %c0_0 = arith.constant 0 : index
    %0 = vector.load %arg3[%c0, %c0_0] : memref<64x1xi32, #tpu.memory_space<vmem>>, vector<64x1xi32>
    %c0_1 = arith.constant 0 : index
    %c0_2 = arith.constant 0 : index
    %c0_3 = arith.constant 0 : index
    %1 = vector.load %arg1[%c0_1, %c0_2, %c0_3] : memref<1x64x16xbf16, #tpu.memory_space<vmem>>, vector<1x64x16xbf16>
    %2 = vector.shape_cast %1 : vector<1x64x16xbf16> to vector<64x16xbf16>
    %3 = arith.extf %2 : vector<64x16xbf16> to vector<64x16xf32>
    %c0_4 = arith.constant 0 : index
    %c0_5 = arith.constant 0 : index
    %4 = vector.load %arg8[%c0_4, %c0_5] : memref<1x16xf32, #tpu.memory_space<vmem>>, vector<1x16xf32>
    %c0_6 = arith.constant 0 : index
    %c0_7 = arith.constant 0 : index
    %5 = vector.load %arg9[%c0_6, %c0_7] : memref<1x16xf32, #tpu.memory_space<vmem>>, vector<1x16xf32>
    %c0_8 = arith.constant 0 : index
    %c0_9 = arith.constant 0 : index
    %6 = vector.load %arg4[%c0_8, %c0_9] : memref<16x8xf32, #tpu.memory_space<vmem>>, vector<16x8xf32>
    %c0_10 = arith.constant 0 : index
    %c0_11 = arith.constant 0 : index
    %7 = vector.load %arg5[%c0_10, %c0_11] : memref<8x16xf32, #tpu.memory_space<vmem>>, vector<8x16xf32>
    %cst = arith.constant dense<0.000000e+00> : vector<16xf32>
    %8 = vector.multi_reduction <add>, %3, %cst [0] : vector<64x16xf32> to vector<16xf32>
    %9 = vector.shape_cast %8 : vector<16xf32> to vector<1x16xf32>
    %cst_12 = arith.constant dense<0.000000e+00> : vector<1x8xf32>
    %10 = tpu.matmul %9, %6, %cst_12 {dimension_numbers = #tpu.dot_dimension_numbers<[1], [0], [0], [1], [0, 0, 1, 1], [], []>} : vector<1x16xf32>, vector<16x8xf32>, vector<1x8xf32> -> vector<1x8xf32>
    %cst_13 = arith.constant 7.812500e-03 : f32
    %11 = vector.broadcast %cst_13 : f32 to vector<1x8xf32>
    %12 = arith.mulf %10, %11 : vector<1x8xf32>
    %cst_14 = arith.constant dense<0.000000e+00> : vector<1x16xf32>
    %13 = tpu.matmul %12, %7, %cst_14 {dimension_numbers = #tpu.dot_dimension_numbers<[1], [0], [0], [1], [0, 0, 1, 1], [], []>} : vector<1x8xf32>, vector<8x16xf32>, vector<1x16xf32> -> vector<1x16xf32>
    %14 = vector.broadcast %13 : vector<1x16xf32> to vector<64x16xf32>
    %15 = arith.subf %3, %14 : vector<64x16xf32>
    %16 = arith.mulf %15, %15 : vector<64x16xf32>
    %cst_15 = arith.constant dense<0.000000e+00> : vector<16xf32>
    %17 = vector.multi_reduction <add>, %16, %cst_15 [0] : vector<64x16xf32> to vector<16xf32>
    %18 = vector.shape_cast %17 : vector<16xf32> to vector<1x16xf32>
    %cst_16 = arith.constant dense<0.000000e+00> : vector<1x8xf32>
    %19 = tpu.matmul %18, %6, %cst_16 {dimension_numbers = #tpu.dot_dimension_numbers<[1], [0], [0], [1], [0, 0, 1, 1], [], []>} : vector<1x16xf32>, vector<16x8xf32>, vector<1x8xf32> -> vector<1x8xf32>
    %cst_17 = arith.constant 7.812500e-03 : f32
    %20 = vector.broadcast %cst_17 : f32 to vector<1x8xf32>
    %21 = arith.mulf %19, %20 : vector<1x8xf32>
    %cst_18 = arith.constant 9.99999974E-6 : f32
    %22 = vector.broadcast %cst_18 : f32 to vector<1x8xf32>
    %23 = arith.addf %21, %22 : vector<1x8xf32>
    %24 = math.rsqrt %23 : vector<1x8xf32>
    %cst_19 = arith.constant dense<0.000000e+00> : vector<1x16xf32>
    %25 = tpu.matmul %24, %7, %cst_19 {dimension_numbers = #tpu.dot_dimension_numbers<[1], [0], [0], [1], [0, 0, 1, 1], [], []>} : vector<1x8xf32>, vector<8x16xf32>, vector<1x16xf32> -> vector<1x16xf32>
    %26 = vector.broadcast %25 : vector<1x16xf32> to vector<64x16xf32>
    %27 = arith.mulf %15, %26 : vector<64x16xf32>
    %28 = vector.broadcast %4 : vector<1x16xf32> to vector<64x16xf32>
    %29 = arith.mulf %27, %28 : vector<64x16xf32>
    %30 = vector.broadcast %5 : vector<1x16xf32> to vector<64x16xf32>
    %31 = arith.addf %29, %30 : vector<64x16xf32>
    %32 = arith.negf %31 : vector<64x16xf32>
    %33 = math.exp %32 : vector<64x16xf32>
    %cst_20 = arith.constant 1.000000e+00 : f32
    %34 = vector.broadcast %cst_20 : f32 to vector<64x16xf32>
    %35 = arith.addf %34, %33 : vector<64x16xf32>
    %36 = arith.divf %34, %35 : vector<64x16xf32>
    %37 = arith.mulf %31, %36 : vector<64x16xf32>
    %c0_21 = arith.constant 0 : index
    %c0_22 = arith.constant 0 : index
    %38 = vector.load %arg11[%c0_21, %c0_22] : memref<1x16xf32, #tpu.memory_space<vmem>>, vector<1x16xf32>
    %cst_23 = arith.constant 0.000000e+00 : f32
    %39 = vector.broadcast %cst_23 : f32 to vector<16x16xf32>
    %40 = tpu.concatenate %39, %37, %39 in 0 : vector<16x16xf32>, vector<64x16xf32>, vector<16x16xf32> -> vector<96x16xf32>
    %c1_i32 = arith.constant 1 : i32
    %41 = vector.broadcast %c1_i32 : i32 to vector<64x1xi32>
    %42 = arith.cmpi sge, %0, %41 : vector<64x1xi32>
    %c6_i32 = arith.constant 6 : i32
    %43 = vector.broadcast %c6_i32 : i32 to vector<64x1xi32>
    %44 = arith.cmpi sle, %0, %43 : vector<64x1xi32>
    %cst_24 = arith.constant 0.000000e+00 : f32
    %45 = vector.broadcast %cst_24 : f32 to vector<64x16xf32>
    %46 = vector.extract_strided_slice %40 {offsets = [7, 0], sizes = [64, 16], strides = [1, 1]} : vector<96x16xf32> to vector<64x16xf32>
    %cst_25 = arith.constant 0.000000e+00 : f32
    %47 = vector.shape_cast %42 : vector<64x1xi1> to vector<64x1xi1>
    %48 = vector.broadcast %47 : vector<64x1xi1> to vector<64x16xi1>
    %49 = vector.broadcast %cst_25 : f32 to vector<64x16xf32>
    %50 = arith.select %48, %46, %49 : vector<64x16xi1>, vector<64x16xf32>
    %51 = arith.truncf %50 : vector<64x16xf32> to vector<64x16xbf16>
    %c0_26 = arith.constant 0 : index
    %c0_27 = arith.constant 0 : index
    %c0_28 = arith.constant 0 : index
    %52 = vector.load %arg10[%c0_26, %c0_27, %c0_28] : memref<9x16x16xbf16, #tpu.memory_space<vmem>>, vector<1x16x16xbf16>
    %53 = vector.shape_cast %52 : vector<1x16x16xbf16> to vector<16x16xbf16>
    %cst_29 = arith.constant dense<0.000000e+00> : vector<64x16xf32>
    %54 = tpu.matmul %51, %53, %cst_29 {dimension_numbers = #tpu.dot_dimension_numbers<[1], [0], [0], [1], [0, 0, 1, 1], [], []>} : vector<64x16xbf16>, vector<16x16xbf16>, vector<64x16xf32> -> vector<64x16xf32>
    %55 = arith.addf %45, %54 : vector<64x16xf32>
    %56 = vector.extract_strided_slice %40 {offsets = [8, 0], sizes = [64, 16], strides = [1, 1]} : vector<96x16xf32> to vector<64x16xf32>
    %57 = arith.truncf %56 : vector<64x16xf32> to vector<64x16xbf16>
    %c1 = arith.constant 1 : index
    %c0_30 = arith.constant 0 : index
    %c0_31 = arith.constant 0 : index
    %58 = vector.load %arg10[%c1, %c0_30, %c0_31] : memref<9x16x16xbf16, #tpu.memory_space<vmem>>, vector<1x16x16xbf16>
    %59 = vector.shape_cast %58 : vector<1x16x16xbf16> to vector<16x16xbf16>
    %cst_32 = arith.constant dense<0.000000e+00> : vector<64x16xf32>
    %60 = tpu.matmul %57, %59, %cst_32 {dimension_numbers = #tpu.dot_dimension_numbers<[1], [0], [0], [1], [0, 0, 1, 1], [], []>} : vector<64x16xbf16>, vector<16x16xbf16>, vector<64x16xf32> -> vector<64x16xf32>
    %61 = arith.addf %55, %60 : vector<64x16xf32>
    %62 = vector.extract_strided_slice %40 {offsets = [9, 0], sizes = [64, 16], strides = [1, 1]} : vector<96x16xf32> to vector<64x16xf32>
    %cst_33 = arith.constant 0.000000e+00 : f32
    %63 = vector.shape_cast %44 : vector<64x1xi1> to vector<64x1xi1>
    %64 = vector.broadcast %63 : vector<64x1xi1> to vector<64x16xi1>
    %65 = vector.broadcast %cst_33 : f32 to vector<64x16xf32>
    %66 = arith.select %64, %62, %65 : vector<64x16xi1>, vector<64x16xf32>
    %67 = arith.truncf %66 : vector<64x16xf32> to vector<64x16xbf16>
    %c2 = arith.constant 2 : index
    %c0_34 = arith.constant 0 : index
    %c0_35 = arith.constant 0 : index
    %68 = vector.load %arg10[%c2, %c0_34, %c0_35] : memref<9x16x16xbf16, #tpu.memory_space<vmem>>, vector<1x16x16xbf16>
    %69 = vector.shape_cast %68 : vector<1x16x16xbf16> to vector<16x16xbf16>
    %cst_36 = arith.constant dense<0.000000e+00> : vector<64x16xf32>
    %70 = tpu.matmul %67, %69, %cst_36 {dimension_numbers = #tpu.dot_dimension_numbers<[1], [0], [0], [1], [0, 0, 1, 1], [], []>} : vector<64x16xbf16>, vector<16x16xbf16>, vector<64x16xf32> -> vector<64x16xf32>
    %71 = arith.addf %61, %70 : vector<64x16xf32>
    %72 = vector.extract_strided_slice %40 {offsets = [15, 0], sizes = [64, 16], strides = [1, 1]} : vector<96x16xf32> to vector<64x16xf32>
    %cst_37 = arith.constant 0.000000e+00 : f32
    %73 = vector.shape_cast %42 : vector<64x1xi1> to vector<64x1xi1>
    %74 = vector.broadcast %73 : vector<64x1xi1> to vector<64x16xi1>
    %75 = vector.broadcast %cst_37 : f32 to vector<64x16xf32>
    %76 = arith.select %74, %72, %75 : vector<64x16xi1>, vector<64x16xf32>
    %77 = arith.truncf %76 : vector<64x16xf32> to vector<64x16xbf16>
    %c3 = arith.constant 3 : index
    %c0_38 = arith.constant 0 : index
    %c0_39 = arith.constant 0 : index
    %78 = vector.load %arg10[%c3, %c0_38, %c0_39] : memref<9x16x16xbf16, #tpu.memory_space<vmem>>, vector<1x16x16xbf16>
    %79 = vector.shape_cast %78 : vector<1x16x16xbf16> to vector<16x16xbf16>
    %cst_40 = arith.constant dense<0.000000e+00> : vector<64x16xf32>
    %80 = tpu.matmul %77, %79, %cst_40 {dimension_numbers = #tpu.dot_dimension_numbers<[1], [0], [0], [1], [0, 0, 1, 1], [], []>} : vector<64x16xbf16>, vector<16x16xbf16>, vector<64x16xf32> -> vector<64x16xf32>
    %81 = arith.addf %71, %80 : vector<64x16xf32>
    %82 = vector.extract_strided_slice %40 {offsets = [16, 0], sizes = [64, 16], strides = [1, 1]} : vector<96x16xf32> to vector<64x16xf32>
    %83 = arith.truncf %82 : vector<64x16xf32> to vector<64x16xbf16>
    %c4 = arith.constant 4 : index
    %c0_41 = arith.constant 0 : index
    %c0_42 = arith.constant 0 : index
    %84 = vector.load %arg10[%c4, %c0_41, %c0_42] : memref<9x16x16xbf16, #tpu.memory_space<vmem>>, vector<1x16x16xbf16>
    %85 = vector.shape_cast %84 : vector<1x16x16xbf16> to vector<16x16xbf16>
    %cst_43 = arith.constant dense<0.000000e+00> : vector<64x16xf32>
    %86 = tpu.matmul %83, %85, %cst_43 {dimension_numbers = #tpu.dot_dimension_numbers<[1], [0], [0], [1], [0, 0, 1, 1], [], []>} : vector<64x16xbf16>, vector<16x16xbf16>, vector<64x16xf32> -> vector<64x16xf32>
    %87 = arith.addf %81, %86 : vector<64x16xf32>
    %88 = vector.extract_strided_slice %40 {offsets = [17, 0], sizes = [64, 16], strides = [1, 1]} : vector<96x16xf32> to vector<64x16xf32>
    %cst_44 = arith.constant 0.000000e+00 : f32
    %89 = vector.shape_cast %44 : vector<64x1xi1> to vector<64x1xi1>
    %90 = vector.broadcast %89 : vector<64x1xi1> to vector<64x16xi1>
    %91 = vector.broadcast %cst_44 : f32 to vector<64x16xf32>
    %92 = arith.select %90, %88, %91 : vector<64x16xi1>, vector<64x16xf32>
    %93 = arith.truncf %92 : vector<64x16xf32> to vector<64x16xbf16>
    %c5 = arith.constant 5 : index
    %c0_45 = arith.constant 0 : index
    %c0_46 = arith.constant 0 : index
    %94 = vector.load %arg10[%c5, %c0_45, %c0_46] : memref<9x16x16xbf16, #tpu.memory_space<vmem>>, vector<1x16x16xbf16>
    %95 = vector.shape_cast %94 : vector<1x16x16xbf16> to vector<16x16xbf16>
    %cst_47 = arith.constant dense<0.000000e+00> : vector<64x16xf32>
    %96 = tpu.matmul %93, %95, %cst_47 {dimension_numbers = #tpu.dot_dimension_numbers<[1], [0], [0], [1], [0, 0, 1, 1], [], []>} : vector<64x16xbf16>, vector<16x16xbf16>, vector<64x16xf32> -> vector<64x16xf32>
    %97 = arith.addf %87, %96 : vector<64x16xf32>
    %98 = vector.extract_strided_slice %40 {offsets = [23, 0], sizes = [64, 16], strides = [1, 1]} : vector<96x16xf32> to vector<64x16xf32>
    %cst_48 = arith.constant 0.000000e+00 : f32
    %99 = vector.shape_cast %42 : vector<64x1xi1> to vector<64x1xi1>
    %100 = vector.broadcast %99 : vector<64x1xi1> to vector<64x16xi1>
    %101 = vector.broadcast %cst_48 : f32 to vector<64x16xf32>
    %102 = arith.select %100, %98, %101 : vector<64x16xi1>, vector<64x16xf32>
    %103 = arith.truncf %102 : vector<64x16xf32> to vector<64x16xbf16>
    %c6 = arith.constant 6 : index
    %c0_49 = arith.constant 0 : index
    %c0_50 = arith.constant 0 : index
    %104 = vector.load %arg10[%c6, %c0_49, %c0_50] : memref<9x16x16xbf16, #tpu.memory_space<vmem>>, vector<1x16x16xbf16>
    %105 = vector.shape_cast %104 : vector<1x16x16xbf16> to vector<16x16xbf16>
    %cst_51 = arith.constant dense<0.000000e+00> : vector<64x16xf32>
    %106 = tpu.matmul %103, %105, %cst_51 {dimension_numbers = #tpu.dot_dimension_numbers<[1], [0], [0], [1], [0, 0, 1, 1], [], []>} : vector<64x16xbf16>, vector<16x16xbf16>, vector<64x16xf32> -> vector<64x16xf32>
    %107 = arith.addf %97, %106 : vector<64x16xf32>
    %108 = vector.extract_strided_slice %40 {offsets = [24, 0], sizes = [64, 16], strides = [1, 1]} : vector<96x16xf32> to vector<64x16xf32>
    %109 = arith.truncf %108 : vector<64x16xf32> to vector<64x16xbf16>
    %c7 = arith.constant 7 : index
    %c0_52 = arith.constant 0 : index
    %c0_53 = arith.constant 0 : index
    %110 = vector.load %arg10[%c7, %c0_52, %c0_53] : memref<9x16x16xbf16, #tpu.memory_space<vmem>>, vector<1x16x16xbf16>
    %111 = vector.shape_cast %110 : vector<1x16x16xbf16> to vector<16x16xbf16>
    %cst_54 = arith.constant dense<0.000000e+00> : vector<64x16xf32>
    %112 = tpu.matmul %109, %111, %cst_54 {dimension_numbers = #tpu.dot_dimension_numbers<[1], [0], [0], [1], [0, 0, 1, 1], [], []>} : vector<64x16xbf16>, vector<16x16xbf16>, vector<64x16xf32> -> vector<64x16xf32>
    %113 = arith.addf %107, %112 : vector<64x16xf32>
    %114 = vector.extract_strided_slice %40 {offsets = [25, 0], sizes = [64, 16], strides = [1, 1]} : vector<96x16xf32> to vector<64x16xf32>
    %cst_55 = arith.constant 0.000000e+00 : f32
    %115 = vector.shape_cast %44 : vector<64x1xi1> to vector<64x1xi1>
    %116 = vector.broadcast %115 : vector<64x1xi1> to vector<64x16xi1>
    %117 = vector.broadcast %cst_55 : f32 to vector<64x16xf32>
    %118 = arith.select %116, %114, %117 : vector<64x16xi1>, vector<64x16xf32>
    %119 = arith.truncf %118 : vector<64x16xf32> to vector<64x16xbf16>
    %c8 = arith.constant 8 : index
    %c0_56 = arith.constant 0 : index
    %c0_57 = arith.constant 0 : index
    %120 = vector.load %arg10[%c8, %c0_56, %c0_57] : memref<9x16x16xbf16, #tpu.memory_space<vmem>>, vector<1x16x16xbf16>
    %121 = vector.shape_cast %120 : vector<1x16x16xbf16> to vector<16x16xbf16>
    %cst_58 = arith.constant dense<0.000000e+00> : vector<64x16xf32>
    %122 = tpu.matmul %119, %121, %cst_58 {dimension_numbers = #tpu.dot_dimension_numbers<[1], [0], [0], [1], [0, 0, 1, 1], [], []>} : vector<64x16xbf16>, vector<16x16xbf16>, vector<64x16xf32> -> vector<64x16xf32>
    %123 = arith.addf %113, %122 : vector<64x16xf32>
    %124 = vector.broadcast %38 : vector<1x16xf32> to vector<64x16xf32>
    %125 = arith.addf %123, %124 : vector<64x16xf32>
    %c0_59 = arith.constant 0 : index
    %c0_60 = arith.constant 0 : index
    %c0_61 = arith.constant 0 : index
    %126 = vector.load %arg2[%c0_59, %c0_60, %c0_61] : memref<1x1x16xf32, #tpu.memory_space<vmem>>, vector<1x1x16xf32>
    %127 = vector.shape_cast %126 : vector<1x1x16xf32> to vector<1x16xf32>
    %128 = vector.broadcast %127 : vector<1x16xf32> to vector<64x16xf32>
    %129 = arith.addf %125, %128 : vector<64x16xf32>
    %c0_62 = arith.constant 0 : index
    %c0_63 = arith.constant 0 : index
    %130 = vector.load %arg12[%c0_62, %c0_63] : memref<1x16xf32, #tpu.memory_space<vmem>>, vector<1x16xf32>
    %c0_64 = arith.constant 0 : index
    %c0_65 = arith.constant 0 : index
    %131 = vector.load %arg13[%c0_64, %c0_65] : memref<1x16xf32, #tpu.memory_space<vmem>>, vector<1x16xf32>
    %c0_66 = arith.constant 0 : index
    %c0_67 = arith.constant 0 : index
    %132 = vector.load %arg6[%c0_66, %c0_67] : memref<16x8xf32, #tpu.memory_space<vmem>>, vector<16x8xf32>
    %c0_68 = arith.constant 0 : index
    %c0_69 = arith.constant 0 : index
    %133 = vector.load %arg7[%c0_68, %c0_69] : memref<8x16xf32, #tpu.memory_space<vmem>>, vector<8x16xf32>
    %cst_70 = arith.constant dense<0.000000e+00> : vector<16xf32>
    %134 = vector.multi_reduction <add>, %129, %cst_70 [0] : vector<64x16xf32> to vector<16xf32>
    %135 = vector.shape_cast %134 : vector<16xf32> to vector<1x16xf32>
    %cst_71 = arith.constant dense<0.000000e+00> : vector<1x8xf32>
    %136 = tpu.matmul %135, %132, %cst_71 {dimension_numbers = #tpu.dot_dimension_numbers<[1], [0], [0], [1], [0, 0, 1, 1], [], []>} : vector<1x16xf32>, vector<16x8xf32>, vector<1x8xf32> -> vector<1x8xf32>
    %cst_72 = arith.constant 7.812500e-03 : f32
    %137 = vector.broadcast %cst_72 : f32 to vector<1x8xf32>
    %138 = arith.mulf %136, %137 : vector<1x8xf32>
    %cst_73 = arith.constant dense<0.000000e+00> : vector<1x16xf32>
    %139 = tpu.matmul %138, %133, %cst_73 {dimension_numbers = #tpu.dot_dimension_numbers<[1], [0], [0], [1], [0, 0, 1, 1], [], []>} : vector<1x8xf32>, vector<8x16xf32>, vector<1x16xf32> -> vector<1x16xf32>
    %140 = vector.broadcast %139 : vector<1x16xf32> to vector<64x16xf32>
    %141 = arith.subf %129, %140 : vector<64x16xf32>
    %142 = arith.mulf %141, %141 : vector<64x16xf32>
    %cst_74 = arith.constant dense<0.000000e+00> : vector<16xf32>
    %143 = vector.multi_reduction <add>, %142, %cst_74 [0] : vector<64x16xf32> to vector<16xf32>
    %144 = vector.shape_cast %143 : vector<16xf32> to vector<1x16xf32>
    %cst_75 = arith.constant dense<0.000000e+00> : vector<1x8xf32>
    %145 = tpu.matmul %144, %132, %cst_75 {dimension_numbers = #tpu.dot_dimension_numbers<[1], [0], [0], [1], [0, 0, 1, 1], [], []>} : vector<1x16xf32>, vector<16x8xf32>, vector<1x8xf32> -> vector<1x8xf32>
    %cst_76 = arith.constant 7.812500e-03 : f32
    %146 = vector.broadcast %cst_76 : f32 to vector<1x8xf32>
    %147 = arith.mulf %145, %146 : vector<1x8xf32>
    %cst_77 = arith.constant 9.99999974E-6 : f32
    %148 = vector.broadcast %cst_77 : f32 to vector<1x8xf32>
    %149 = arith.addf %147, %148 : vector<1x8xf32>
    %150 = math.rsqrt %149 : vector<1x8xf32>
    %cst_78 = arith.constant dense<0.000000e+00> : vector<1x16xf32>
    %151 = tpu.matmul %150, %133, %cst_78 {dimension_numbers = #tpu.dot_dimension_numbers<[1], [0], [0], [1], [0, 0, 1, 1], [], []>} : vector<1x8xf32>, vector<8x16xf32>, vector<1x16xf32> -> vector<1x16xf32>
    %152 = vector.broadcast %151 : vector<1x16xf32> to vector<64x16xf32>
    %153 = arith.mulf %141, %152 : vector<64x16xf32>
    %154 = vector.broadcast %130 : vector<1x16xf32> to vector<64x16xf32>
    %155 = arith.mulf %153, %154 : vector<64x16xf32>
    %156 = vector.broadcast %131 : vector<1x16xf32> to vector<64x16xf32>
    %157 = arith.addf %155, %156 : vector<64x16xf32>
    %158 = arith.negf %157 : vector<64x16xf32>
    %159 = math.exp %158 : vector<64x16xf32>
    %cst_79 = arith.constant 1.000000e+00 : f32
    %160 = vector.broadcast %cst_79 : f32 to vector<64x16xf32>
    %161 = arith.addf %160, %159 : vector<64x16xf32>
    %162 = arith.divf %160, %161 : vector<64x16xf32>
    %163 = arith.mulf %157, %162 : vector<64x16xf32>
    %c0_80 = arith.constant 0 : index
    %c0_81 = arith.constant 0 : index
    %164 = vector.load %arg15[%c0_80, %c0_81] : memref<1x16xf32, #tpu.memory_space<vmem>>, vector<1x16xf32>
    %cst_82 = arith.constant 0.000000e+00 : f32
    %165 = vector.broadcast %cst_82 : f32 to vector<16x16xf32>
    %166 = tpu.concatenate %165, %163, %165 in 0 : vector<16x16xf32>, vector<64x16xf32>, vector<16x16xf32> -> vector<96x16xf32>
    %c1_i32_83 = arith.constant 1 : i32
    %167 = vector.broadcast %c1_i32_83 : i32 to vector<64x1xi32>
    %168 = arith.cmpi sge, %0, %167 : vector<64x1xi32>
    %c6_i32_84 = arith.constant 6 : i32
    %169 = vector.broadcast %c6_i32_84 : i32 to vector<64x1xi32>
    %170 = arith.cmpi sle, %0, %169 : vector<64x1xi32>
    %cst_85 = arith.constant 0.000000e+00 : f32
    %171 = vector.broadcast %cst_85 : f32 to vector<64x16xf32>
    %172 = vector.extract_strided_slice %166 {offsets = [7, 0], sizes = [64, 16], strides = [1, 1]} : vector<96x16xf32> to vector<64x16xf32>
    %cst_86 = arith.constant 0.000000e+00 : f32
    %173 = vector.shape_cast %168 : vector<64x1xi1> to vector<64x1xi1>
    %174 = vector.broadcast %173 : vector<64x1xi1> to vector<64x16xi1>
    %175 = vector.broadcast %cst_86 : f32 to vector<64x16xf32>
    %176 = arith.select %174, %172, %175 : vector<64x16xi1>, vector<64x16xf32>
    %177 = arith.truncf %176 : vector<64x16xf32> to vector<64x16xbf16>
    %c0_87 = arith.constant 0 : index
    %c0_88 = arith.constant 0 : index
    %c0_89 = arith.constant 0 : index
    %178 = vector.load %arg14[%c0_87, %c0_88, %c0_89] : memref<9x16x16xbf16, #tpu.memory_space<vmem>>, vector<1x16x16xbf16>
    %179 = vector.shape_cast %178 : vector<1x16x16xbf16> to vector<16x16xbf16>
    %cst_90 = arith.constant dense<0.000000e+00> : vector<64x16xf32>
    %180 = tpu.matmul %177, %179, %cst_90 {dimension_numbers = #tpu.dot_dimension_numbers<[1], [0], [0], [1], [0, 0, 1, 1], [], []>} : vector<64x16xbf16>, vector<16x16xbf16>, vector<64x16xf32> -> vector<64x16xf32>
    %181 = arith.addf %171, %180 : vector<64x16xf32>
    %182 = vector.extract_strided_slice %166 {offsets = [8, 0], sizes = [64, 16], strides = [1, 1]} : vector<96x16xf32> to vector<64x16xf32>
    %183 = arith.truncf %182 : vector<64x16xf32> to vector<64x16xbf16>
    %c1_91 = arith.constant 1 : index
    %c0_92 = arith.constant 0 : index
    %c0_93 = arith.constant 0 : index
    %184 = vector.load %arg14[%c1_91, %c0_92, %c0_93] : memref<9x16x16xbf16, #tpu.memory_space<vmem>>, vector<1x16x16xbf16>
    %185 = vector.shape_cast %184 : vector<1x16x16xbf16> to vector<16x16xbf16>
    %cst_94 = arith.constant dense<0.000000e+00> : vector<64x16xf32>
    %186 = tpu.matmul %183, %185, %cst_94 {dimension_numbers = #tpu.dot_dimension_numbers<[1], [0], [0], [1], [0, 0, 1, 1], [], []>} : vector<64x16xbf16>, vector<16x16xbf16>, vector<64x16xf32> -> vector<64x16xf32>
    %187 = arith.addf %181, %186 : vector<64x16xf32>
    %188 = vector.extract_strided_slice %166 {offsets = [9, 0], sizes = [64, 16], strides = [1, 1]} : vector<96x16xf32> to vector<64x16xf32>
    %cst_95 = arith.constant 0.000000e+00 : f32
    %189 = vector.shape_cast %170 : vector<64x1xi1> to vector<64x1xi1>
    %190 = vector.broadcast %189 : vector<64x1xi1> to vector<64x16xi1>
    %191 = vector.broadcast %cst_95 : f32 to vector<64x16xf32>
    %192 = arith.select %190, %188, %191 : vector<64x16xi1>, vector<64x16xf32>
    %193 = arith.truncf %192 : vector<64x16xf32> to vector<64x16xbf16>
    %c2_96 = arith.constant 2 : index
    %c0_97 = arith.constant 0 : index
    %c0_98 = arith.constant 0 : index
    %194 = vector.load %arg14[%c2_96, %c0_97, %c0_98] : memref<9x16x16xbf16, #tpu.memory_space<vmem>>, vector<1x16x16xbf16>
    %195 = vector.shape_cast %194 : vector<1x16x16xbf16> to vector<16x16xbf16>
    %cst_99 = arith.constant dense<0.000000e+00> : vector<64x16xf32>
    %196 = tpu.matmul %193, %195, %cst_99 {dimension_numbers = #tpu.dot_dimension_numbers<[1], [0], [0], [1], [0, 0, 1, 1], [], []>} : vector<64x16xbf16>, vector<16x16xbf16>, vector<64x16xf32> -> vector<64x16xf32>
    %197 = arith.addf %187, %196 : vector<64x16xf32>
    %198 = vector.extract_strided_slice %166 {offsets = [15, 0], sizes = [64, 16], strides = [1, 1]} : vector<96x16xf32> to vector<64x16xf32>
    %cst_100 = arith.constant 0.000000e+00 : f32
    %199 = vector.shape_cast %168 : vector<64x1xi1> to vector<64x1xi1>
    %200 = vector.broadcast %199 : vector<64x1xi1> to vector<64x16xi1>
    %201 = vector.broadcast %cst_100 : f32 to vector<64x16xf32>
    %202 = arith.select %200, %198, %201 : vector<64x16xi1>, vector<64x16xf32>
    %203 = arith.truncf %202 : vector<64x16xf32> to vector<64x16xbf16>
    %c3_101 = arith.constant 3 : index
    %c0_102 = arith.constant 0 : index
    %c0_103 = arith.constant 0 : index
    %204 = vector.load %arg14[%c3_101, %c0_102, %c0_103] : memref<9x16x16xbf16, #tpu.memory_space<vmem>>, vector<1x16x16xbf16>
    %205 = vector.shape_cast %204 : vector<1x16x16xbf16> to vector<16x16xbf16>
    %cst_104 = arith.constant dense<0.000000e+00> : vector<64x16xf32>
    %206 = tpu.matmul %203, %205, %cst_104 {dimension_numbers = #tpu.dot_dimension_numbers<[1], [0], [0], [1], [0, 0, 1, 1], [], []>} : vector<64x16xbf16>, vector<16x16xbf16>, vector<64x16xf32> -> vector<64x16xf32>
    %207 = arith.addf %197, %206 : vector<64x16xf32>
    %208 = vector.extract_strided_slice %166 {offsets = [16, 0], sizes = [64, 16], strides = [1, 1]} : vector<96x16xf32> to vector<64x16xf32>
    %209 = arith.truncf %208 : vector<64x16xf32> to vector<64x16xbf16>
    %c4_105 = arith.constant 4 : index
    %c0_106 = arith.constant 0 : index
    %c0_107 = arith.constant 0 : index
    %210 = vector.load %arg14[%c4_105, %c0_106, %c0_107] : memref<9x16x16xbf16, #tpu.memory_space<vmem>>, vector<1x16x16xbf16>
    %211 = vector.shape_cast %210 : vector<1x16x16xbf16> to vector<16x16xbf16>
    %cst_108 = arith.constant dense<0.000000e+00> : vector<64x16xf32>
    %212 = tpu.matmul %209, %211, %cst_108 {dimension_numbers = #tpu.dot_dimension_numbers<[1], [0], [0], [1], [0, 0, 1, 1], [], []>} : vector<64x16xbf16>, vector<16x16xbf16>, vector<64x16xf32> -> vector<64x16xf32>
    %213 = arith.addf %207, %212 : vector<64x16xf32>
    %214 = vector.extract_strided_slice %166 {offsets = [17, 0], sizes = [64, 16], strides = [1, 1]} : vector<96x16xf32> to vector<64x16xf32>
    %cst_109 = arith.constant 0.000000e+00 : f32
    %215 = vector.shape_cast %170 : vector<64x1xi1> to vector<64x1xi1>
    %216 = vector.broadcast %215 : vector<64x1xi1> to vector<64x16xi1>
    %217 = vector.broadcast %cst_109 : f32 to vector<64x16xf32>
    %218 = arith.select %216, %214, %217 : vector<64x16xi1>, vector<64x16xf32>
    %219 = arith.truncf %218 : vector<64x16xf32> to vector<64x16xbf16>
    %c5_110 = arith.constant 5 : index
    %c0_111 = arith.constant 0 : index
    %c0_112 = arith.constant 0 : index
    %220 = vector.load %arg14[%c5_110, %c0_111, %c0_112] : memref<9x16x16xbf16, #tpu.memory_space<vmem>>, vector<1x16x16xbf16>
    %221 = vector.shape_cast %220 : vector<1x16x16xbf16> to vector<16x16xbf16>
    %cst_113 = arith.constant dense<0.000000e+00> : vector<64x16xf32>
    %222 = tpu.matmul %219, %221, %cst_113 {dimension_numbers = #tpu.dot_dimension_numbers<[1], [0], [0], [1], [0, 0, 1, 1], [], []>} : vector<64x16xbf16>, vector<16x16xbf16>, vector<64x16xf32> -> vector<64x16xf32>
    %223 = arith.addf %213, %222 : vector<64x16xf32>
    %224 = vector.extract_strided_slice %166 {offsets = [23, 0], sizes = [64, 16], strides = [1, 1]} : vector<96x16xf32> to vector<64x16xf32>
    %cst_114 = arith.constant 0.000000e+00 : f32
    %225 = vector.shape_cast %168 : vector<64x1xi1> to vector<64x1xi1>
    %226 = vector.broadcast %225 : vector<64x1xi1> to vector<64x16xi1>
    %227 = vector.broadcast %cst_114 : f32 to vector<64x16xf32>
    %228 = arith.select %226, %224, %227 : vector<64x16xi1>, vector<64x16xf32>
    %229 = arith.truncf %228 : vector<64x16xf32> to vector<64x16xbf16>
    %c6_115 = arith.constant 6 : index
    %c0_116 = arith.constant 0 : index
    %c0_117 = arith.constant 0 : index
    %230 = vector.load %arg14[%c6_115, %c0_116, %c0_117] : memref<9x16x16xbf16, #tpu.memory_space<vmem>>, vector<1x16x16xbf16>
    %231 = vector.shape_cast %230 : vector<1x16x16xbf16> to vector<16x16xbf16>
    %cst_118 = arith.constant dense<0.000000e+00> : vector<64x16xf32>
    %232 = tpu.matmul %229, %231, %cst_118 {dimension_numbers = #tpu.dot_dimension_numbers<[1], [0], [0], [1], [0, 0, 1, 1], [], []>} : vector<64x16xbf16>, vector<16x16xbf16>, vector<64x16xf32> -> vector<64x16xf32>
    %233 = arith.addf %223, %232 : vector<64x16xf32>
    %234 = vector.extract_strided_slice %166 {offsets = [24, 0], sizes = [64, 16], strides = [1, 1]} : vector<96x16xf32> to vector<64x16xf32>
    %235 = arith.truncf %234 : vector<64x16xf32> to vector<64x16xbf16>
    %c7_119 = arith.constant 7 : index
    %c0_120 = arith.constant 0 : index
    %c0_121 = arith.constant 0 : index
    %236 = vector.load %arg14[%c7_119, %c0_120, %c0_121] : memref<9x16x16xbf16, #tpu.memory_space<vmem>>, vector<1x16x16xbf16>
    %237 = vector.shape_cast %236 : vector<1x16x16xbf16> to vector<16x16xbf16>
    %cst_122 = arith.constant dense<0.000000e+00> : vector<64x16xf32>
    %238 = tpu.matmul %235, %237, %cst_122 {dimension_numbers = #tpu.dot_dimension_numbers<[1], [0], [0], [1], [0, 0, 1, 1], [], []>} : vector<64x16xbf16>, vector<16x16xbf16>, vector<64x16xf32> -> vector<64x16xf32>
    %239 = arith.addf %233, %238 : vector<64x16xf32>
    %240 = vector.extract_strided_slice %166 {offsets = [25, 0], sizes = [64, 16], strides = [1, 1]} : vector<96x16xf32> to vector<64x16xf32>
    %cst_123 = arith.constant 0.000000e+00 : f32
    %241 = vector.shape_cast %170 : vector<64x1xi1> to vector<64x1xi1>
    %242 = vector.broadcast %241 : vector<64x1xi1> to vector<64x16xi1>
    %243 = vector.broadcast %cst_123 : f32 to vector<64x16xf32>
    %244 = arith.select %242, %240, %243 : vector<64x16xi1>, vector<64x16xf32>
    %245 = arith.truncf %244 : vector<64x16xf32> to vector<64x16xbf16>
    %c8_124 = arith.constant 8 : index
    %c0_125 = arith.constant 0 : index
    %c0_126 = arith.constant 0 : index
    %246 = vector.load %arg14[%c8_124, %c0_125, %c0_126] : memref<9x16x16xbf16, #tpu.memory_space<vmem>>, vector<1x16x16xbf16>
    %247 = vector.shape_cast %246 : vector<1x16x16xbf16> to vector<16x16xbf16>
    %cst_127 = arith.constant dense<0.000000e+00> : vector<64x16xf32>
    %248 = tpu.matmul %245, %247, %cst_127 {dimension_numbers = #tpu.dot_dimension_numbers<[1], [0], [0], [1], [0, 0, 1, 1], [], []>} : vector<64x16xbf16>, vector<16x16xbf16>, vector<64x16xf32> -> vector<64x16xf32>
    %249 = arith.addf %239, %248 : vector<64x16xf32>
    %250 = vector.broadcast %164 : vector<1x16xf32> to vector<64x16xf32>
    %251 = arith.addf %249, %250 : vector<64x16xf32>
    %252 = arith.truncf %251 : vector<64x16xf32> to vector<64x16xbf16>
    %c0_128 = arith.constant 0 : index
    %c0_129 = arith.constant 0 : index
    %253 = vector.load %arg16[%c0_128, %c0_129] : memref<16x16xbf16, #tpu.memory_space<vmem>>, vector<16x16xbf16>
    %cst_130 = arith.constant dense<0.000000e+00> : vector<64x16xf32>
    %254 = tpu.matmul %252, %253, %cst_130 {dimension_numbers = #tpu.dot_dimension_numbers<[1], [0], [0], [1], [0, 0, 1, 1], [], []>} : vector<64x16xbf16>, vector<16x16xbf16>, vector<64x16xf32> -> vector<64x16xf32>
    %c0_131 = arith.constant 0 : index
    %c0_132 = arith.constant 0 : index
    %255 = vector.load %arg17[%c0_131, %c0_132] : memref<1x16xf32, #tpu.memory_space<vmem>>, vector<1x16xf32>
    %256 = vector.broadcast %255 : vector<1x16xf32> to vector<64x16xf32>
    %257 = arith.addf %254, %256 : vector<64x16xf32>
    %258 = arith.addf %251, %257 : vector<64x16xf32>
    %c0_133 = arith.constant 0 : index
    %c0_134 = arith.constant 0 : index
    %259 = vector.load %arg18[%c0_133, %c0_134] : memref<1x16xf32, #tpu.memory_space<vmem>>, vector<1x16xf32>
    %c0_135 = arith.constant 0 : index
    %c0_136 = arith.constant 0 : index
    %260 = vector.load %arg19[%c0_135, %c0_136] : memref<1x16xf32, #tpu.memory_space<vmem>>, vector<1x16xf32>
    %c0_137 = arith.constant 0 : index
    %c0_138 = arith.constant 0 : index
    %261 = vector.load %arg6[%c0_137, %c0_138] : memref<16x8xf32, #tpu.memory_space<vmem>>, vector<16x8xf32>
    %c0_139 = arith.constant 0 : index
    %c0_140 = arith.constant 0 : index
    %262 = vector.load %arg7[%c0_139, %c0_140] : memref<8x16xf32, #tpu.memory_space<vmem>>, vector<8x16xf32>
    %cst_141 = arith.constant dense<0.000000e+00> : vector<16xf32>
    %263 = vector.multi_reduction <add>, %258, %cst_141 [0] : vector<64x16xf32> to vector<16xf32>
    %264 = vector.shape_cast %263 : vector<16xf32> to vector<1x16xf32>
    %cst_142 = arith.constant dense<0.000000e+00> : vector<1x8xf32>
    %265 = tpu.matmul %264, %261, %cst_142 {dimension_numbers = #tpu.dot_dimension_numbers<[1], [0], [0], [1], [0, 0, 1, 1], [], []>} : vector<1x16xf32>, vector<16x8xf32>, vector<1x8xf32> -> vector<1x8xf32>
    %cst_143 = arith.constant 7.812500e-03 : f32
    %266 = vector.broadcast %cst_143 : f32 to vector<1x8xf32>
    %267 = arith.mulf %265, %266 : vector<1x8xf32>
    %cst_144 = arith.constant dense<0.000000e+00> : vector<1x16xf32>
    %268 = tpu.matmul %267, %262, %cst_144 {dimension_numbers = #tpu.dot_dimension_numbers<[1], [0], [0], [1], [0, 0, 1, 1], [], []>} : vector<1x8xf32>, vector<8x16xf32>, vector<1x16xf32> -> vector<1x16xf32>
    %269 = vector.broadcast %268 : vector<1x16xf32> to vector<64x16xf32>
    %270 = arith.subf %258, %269 : vector<64x16xf32>
    %271 = arith.mulf %270, %270 : vector<64x16xf32>
    %cst_145 = arith.constant dense<0.000000e+00> : vector<16xf32>
    %272 = vector.multi_reduction <add>, %271, %cst_145 [0] : vector<64x16xf32> to vector<16xf32>
    %273 = vector.shape_cast %272 : vector<16xf32> to vector<1x16xf32>
    %cst_146 = arith.constant dense<0.000000e+00> : vector<1x8xf32>
    %274 = tpu.matmul %273, %261, %cst_146 {dimension_numbers = #tpu.dot_dimension_numbers<[1], [0], [0], [1], [0, 0, 1, 1], [], []>} : vector<1x16xf32>, vector<16x8xf32>, vector<1x8xf32> -> vector<1x8xf32>
    %cst_147 = arith.constant 7.812500e-03 : f32
    %275 = vector.broadcast %cst_147 : f32 to vector<1x8xf32>
    %276 = arith.mulf %274, %275 : vector<1x8xf32>
    %cst_148 = arith.constant 9.99999974E-6 : f32
    %277 = vector.broadcast %cst_148 : f32 to vector<1x8xf32>
    %278 = arith.addf %276, %277 : vector<1x8xf32>
    %279 = math.rsqrt %278 : vector<1x8xf32>
    %cst_149 = arith.constant dense<0.000000e+00> : vector<1x16xf32>
    %280 = tpu.matmul %279, %262, %cst_149 {dimension_numbers = #tpu.dot_dimension_numbers<[1], [0], [0], [1], [0, 0, 1, 1], [], []>} : vector<1x8xf32>, vector<8x16xf32>, vector<1x16xf32> -> vector<1x16xf32>
    %281 = vector.broadcast %280 : vector<1x16xf32> to vector<64x16xf32>
    %282 = arith.mulf %270, %281 : vector<64x16xf32>
    %283 = vector.broadcast %259 : vector<1x16xf32> to vector<64x16xf32>
    %284 = arith.mulf %282, %283 : vector<64x16xf32>
    %285 = vector.broadcast %260 : vector<1x16xf32> to vector<64x16xf32>
    %286 = arith.addf %284, %285 : vector<64x16xf32>
    %287 = arith.truncf %286 : vector<64x16xf32> to vector<64x16xbf16>
    %c0_150 = arith.constant 0 : index
    %c0_151 = arith.constant 0 : index
    %c0_152 = arith.constant 0 : index
    %288 = vector.load %arg20[%c0_150, %c0_151, %c0_152] : memref<2x16x8xbf16, #tpu.memory_space<vmem>>, vector<1x16x8xbf16>
    %289 = vector.shape_cast %288 : vector<1x16x8xbf16> to vector<16x8xbf16>
    %cst_153 = arith.constant dense<0.000000e+00> : vector<64x8xf32>
    %290 = tpu.matmul %287, %289, %cst_153 {dimension_numbers = #tpu.dot_dimension_numbers<[1], [0], [0], [1], [0, 0, 1, 1], [], []>} : vector<64x16xbf16>, vector<16x8xbf16>, vector<64x8xf32> -> vector<64x8xf32>
    %c0_154 = arith.constant 0 : index
    %c0_155 = arith.constant 0 : index
    %c0_156 = arith.constant 0 : index
    %291 = vector.load %arg23[%c0_154, %c0_155, %c0_156] : memref<2x1x8xf32, #tpu.memory_space<vmem>>, vector<1x1x8xf32>
    %292 = vector.shape_cast %291 : vector<1x1x8xf32> to vector<1x8xf32>
    %293 = vector.broadcast %292 : vector<1x8xf32> to vector<64x8xf32>
    %294 = arith.addf %290, %293 : vector<64x8xf32>
    %c0_157 = arith.constant 0 : index
    %c0_158 = arith.constant 0 : index
    %c0_159 = arith.constant 0 : index
    %295 = vector.load %arg21[%c0_157, %c0_158, %c0_159] : memref<2x16x8xbf16, #tpu.memory_space<vmem>>, vector<1x16x8xbf16>
    %296 = vector.shape_cast %295 : vector<1x16x8xbf16> to vector<16x8xbf16>
    %cst_160 = arith.constant dense<0.000000e+00> : vector<64x8xf32>
    %297 = tpu.matmul %287, %296, %cst_160 {dimension_numbers = #tpu.dot_dimension_numbers<[1], [0], [0], [1], [0, 0, 1, 1], [], []>} : vector<64x16xbf16>, vector<16x8xbf16>, vector<64x8xf32> -> vector<64x8xf32>
    %c0_161 = arith.constant 0 : index
    %c0_162 = arith.constant 0 : index
    %c0_163 = arith.constant 0 : index
    %298 = vector.load %arg24[%c0_161, %c0_162, %c0_163] : memref<2x1x8xf32, #tpu.memory_space<vmem>>, vector<1x1x8xf32>
    %299 = vector.shape_cast %298 : vector<1x1x8xf32> to vector<1x8xf32>
    %300 = vector.broadcast %299 : vector<1x8xf32> to vector<64x8xf32>
    %301 = arith.addf %297, %300 : vector<64x8xf32>
    %c0_164 = arith.constant 0 : index
    %c0_165 = arith.constant 0 : index
    %c0_166 = arith.constant 0 : index
    %302 = vector.load %arg22[%c0_164, %c0_165, %c0_166] : memref<2x16x8xbf16, #tpu.memory_space<vmem>>, vector<1x16x8xbf16>
    %303 = vector.shape_cast %302 : vector<1x16x8xbf16> to vector<16x8xbf16>
    %cst_167 = arith.constant dense<0.000000e+00> : vector<64x8xf32>
    %304 = tpu.matmul %287, %303, %cst_167 {dimension_numbers = #tpu.dot_dimension_numbers<[1], [0], [0], [1], [0, 0, 1, 1], [], []>} : vector<64x16xbf16>, vector<16x8xbf16>, vector<64x8xf32> -> vector<64x8xf32>
    %c0_168 = arith.constant 0 : index
    %c0_169 = arith.constant 0 : index
    %c0_170 = arith.constant 0 : index
    %305 = vector.load %arg25[%c0_168, %c0_169, %c0_170] : memref<2x1x8xf32, #tpu.memory_space<vmem>>, vector<1x1x8xf32>
    %306 = vector.shape_cast %305 : vector<1x1x8xf32> to vector<1x8xf32>
    %307 = vector.broadcast %306 : vector<1x8xf32> to vector<64x8xf32>
    %308 = arith.addf %304, %307 : vector<64x8xf32>
    %c1_171 = arith.constant 1 : index
    %c0_172 = arith.constant 0 : index
    %c0_173 = arith.constant 0 : index
    %309 = vector.load %arg20[%c1_171, %c0_172, %c0_173] : memref<2x16x8xbf16, #tpu.memory_space<vmem>>, vector<1x16x8xbf16>
    %310 = vector.shape_cast %309 : vector<1x16x8xbf16> to vector<16x8xbf16>
    %cst_174 = arith.constant dense<0.000000e+00> : vector<64x8xf32>
    %311 = tpu.matmul %287, %310, %cst_174 {dimension_numbers = #tpu.dot_dimension_numbers<[1], [0], [0], [1], [0, 0, 1, 1], [], []>} : vector<64x16xbf16>, vector<16x8xbf16>, vector<64x8xf32> -> vector<64x8xf32>
    %c1_175 = arith.constant 1 : index
    %c0_176 = arith.constant 0 : index
    %c0_177 = arith.constant 0 : index
    %312 = vector.load %arg23[%c1_175, %c0_176, %c0_177] : memref<2x1x8xf32, #tpu.memory_space<vmem>>, vector<1x1x8xf32>
    %313 = vector.shape_cast %312 : vector<1x1x8xf32> to vector<1x8xf32>
    %314 = vector.broadcast %313 : vector<1x8xf32> to vector<64x8xf32>
    %315 = arith.addf %311, %314 : vector<64x8xf32>
    %c1_178 = arith.constant 1 : index
    %c0_179 = arith.constant 0 : index
    %c0_180 = arith.constant 0 : index
    %316 = vector.load %arg21[%c1_178, %c0_179, %c0_180] : memref<2x16x8xbf16, #tpu.memory_space<vmem>>, vector<1x16x8xbf16>
    %317 = vector.shape_cast %316 : vector<1x16x8xbf16> to vector<16x8xbf16>
    %cst_181 = arith.constant dense<0.000000e+00> : vector<64x8xf32>
    %318 = tpu.matmul %287, %317, %cst_181 {dimension_numbers = #tpu.dot_dimension_numbers<[1], [0], [0], [1], [0, 0, 1, 1], [], []>} : vector<64x16xbf16>, vector<16x8xbf16>, vector<64x8xf32> -> vector<64x8xf32>
    %c1_182 = arith.constant 1 : index
    %c0_183 = arith.constant 0 : index
    %c0_184 = arith.constant 0 : index
    %319 = vector.load %arg24[%c1_182, %c0_183, %c0_184] : memref<2x1x8xf32, #tpu.memory_space<vmem>>, vector<1x1x8xf32>
    %320 = vector.shape_cast %319 : vector<1x1x8xf32> to vector<1x8xf32>
    %321 = vector.broadcast %320 : vector<1x8xf32> to vector<64x8xf32>
    %322 = arith.addf %318, %321 : vector<64x8xf32>
    %c1_185 = arith.constant 1 : index
    %c0_186 = arith.constant 0 : index
    %c0_187 = arith.constant 0 : index
    %323 = vector.load %arg22[%c1_185, %c0_186, %c0_187] : memref<2x16x8xbf16, #tpu.memory_space<vmem>>, vector<1x16x8xbf16>
    %324 = vector.shape_cast %323 : vector<1x16x8xbf16> to vector<16x8xbf16>
    %cst_188 = arith.constant dense<0.000000e+00> : vector<64x8xf32>
    %325 = tpu.matmul %287, %324, %cst_188 {dimension_numbers = #tpu.dot_dimension_numbers<[1], [0], [0], [1], [0, 0, 1, 1], [], []>} : vector<64x16xbf16>, vector<16x8xbf16>, vector<64x8xf32> -> vector<64x8xf32>
    %c1_189 = arith.constant 1 : index
    %c0_190 = arith.constant 0 : index
    %c0_191 = arith.constant 0 : index
    %326 = vector.load %arg25[%c1_189, %c0_190, %c0_191] : memref<2x1x8xf32, #tpu.memory_space<vmem>>, vector<1x1x8xf32>
    %327 = vector.shape_cast %326 : vector<1x1x8xf32> to vector<1x8xf32>
    %328 = vector.broadcast %327 : vector<1x8xf32> to vector<64x8xf32>
    %329 = arith.addf %325, %328 : vector<64x8xf32>
    %330 = vector.shape_cast %294 : vector<64x8xf32> to vector<1x64x8xf32>
    %331 = vector.shape_cast %315 : vector<64x8xf32> to vector<1x64x8xf32>
    %332 = tpu.concatenate %330, %331 in 0 : vector<1x64x8xf32>, vector<1x64x8xf32> -> vector<2x64x8xf32>
    %333 = vector.shape_cast %301 : vector<64x8xf32> to vector<1x64x8xf32>
    %334 = vector.shape_cast %322 : vector<64x8xf32> to vector<1x64x8xf32>
    %335 = tpu.concatenate %333, %334 in 0 : vector<1x64x8xf32>, vector<1x64x8xf32> -> vector<2x64x8xf32>
    %336 = vector.shape_cast %308 : vector<64x8xf32> to vector<1x64x8xf32>
    %337 = vector.shape_cast %329 : vector<64x8xf32> to vector<1x64x8xf32>
    %338 = tpu.concatenate %336, %337 in 0 : vector<1x64x8xf32>, vector<1x64x8xf32> -> vector<2x64x8xf32>
    %339 = arith.truncf %332 : vector<2x64x8xf32> to vector<2x64x8xbf16>
    %340 = arith.truncf %335 : vector<2x64x8xf32> to vector<2x64x8xbf16>
    "tpu.trace_start"() <{level = 10 : i32, message = "hqd,hkd->hqk"}> : () -> ()
    %cst_192 = arith.constant dense<0.000000e+00> : vector<2x64x64xf32>
    %341 = tpu.matmul %339, %340, %cst_192 {dimension_numbers = #tpu.dot_dimension_numbers<[2], [2], [1], [1], [0, 0, 0, 1, 1, 1], [0], [0]>} : vector<2x64x8xbf16>, vector<2x64x8xbf16>, vector<2x64x64xf32> -> vector<2x64x64xf32>
    "tpu.trace_stop"() : () -> ()
    %cst_193 = arith.constant dense<0xFF800000> : vector<2x64xf32>
    %342 = vector.multi_reduction <maximumf>, %341, %cst_193 [2] : vector<2x64x64xf32> to vector<2x64xf32>
    %343 = vector.shape_cast %342 : vector<2x64xf32> to vector<2x64x1xf32>
    %344 = vector.broadcast %343 : vector<2x64x1xf32> to vector<2x64x64xf32>
    %345 = arith.subf %341, %344 : vector<2x64x64xf32>
    %346 = math.exp %345 : vector<2x64x64xf32>
    %cst_194 = arith.constant dense<0.000000e+00> : vector<2x64xf32>
    %347 = vector.multi_reduction <add>, %346, %cst_194 [2] : vector<2x64x64xf32> to vector<2x64xf32>
    %348 = vector.shape_cast %347 : vector<2x64xf32> to vector<2x64x1xf32>
    %349 = tpu.reciprocal %348 {approx = true} : vector<2x64x1xf32> -> vector<2x64x1xf32>
    %350 = vector.broadcast %349 : vector<2x64x1xf32> to vector<2x64x64xf32>
    %351 = arith.mulf %346, %350 : vector<2x64x64xf32>
    %352 = arith.truncf %351 : vector<2x64x64xf32> to vector<2x64x64xbf16>
    %353 = arith.truncf %338 : vector<2x64x8xf32> to vector<2x64x8xbf16>
    "tpu.trace_start"() <{level = 10 : i32, message = "hqk,hkd->hqd"}> : () -> ()
    %cst_195 = arith.constant dense<0.000000e+00> : vector<2x64x8xf32>
    %354 = tpu.matmul %352, %353, %cst_195 {dimension_numbers = #tpu.dot_dimension_numbers<[2], [1], [1], [2], [0, 0, 0, 1, 1, 2], [0], [0]>} : vector<2x64x64xbf16>, vector<2x64x8xbf16>, vector<2x64x8xf32> -> vector<2x64x8xf32>
    "tpu.trace_stop"() : () -> ()
    %355 = arith.truncf %354 : vector<2x64x8xf32> to vector<2x64x8xbf16>
    %c0_196 = arith.constant 0 : index
    %c0_197 = arith.constant 0 : index
    %c0_198 = arith.constant 0 : index
    %356 = vector.load %arg26[%c0_196, %c0_197, %c0_198] : memref<2x8x16xbf16, #tpu.memory_space<vmem>>, vector<2x8x16xbf16>
    "tpu.trace_start"() <{level = 10 : i32, message = "hqd,hdc->hqc"}> : () -> ()
    %cst_199 = arith.constant dense<0.000000e+00> : vector<2x64x16xf32>
    %357 = tpu.matmul %355, %356, %cst_199 {dimension_numbers = #tpu.dot_dimension_numbers<[2], [1], [1], [2], [0, 0, 0, 1, 1, 2], [0], [0]>} : vector<2x64x8xbf16>, vector<2x8x16xbf16>, vector<2x64x16xf32> -> vector<2x64x16xf32>
    "tpu.trace_stop"() : () -> ()
    %cst_200 = arith.constant dense<0.000000e+00> : vector<64x16xf32>
    %358 = vector.multi_reduction <add>, %357, %cst_200 [0] : vector<2x64x16xf32> to vector<64x16xf32>
    %c0_201 = arith.constant 0 : index
    %c0_202 = arith.constant 0 : index
    %359 = vector.load %arg27[%c0_201, %c0_202] : memref<1x16xf32, #tpu.memory_space<vmem>>, vector<1x16xf32>
    %360 = vector.broadcast %359 : vector<1x16xf32> to vector<64x16xf32>
    %361 = arith.addf %358, %360 : vector<64x16xf32>
    %362 = arith.addf %258, %361 : vector<64x16xf32>
    %cst_203 = arith.constant 0.000000e+00 : f32
    %363 = vector.broadcast %cst_203 : f32 to vector<64x112xf32>
    %364 = tpu.concatenate %362, %363 in 1 : vector<64x16xf32>, vector<64x112xf32> -> vector<64x128xf32>
    %c0_204 = arith.constant 0 : index
    %c0_205 = arith.constant 0 : index
    %c0_206 = arith.constant 0 : index
    %365 = vector.load %arg28[%c0_204, %c0_205, %c0_206] : memref<1x64x128xf32, #tpu.memory_space<vmem>>, vector<1x64x128xf32>
    %366 = vector.shape_cast %365 : vector<1x64x128xf32> to vector<64x128xf32>
    %367 = vector.shape_cast %364 : vector<64x128xf32> to vector<1x64x128xf32>
    tpu.vector_store %arg28[%c0_204, %c0_205, %c0_206], %367 {strides = array<i32>} : memref<1x64x128xf32, #tpu.memory_space<vmem>>, vector<1x64x128xf32>,
    return
  }
  func.func @transform_0(%arg0: i32) -> (i32, i32, i32) {
    %c0_i32 = arith.constant 0 : i32
    %c0_i32_0 = arith.constant 0 : i32
    %c0_i32_1 = arith.constant 0 : i32
    return %arg0, %c0_i32, %c0_i32_0 : i32, i32, i32
  }
  func.func @transform_1(%arg0: i32) -> (i32, i32, i32) {
    %c0_i32 = arith.constant 0 : i32
    %c0_i32_0 = arith.constant 0 : i32
    %c0_i32_1 = arith.constant 0 : i32
    return %arg0, %c0_i32, %c0_i32_0 : i32, i32, i32
  }
  func.func @transform_2(%arg0: i32) -> (i32, i32) {
    %c0_i32 = arith.constant 0 : i32
    %c0_i32_0 = arith.constant 0 : i32
    %c0_i32_1 = arith.constant 0 : i32
    return %c0_i32, %c0_i32_0 : i32, i32
  }
  func.func @transform_3(%arg0: i32) -> (i32, i32) {
    %c0_i32 = arith.constant 0 : i32
    %c0_i32_0 = arith.constant 0 : i32
    %c0_i32_1 = arith.constant 0 : i32
    return %c0_i32, %c0_i32_0 : i32, i32
  }
  func.func @transform_4(%arg0: i32) -> (i32, i32) {
    %c0_i32 = arith.constant 0 : i32
    %c0_i32_0 = arith.constant 0 : i32
    %c0_i32_1 = arith.constant 0 : i32
    return %c0_i32, %c0_i32_0 : i32, i32
  }
  func.func @transform_5(%arg0: i32) -> (i32, i32) {
    %c0_i32 = arith.constant 0 : i32
    %c0_i32_0 = arith.constant 0 : i32
    %c0_i32_1 = arith.constant 0 : i32
    return %c0_i32, %c0_i32_0 : i32, i32
  }
  func.func @transform_6(%arg0: i32) -> (i32, i32) {
    %c0_i32 = arith.constant 0 : i32
    %c0_i32_0 = arith.constant 0 : i32
    %c0_i32_1 = arith.constant 0 : i32
    return %c0_i32, %c0_i32_0 : i32, i32
  }
  func.func @transform_7(%arg0: i32) -> (i32, i32) {
    %c0_i32 = arith.constant 0 : i32
    %c0_i32_0 = arith.constant 0 : i32
    %c0_i32_1 = arith.constant 0 : i32
    return %c0_i32, %c0_i32_0 : i32, i32
  }
  func.func @transform_8(%arg0: i32) -> (i32, i32) {
    %c0_i32 = arith.constant 0 : i32
    %c0_i32_0 = arith.constant 0 : i32
    %c0_i32_1 = arith.constant 0 : i32
    return %c0_i32, %c0_i32_0 : i32, i32
  }
  func.func @transform_9(%arg0: i32) -> (i32, i32, i32) {
    %c0_i32 = arith.constant 0 : i32
    %c0_i32_0 = arith.constant 0 : i32
    %c0_i32_1 = arith.constant 0 : i32
    %c0_i32_2 = arith.constant 0 : i32
    return %c0_i32, %c0_i32_0, %c0_i32_1 : i32, i32, i32
  }
  func.func @transform_10(%arg0: i32) -> (i32, i32) {
    %c0_i32 = arith.constant 0 : i32
    %c0_i32_0 = arith.constant 0 : i32
    %c0_i32_1 = arith.constant 0 : i32
    return %c0_i32, %c0_i32_0 : i32, i32
  }
  func.func @transform_11(%arg0: i32) -> (i32, i32) {
    %c0_i32 = arith.constant 0 : i32
    %c0_i32_0 = arith.constant 0 : i32
    %c0_i32_1 = arith.constant 0 : i32
    return %c0_i32, %c0_i32_0 : i32, i32
  }
  func.func @transform_12(%arg0: i32) -> (i32, i32) {
    %c0_i32 = arith.constant 0 : i32
    %c0_i32_0 = arith.constant 0 : i32
    %c0_i32_1 = arith.constant 0 : i32
    return %c0_i32, %c0_i32_0 : i32, i32
  }
  func.func @transform_13(%arg0: i32) -> (i32, i32, i32) {
    %c0_i32 = arith.constant 0 : i32
    %c0_i32_0 = arith.constant 0 : i32
    %c0_i32_1 = arith.constant 0 : i32
    %c0_i32_2 = arith.constant 0 : i32
    return %c0_i32, %c0_i32_0, %c0_i32_1 : i32, i32, i32
  }
  func.func @transform_14(%arg0: i32) -> (i32, i32) {
    %c0_i32 = arith.constant 0 : i32
    %c0_i32_0 = arith.constant 0 : i32
    %c0_i32_1 = arith.constant 0 : i32
    return %c0_i32, %c0_i32_0 : i32, i32
  }
  func.func @transform_15(%arg0: i32) -> (i32, i32) {
    %c0_i32 = arith.constant 0 : i32
    %c0_i32_0 = arith.constant 0 : i32
    %c0_i32_1 = arith.constant 0 : i32
    return %c0_i32, %c0_i32_0 : i32, i32
  }
  func.func @transform_16(%arg0: i32) -> (i32, i32) {
    %c0_i32 = arith.constant 0 : i32
    %c0_i32_0 = arith.constant 0 : i32
    %c0_i32_1 = arith.constant 0 : i32
    return %c0_i32, %c0_i32_0 : i32, i32
  }
  func.func @transform_17(%arg0: i32) -> (i32, i32) {
    %c0_i32 = arith.constant 0 : i32
    %c0_i32_0 = arith.constant 0 : i32
    %c0_i32_1 = arith.constant 0 : i32
    return %c0_i32, %c0_i32_0 : i32, i32
  }
  func.func @transform_18(%arg0: i32) -> (i32, i32) {
    %c0_i32 = arith.constant 0 : i32
    %c0_i32_0 = arith.constant 0 : i32
    %c0_i32_1 = arith.constant 0 : i32
    return %c0_i32, %c0_i32_0 : i32, i32
  }
  func.func @transform_19(%arg0: i32) -> (i32, i32, i32) {
    %c0_i32 = arith.constant 0 : i32
    %c0_i32_0 = arith.constant 0 : i32
    %c0_i32_1 = arith.constant 0 : i32
    %c0_i32_2 = arith.constant 0 : i32
    return %c0_i32, %c0_i32_0, %c0_i32_1 : i32, i32, i32
  }
  func.func @transform_20(%arg0: i32) -> (i32, i32, i32) {
    %c0_i32 = arith.constant 0 : i32
    %c0_i32_0 = arith.constant 0 : i32
    %c0_i32_1 = arith.constant 0 : i32
    %c0_i32_2 = arith.constant 0 : i32
    return %c0_i32, %c0_i32_0, %c0_i32_1 : i32, i32, i32
  }
  func.func @transform_21(%arg0: i32) -> (i32, i32, i32) {
    %c0_i32 = arith.constant 0 : i32
    %c0_i32_0 = arith.constant 0 : i32
    %c0_i32_1 = arith.constant 0 : i32
    %c0_i32_2 = arith.constant 0 : i32
    return %c0_i32, %c0_i32_0, %c0_i32_1 : i32, i32, i32
  }
  func.func @transform_22(%arg0: i32) -> (i32, i32, i32) {
    %c0_i32 = arith.constant 0 : i32
    %c0_i32_0 = arith.constant 0 : i32
    %c0_i32_1 = arith.constant 0 : i32
    %c0_i32_2 = arith.constant 0 : i32
    return %c0_i32, %c0_i32_0, %c0_i32_1 : i32, i32, i32
  }
  func.func @transform_23(%arg0: i32) -> (i32, i32, i32) {
    %c0_i32 = arith.constant 0 : i32
    %c0_i32_0 = arith.constant 0 : i32
    %c0_i32_1 = arith.constant 0 : i32
    %c0_i32_2 = arith.constant 0 : i32
    return %c0_i32, %c0_i32_0, %c0_i32_1 : i32, i32, i32
  }
  func.func @transform_24(%arg0: i32) -> (i32, i32, i32) {
    %c0_i32 = arith.constant 0 : i32
    %c0_i32_0 = arith.constant 0 : i32
    %c0_i32_1 = arith.constant 0 : i32
    %c0_i32_2 = arith.constant 0 : i32
    return %c0_i32, %c0_i32_0, %c0_i32_1 : i32, i32, i32
  }
  func.func @transform_25(%arg0: i32) -> (i32, i32, i32) {
    %c0_i32 = arith.constant 0 : i32
    %c0_i32_0 = arith.constant 0 : i32
    %c0_i32_1 = arith.constant 0 : i32
    %c0_i32_2 = arith.constant 0 : i32
    return %c0_i32, %c0_i32_0, %c0_i32_1 : i32, i32, i32
  }
  func.func @transform_26(%arg0: i32) -> (i32, i32) {
    %c0_i32 = arith.constant 0 : i32
    %c0_i32_0 = arith.constant 0 : i32
    %c0_i32_1 = arith.constant 0 : i32
    return %c0_i32, %c0_i32_0 : i32, i32
  }
  func.func @transform_27(%arg0: i32) -> (i32, i32, i32) {
    %c0_i32 = arith.constant 0 : i32
    %c0_i32_0 = arith.constant 0 : i32
    %c0_i32_1 = arith.constant 0 : i32
    return %arg0, %c0_i32, %c0_i32_0 : i32, i32, i32
  }
}

</mosaic_0001>

<bundles_post_ra>
// kernel: downs_block_forward.1
= control target key start
LH: loop header
LB: loop body
LE: loop exit
PB: predicated region body
PF: predicated region fallthrough
CT: control target
= control target key end

     0   :  { %s8425_s0 = inlined_call_operand.vmem [shape: bf16[2,64,16], index: 0, kind: input, shape index: {}]   ;;  %s8426_s1 = inlined_call_operand.vmem [shape: f32[2,1,16], index: 1, kind: input, shape index: {}]   ;;  %s8427_s2 = inlined_call_operand.vmem [shape: s32[64,1], index: 2, kind: input, shape index: {}]   ;;  %s8428_s3 = inlined_call_operand.vmem [shape: f32[16,8], index: 3, kind: input, shape index: {}]   ;;  %s8429_s4 = inlined_call_operand.vmem [shape: f32[8,16], index: 4, kind: input, shape index: {}]   ;;  %s8430_s5 = inlined_call_operand.vmem [shape: f32[16,8], index: 5, kind: input, shape index: {}]   ;;  %s8431_s6 = inlined_call_operand.vmem [shape: f32[8,16], index: 6, kind: input, shape index: {}]   ;;  %s8432_s7 = inlined_call_operand.vmem [shape: f32[1,16], index: 7, kind: input, shape index: {}]   ;;  %s8433_s8 = inlined_call_operand.vmem [shape: f32[1,16], index: 8, kind: input, shape index: {}]   ;;  %s8434_s9 = inlined_call_operand.vmem [shape: bf16[9,16,16], index: 9, kind: input, shape index: {}]   ;;  %s8435_s10 = inlined_call_operand.vmem [shape: f32[1,16], index: 10, kind: input, shape index: {}]   ;;  %s8436_s11 = inlined_call_operand.vmem [shape: f32[1,16], index: 11, kind: input, shape index: {}]   ;;  %s8437_s12 = inlined_call_operand.vmem [shape: f32[1,16], index: 12, kind: input, shape index: {}]   ;;  %s8438_s13 = inlined_call_operand.vmem [shape: bf16[9,16,16], index: 13, kind: input, shape index: {}]   ;;  %s8439_s14 = inlined_call_operand.vmem [shape: f32[1,16], index: 14, kind: input, shape index: {}]   ;;  %s8440_s15 = inlined_call_operand.vmem [shape: bf16[16,16], index: 15, kind: input, shape index: {}]   ;;  %s8441_s16 = inlined_call_operand.vmem [shape: f32[1,16], index: 16, kind: input, shape index: {}]   ;;  %s8442_s17 = inlined_call_operand.vmem [shape: f32[1,16], index: 17, kind: input, shape index: {}]   ;;  %s8443_s18 = inlined_call_operand.vmem [shape: f32[1,16], index: 18, kind: input, shape index: {}]   ;;  %s8444_s19 = inlined_call_operand.vmem [shape: bf16[2,16,8], index: 19, kind: input, shape index: {}]   ;;  %s8445_s20 = inlined_call_operand.vmem [shape: bf16[2,16,8], index: 20, kind: input, shape index: {}]   ;;  %s8446_s21 = inlined_call_operand.vmem [shape: bf16[2,16,8], index: 21, kind: input, shape index: {}]   ;;  %s8447_s22 = inlined_call_operand.vmem [shape: f32[2,1,8], index: 22, kind: input, shape index: {}]   ;;  %s8448_s23 = inlined_call_operand.vmem [shape: f32[2,1,8], index: 23, kind: input, shape index: {}]   ;;  %s8449_s24 = inlined_call_operand.vmem [shape: f32[2,1,8], index: 24, kind: input, shape index: {}]   ;;  %s8450_s25 = inlined_call_operand.vmem [shape: bf16[2,8,16], index: 25, kind: input, shape index: {}]   ;;  %s8451_s26 = inlined_call_operand.vmem [shape: f32[1,16], index: 26, kind: input, shape index: {}]   ;;  %s8452_s27 = inlined_call_operand.vmem [shape: f32[2,64,128], index: 27, kind: output, shape index: {}]  }
   0x1   :  { %8517 = sst [smem:[#allocation32_spill]] %s8425_s0 }
   0x2   :  { %8518 = sst [smem:[#allocation33_spill]] %s8426_s1 }
   0x3   :  { %8519 = sst [smem:[#allocation34_spill]] %s8427_s2 }
   0x4   :  { %8520 = sst [smem:[#allocation35_spill]] %s8428_s3 }
   0x5   :  { %8521 = sst [smem:[#allocation36_spill]] %s8429_s4 }
   0x6   :  { %8522 = sst [smem:[#allocation37_spill]] %s8430_s5 }
   0x7   :  { %8523 = sst [smem:[#allocation38_spill]] %s8431_s6 }
   0x8   :  { %8524 = sst [smem:[#allocation39_spill]] %s8432_s7  ;;  %s6899_s7 = smov 0  }
   0x9   :  { %8525 = sst [smem:[#allocation40_spill]] %s8433_s8 }
   0xa   :  { %8526 = sst [smem:[#allocation41_spill]] %s8434_s9 }
   0xb   :  { %8527 = sst [smem:[#allocation42_spill]] %s8435_s10 }
   0xc   :  { %8528 = sst [smem:[#allocation43_spill]] %s8436_s11 }
   0xd LB: > { %s5693_s4 = sadd.s32 4294967295, %s6754_s7   ;;  %p5697_p0 = scmp.ge.s32.totalorder %s6754_s7, 1  ;;  %s6754_s7 = sphi %s6899_s7, %s37_s7  }
   0xe   : > { %p745_p1 = scmp.lt.s32.totalorder %s6754_s7, 3 }
  0x10   : > { %p746_p2 = pnand %p5697_p0, %p745_p1 }
  0x12   : > { %749 = sbr.rel (%p746_p2) target bundleno = 4650 (0x122a), region = 128 }
  0x17   : > { %s8529_s9 = sld [smem:[#allocation35_spill]]  ;;  %p820_p3 = scmp.lt.s32.totalorder %s5693_s4, 1  ;;  %v8466_v2 = vmov 0.0   ;;  %vm8459_vm0 = vmmov 0   ;;  %vm863_vm1 = vcmask 130048   ;;  %vm8458_vm2 = vcmask 64512  }
  0x18   : > { %6157 = vmatprep.subr.mxu0 %v8466_v2  ;;  %6161 = vmatprep.mubr.msk.f32.mxu0 %vm8459_vm0, %v8466_v2  ;;  %s8530_s1 = sld [smem:[#allocation32_spill]]  ;;  %v1033_v40 = vlaneseq }
  0x19   : > { %s8681_s4 = smov (!%p820_p3, %s5693_s4), 1  ;;  %6164 = vmatprep.subr.mxu1 %v8466_v2  ;;  %6166 = vmatprep.mubr.msk.f32.mxu1 %vm8459_vm0, %v8466_v2  ;;  %s8531_s3 = sld [smem:[#allocation36_spill]] }
  0x1a   : > { %s5939_s0 = sshll.u32 %s8681_s4, 5  ;;  %v1034_v41 = vshrl.u32 %v1033_v40, 7  ;;  %s8533_s5 = sld [smem:[#allocation34_spill]] }
  0x1b   : > { %s8535_s29 = sld [smem:[#allocation39_spill]] }
  0x1c   : > { %v6950_v42 = vsub.s32 0, %v1034_v41  ;;  %s8536_s2 = sld [smem:[#allocation40_spill]] }
  0x1d   : > { %v861_v0 = vld [vmem:[%s8529_s9 + $0x8] sm:$0xff]  ;;  %v860_v1 = vld [vmem:[%s8529_s9] sm:$0xff]  ;;  %s8562_s30 = sld [smem:[#allocation37_spill]] }
  0x1e   : > { %6158 = vmatpush3.msra.mxu0 %v861_v0  ;;  %s824_s6 = scalar_lea.vmem %s8530_s1, %s5939_s0  ;;  %8532 = vst [vmem:[#allocation2_spill] sm:$0xff] %v6950_v42  ;;  %s8575_s1 = sld [smem:[#allocation33_spill]] }
  0x1f   : > { %6159 = vmatprep.subr.mxu0 %v8466_v2  ;;  %v5942_v3 = vld [vmem:[%s824_s6] sm:$0xff]   ;;  %v5957_v4 = vld [vmem:[%s824_s6 + $0x8] sm:$0xff]   ;;  %v5958_v5 = vld [vmem:[%s824_s6 + $0x10] sm:$0xff]   ;;  %s8576_s8 = sld [smem:[#allocation42_spill]] }
  0x20   : > { %6160 = vmatpush3.msra.mxu0 %v860_v1  ;;  %v5943_v6 = vunpack.c.l.bf16 %v5942_v3  ;;  %v5944_v7 = vunpack.c.h.bf16 %v5942_v3  ;;  %v5947_v8 = vunpack.c.l.bf16 %v5957_v4  ;;  %v5948_v9 = vunpack.c.h.bf16 %v5957_v4  ;;  %v6927_v10 = vld [vmem:[%s824_s6 + $0x18] sm:$0xff]   ;;  %v862_v36 = vld [vmem:[%s8531_s3] sm:$0xff]  ;;  %s8534_s6 = sld [smem:[#allocation41_spill]] }
  0x21   : > { %6176 = vmatprep.subr.mxu0 %v8466_v2  ;;  %v5951_v11 = vunpack.c.l.bf16 %v5958_v5  ;;  %v5952_v12 = vunpack.c.h.bf16 %v5958_v5  ;;  %v5955_v13 = vunpack.c.l.bf16 %v6927_v10  ;;  %v5956_v14 = vunpack.c.h.bf16 %v6927_v10  ;;  %6165 = vmatpush3.msra.mxu1 %v862_v36  ;;  %s8581_s10 = sld [smem:[#allocation38_spill]] }
  0x22   : > { %v864_v15 = vsel %vm863_vm1, %v5943_v6, 0.0  ;;  %v865_v16 = vsel %vm863_vm1, %v5944_v7, 0.0  ;;  %v867_v17 = vsel %vm863_vm1, %v5947_v8, 0.0  ;;  %v869_v19 = vsel %vm863_vm1, %v5948_v9, 0.0  ;;  %6169 = vmatprep.subr.mxu1 %v8466_v2 }
  0x23   : > { %v866_v18 = vadd.f32 %v865_v16, %v864_v15  ;;  %v871_v20 = vsel %vm863_vm1, %v5951_v11, 0.0  ;;  %v873_v21 = vsel %vm863_vm1, %v5952_v12, 0.0  ;;  %v875_v22 = vsel %vm863_vm1, %v5955_v13, 0.0 }
  0x24   : > { %v877_v23 = vsel %vm863_vm1, %v5956_v14, 0.0  ;;  %s827_s11 = scalar_lea.vmem %s8575_s1, %s8681_s4 }
  0x25   : > { %v868_v24 = vadd.f32 %v867_v17, %v866_v18 }
  0x27   : > { %v870_v25 = vadd.f32 %v869_v19, %v868_v24  ;;  %v835_v24 = vld [vmem:[%s8533_s5 + $0x8] sm:$0xff] }
  0x28   : > { %vm1321_vm6 = vcmp.ge.s32.totalorder %v835_v24, 1  ;;  %vm1329_vm7 = vcmp.le.s32.totalorder %v835_v24, 6 }
  0x29   : > { %v872_v26 = vadd.f32 %v871_v20, %v870_v25  ;;  %v836_v20 = vld [vmem:[%s8533_s5 + $0x10] sm:$0xff] }
  0x2a   : > { %vm1322_vm3 = vcmp.ge.s32.totalorder %v836_v20, 1  ;;  %vm1330_vm10 = vcmp.le.s32.totalorder %v836_v20, 6 }
  0x2b   : > { %v874_v27 = vadd.f32 %v873_v21, %v872_v26  ;;  %v834_v21 = vld [vmem:[%s8533_s5] sm:$0xff] }
  0x2c   : > { %vm1320_vm4 = vcmp.ge.s32.totalorder %v834_v21, 1  ;;  %vm1328_vm8 = vcmp.le.s32.totalorder %v834_v21, 6 }
  0x2d   : > { %v876_v28 = vadd.f32 %v875_v22, %v874_v27  ;;  %v837_v22 = vld [vmem:[%s8533_s5 + $0x18] sm:$0xff] }
  0x2e   : > { %vm1323_vm5 = vcmp.ge.s32.totalorder %v837_v22, 1  ;;  %vm1331_vm9 = vcmp.le.s32.totalorder %v837_v22, 6 }
  0x2f   : > { %v878_v29 = vadd.f32 %v877_v23, %v876_v28  ;;  %v6758_v23 = vmov 0  }
  0x30   : > { %6585 = vset.pattern.permute.xlu1 %v6758_v23  ;;  %6584 = vset.pattern.permute.xlu0 %v6758_v23  ;;  %v1338_v25 = vsel %vm1322_vm3, 1, %v6758_v23  ;;  %v1336_v26 = vsel %vm1320_vm4, 1, %v6758_v23  ;;  %v1339_v27 = vsel %vm1323_vm5, 1, %v6758_v23  ;;  %v1337_v28 = vsel %vm1321_vm6, 1, %v6758_v23 }
  0x31   : > { %v879_v30 = vrot.slane %v878_v29, 4  ;;  %1351 = vperm.xlu1 %6585, %v1338_v25   ;;  %1345 = vperm.xlu0 %6584, %v1336_v26   ;;  %vm1384_vm6 = vcmask 1040384  }
  0x33   : > { %v880_v31 = vadd.f32 %v879_v30, %v878_v29  ;;  %v1597_v29 = vsel %vm1329_vm7, 1, %v6758_v23  ;;  %v1596_v30 = vsel %vm1328_vm8, 1, %v6758_v23 }
  0x35   : > { %v881_v32 = vrot.slane %v880_v31, 2  ;;  %1354 = vperm.xlu1 %6585, %v1339_v27   ;;  %1348 = vperm.xlu0 %6584, %v1337_v28  }
  0x37   : > { %v882_v33 = vadd.f32 %v881_v32, %v880_v31  ;;  %v839_v31 = vld [vmem:[%s8533_s5 + $0x28] sm:$0xff]  ;;  %v838_v32 = vld [vmem:[%s8533_s5 + $0x20] sm:$0xff] }
  0x38   : > { %vm1325_vm11 = vcmp.ge.s32.totalorder %v839_v31, 1  ;;  %vm1324_vm12 = vcmp.ge.s32.totalorder %v838_v32, 1  ;;  %vm1333_vm15 = vcmp.le.s32.totalorder %v839_v31, 6  ;;  %vm1332_vm3 = vcmp.le.s32.totalorder %v838_v32, 6 }
  0x39   : > { %v883_v34 = vrot.slane %v882_v33, 1  ;;  %1608 = vperm.xlu1 %6585, %v1597_v29   ;;  %1605 = vperm.xlu0 %6584, %v1596_v30   ;;  %v1601_v41 = vsel %vm1333_vm15, 1, %v6758_v23 }
  0x3b   : > { %v884_v35 = vadd.f32 %v883_v34, %v882_v33  ;;  %v1599_v33 = vsel %vm1331_vm9, 1, %v6758_v23  ;;  %v1598_v34 = vsel %vm1330_vm10, 1, %v6758_v23 }
  0x3d   : > { %6162 = vmatmul.mubr.msk.f32.vlgmr.msra.gmra.mxu0 %vm863_vm1, %v884_v35  ;;  %v841_v35 = vld [vmem:[%s8533_s5 + $0x38] sm:$0xff]  ;;  %1614 = vperm.xlu1 %6585, %v1599_v33  }
  0x3e   : > { %6178 = vmatprep.mubr.msk.f32.mxu0 %vm8459_vm0, %v8466_v2  ;;  %6177 = vmatpush3.msra.mxu0 %v862_v36  ;;  %v840_v36 = vld [vmem:[%s8533_s5 + $0x30] sm:$0xff]  ;;  %vm1327_vm13 = vcmp.ge.s32.totalorder %v841_v35, 1  ;;  %vm1335_vm4 = vcmp.le.s32.totalorder %v841_v35, 6 }
  0x3f   : > { %1611 = vperm.xlu0 %6584, %v1598_v34   ;;  %vm1326_vm14 = vcmp.ge.s32.totalorder %v840_v36, 1  ;;  %vm1334_vm5 = vcmp.le.s32.totalorder %v840_v36, 6 }
  0x40   : > { %v1342_v40 = vsel %vm1326_vm14, 1, %v6758_v23 }
  0xfd   : > { %v954_v37 = vpop.f32.mrf.mxu0 }
  0xfe   : > { %v958_v38 = vmul.f32 0.0078125, %v954_v37  ;;  %v1341_v37 = vsel %vm1325_vm11, 1, %v6758_v23 }
  0xff   : > { %v6163_v39 = vpop.f32.mrf.mxu0  ;;  %1360 = vperm.xlu1 %6585, %v1341_v37  }
 0x100   : > { %6167 = vmatmul.mubr.msk.f32.vlgmr.msra.gmra.mxu1 %vm8458_vm2, %v958_v38  ;;  %v1340_v38 = vsel %vm1324_vm12, 1, %v6758_v23  ;;  %v1343_v39 = vsel %vm1327_vm13, 1, %v6758_v23  ;;  %vm1637_vm13 = vcmask 1046528  }
 0x101   : > { %6170 = vmatpush3.msra.mxu1 %v861_v0  ;;  %6173 = vmatprep.mubr.msk.f32.mxu1 %vm8459_vm0, %v8466_v2 }
 0x102   : > { %6171 = vmatprep.subr.mxu1 %v8466_v2  ;;  %1357 = vperm.xlu0 %6584, %v1340_v38   ;;  %v7061_v38 = vpop.permute.xlu1 %1351 }
 0x103   : > { %6172 = vmatpush3.msra.mxu1 %v860_v1  ;;  %1366 = vperm.xlu1 %6585, %v1343_v39   ;;  %8537 = vst [vmem:[#allocation3_spill] sm:$0xff] %v7061_v38  ;;  %v7063_v39 = vpop.permute.xlu0 %1345  ;;  %vm8463_vm8 = vcmp.eq.s32.totalorder %v7061_v38, 1 }
 0x104   : > { %8538 = vst [vmem:[#allocation4_spill] sm:$0xff] %v7063_v39  ;;  %vm8465_vm7 = vcmp.eq.s32.totalorder %v7063_v39, 1 }
 0x106   : > { %1363 = vperm.xlu0 %6584, %v1342_v40  }
 0x107   : > { %1620 = vperm.xlu1 %6585, %v1601_v41  }
 0x1c0   : > { %v1029_v43 = vpop.f32.mrf.mxu1 }
 0x1c1   : > { %v1036_v44 = vrot.slane %v1029_v43, %v6950_v42  ;;  %v1600_v43 = vsel %vm1332_vm3, 1, %v6758_v23 }
 0x1c2   : > { %v6168_v45 = vpop.f32.mrf.mxu1  ;;  %1617 = vperm.xlu0 %6584, %v1600_v43  }
 0x1c3   : > { %v6953_v46 = vsub.f32 %v5943_v6, %v1036_v44  ;;  %v6955_v47 = vsub.f32 %v5944_v7, %v1036_v44  ;;  %v6957_v48 = vsub.f32 %v5947_v8, %v1036_v44  ;;  %v6959_v49 = vsub.f32 %v5948_v9, %v1036_v44 }
 0x1c4   : > { %v6961_v50 = vsub.f32 %v5951_v11, %v1036_v44  ;;  %v6969_v54 = vsub.f32 %v5952_v12, %v1036_v44  ;;  %v6975_v59 = vsub.f32 %v5955_v13, %v1036_v44  ;;  %v6980_v63 = vsub.f32 %v5956_v14, %v1036_v44 }
 0x1c5   : > { %v1045_v51 = vmul.f32 %v6953_v46, %v6953_v46  ;;  %v1046_v52 = vmul.f32 %v6955_v47, %v6955_v47  ;;  %v1047_v53 = vmul.f32 %v6957_v48, %v6957_v48  ;;  %v1048_v55 = vmul.f32 %v6959_v49, %v6959_v49 }
 0x1c6   : > { %v1049_v60 = vmul.f32 %v6961_v50, %v6961_v50  ;;  %v1050_v0 = vmul.f32 %v6969_v54, %v6969_v54  ;;  %v1051_v4 = vmul.f32 %v6975_v59, %v6975_v59  ;;  %v1052_v7 = vmul.f32 %v6980_v63, %v6980_v63 }
 0x1c7   : > { %v1053_v56 = vsel %vm863_vm1, %v1045_v51, 0.0  ;;  %v1054_v57 = vsel %vm863_vm1, %v1046_v52, 0.0  ;;  %v1056_v61 = vsel %vm863_vm1, %v1047_v53, 0.0  ;;  %v1058_v1 = vsel %vm863_vm1, %v1048_v55, 0.0 }
 0x1c8   : > { %v1055_v58 = vadd.f32 %v1054_v57, %v1053_v56  ;;  %v1060_v5 = vsel %vm863_vm1, %v1049_v60, 0.0  ;;  %v1062_v8 = vsel %vm863_vm1, %v1050_v0, 0.0  ;;  %v1064_v10 = vsel %vm863_vm1, %v1051_v4, 0.0  ;;  %v6586_v57 = vld [vmem:[%s8534_s6 + $0x8] sm:$0xff]   ;;  %v7028_v60 = vld [vmem:[%s8534_s6 + $0x10] sm:$0xff]  }
 0x1c9   : > { %v1066_v12 = vsel %vm863_vm1, %v1052_v7, 0.0  ;;  %v1603_v44 = vsel %vm1335_vm4, 1, %v6758_v23  ;;  %v1602_v45 = vsel %vm1334_vm5, 1, %v6758_v23  ;;  %6181 = vmatprep.subr.bf16.mxu1 %v6586_v57 }
 0x1ca   : > { %v1057_v62 = vadd.f32 %v1056_v61, %v1055_v58  ;;  %1626 = vperm.xlu1 %6585, %v1603_v44   ;;  %1623 = vperm.xlu0 %6584, %v1602_v45   ;;  %v6588_v58 = vld [vmem:[%s8534_s6] sm:$0xff]   ;;  %v7034_v61 = vld [vmem:[%s8534_s6 + $0x18] sm:$0xff]   ;;  %v7065_v45 = vpop.permute.xlu1 %1354 }
 0x1cb   : > { %6191 = vmatprep.subr.bf16.mxu0 %v6588_v58  ;;  %8539 = vst [vmem:[#allocation5_spill] sm:$0xff] %v7065_v45  ;;  %vm8462_vm9 = vcmp.eq.s32.totalorder %v7065_v45, 1 }
 0x1cc   : > { %v1059_v3 = vadd.f32 %v1058_v1, %v1057_v62 }
 0x1ce   : > { %v1061_v6 = vadd.f32 %v1060_v5, %v1059_v3  ;;  %v5706_v3 = vld [vmem:[%s8535_s29] ss:$0 sm:$0xff] }
 0x1d0   : > { %v1063_v9 = vadd.f32 %v1062_v8, %v1061_v6  ;;  %v5707_v8 = vld [vmem:[%s8536_s2] ss:$0 sm:$0xff] }
 0x1d2   : > { %v1065_v11 = vadd.f32 %v1064_v10, %v1063_v9 }
 0x1d4   : > { %v1067_v13 = vadd.f32 %v1066_v12, %v1065_v11 }
 0x1d6   : > { %v1068_v14 = vrot.slane %v1067_v13, 4 }
 0x1d8   : > { %v1069_v15 = vadd.f32 %v1068_v14, %v1067_v13 }
 0x1da   : > { %v1070_v16 = vrot.slane %v1069_v15, 2 }
 0x1dc   : > { %v1071_v17 = vadd.f32 %v1070_v16, %v1069_v15 }
 0x1de   : > { %v1072_v18 = vrot.slane %v1071_v17, 1 }
 0x1e0   : > { %v1073_v19 = vadd.f32 %v1072_v18, %v1071_v17 }
 0x1e2   : > { %6174 = vmatmul.mubr.msk.f32.vlgmr.msra.gmra.mxu1 %vm863_vm1, %v1073_v19 }
 0x1e3   : > { %6182 = vmatpush3.bf16.msra.mxu1 %v6586_v57 }
 0x1e4   : > { %6201 = vmatprep.subr.bf16.mxu1 %v7028_v60 }
 0x2a2   : > { %v1143_v51 = vpop.f32.mrf.mxu1 }
 0x2a3   : > { %v1147_v52 = vmul.f32 0.0078125, %v1143_v51  ;;  %v7067_v51 = vpop.permute.xlu0 %1348 }
 0x2a4   : > { %v6175_v53 = vpop.f32.mrf.mxu1  ;;  %8540 = vst [vmem:[#allocation6_spill] sm:$0xff] %v7067_v51  ;;  %vm8461_vm10 = vcmp.eq.s32.totalorder %v7067_v51, 1 }
 0x2a5   : > { %v1148_v55 = vadd.f32 1e-05, %v1147_v52 }
 0x2a7   : > { %6611 = vrsqrt.f32 %v1148_v55 }
 0x2b4   : > { %v6612_v56 = vpop.eup %6611 }
 0x2b5   : > { %6179 = vmatmul.mubr.msk.f32.vlgmr.msra.gmra.mxu0 %vm8458_vm2, %v6612_v56 }
 0x2b6   : > { %6192 = vmatpush3.bf16.msra.mxu0 %v6588_v58  ;;  %v7071_v58 = vpop.permute.xlu1 %1608 }
 0x2b7   : > { %6211 = vmatprep.subr.bf16.mxu0 %v7034_v61  ;;  %8541 = vst [vmem:[#allocation7_spill] sm:$0xff] %v7071_v58  ;;  %vm1629_vm14 = vcmp.eq.s32.totalorder %v7071_v58, 1 }
 0x375   : > { %v1219_v62 = vpop.f32.mrf.mxu0 }
 0x376   : > { %v1226_v0 = vrot.slane %v1219_v62, %v6950_v42  ;;  %v7073_v62 = vpop.permute.xlu0 %1605 }
 0x377   : > { %v6180_v1 = vpop.f32.mrf.mxu0  ;;  %8542 = vst [vmem:[#allocation8_spill] sm:$0xff] %v7073_v62  ;;  %vm1628_vm15 = vcmp.eq.s32.totalorder %v7073_v62, 1 }
 0x378   : > { %v1228_v4 = vmul.f32 %v1226_v0, %v6955_v47  ;;  %v1229_v5 = vmul.f32 %v1226_v0, %v6957_v48  ;;  %v1230_v6 = vmul.f32 %v1226_v0, %v6959_v49  ;;  %v1227_v7 = vmul.f32 %v1226_v0, %v6953_v46 }
 0x379   : > { %v1231_v9 = vmul.f32 %v1226_v0, %v6961_v50  ;;  %v1232_v10 = vmul.f32 %v1226_v0, %v6969_v54  ;;  %v1233_v11 = vmul.f32 %v1226_v0, %v6975_v59  ;;  %v1234_v54 = vmul.f32 %v1226_v0, %v6980_v63 }
 0x37a   : > { %v1242_v12 = vmul.f32 %v5706_v3, %v1228_v4  ;;  %v1243_v13 = vmul.f32 %v5706_v3, %v1229_v5  ;;  %v1244_v14 = vmul.f32 %v5706_v3, %v1230_v6  ;;  %v1241_v47 = vmul.f32 %v5706_v3, %v1227_v7 }
 0x37b   : > { %v1245_v15 = vmul.f32 %v5706_v3, %v1231_v9  ;;  %v1246_v48 = vmul.f32 %v5706_v3, %v1232_v10  ;;  %v1247_v16 = vmul.f32 %v5706_v3, %v1233_v11  ;;  %v1248_v26 = vmul.f32 %v5706_v3, %v1234_v54 }
 0x37c   : > { %v1256_v49 = vadd.f32 %v5707_v8, %v1242_v12  ;;  %v1257_v17 = vadd.f32 %v5707_v8, %v1243_v13  ;;  %v1258_v46 = vadd.f32 %v5707_v8, %v1244_v14  ;;  %v1255_v18 = vadd.f32 %v5707_v8, %v1241_v47  ;;  %v7086_v12 = vpop.permute.xlu1 %1614  ;;  %v7088_v13 = vpop.permute.xlu0 %1611 }
 0x37d   : > { %v1259_v19 = vadd.f32 %v5707_v8, %v1245_v15  ;;  %v7051_v23 = vadd.f32 %v5707_v8, %v1246_v48  ;;  %v7054_v24 = vadd.f32 %v5707_v8, %v1247_v16  ;;  %v7058_v28 = vadd.f32 %v5707_v8, %v1248_v26  ;;  %8543 = vst [vmem:[#allocation9_spill] sm:$0xff] %v7086_v12 }
 0x37e   : > { %v5709_v20 = vmul.f32 -1.442695, %v1256_v49  ;;  %v5710_v21 = vmul.f32 -1.442695, %v1257_v17  ;;  %v5711_v22 = vmul.f32 -1.442695, %v1258_v46 }
 0x37f   : > { %v5708_v50 = vmul.f32 -1.442695, %v1255_v18  ;;  %v5712_v59 = vmul.f32 -1.442695, %v1259_v19  ;;  %v5713_v25 = vmul.f32 -1.442695, %v7051_v23 }
 0x380   : > { %6613 = vpow2.f32 %v5709_v20  ;;  %v5714_v27 = vmul.f32 -1.442695, %v7054_v24  ;;  %v5715_v29 = vmul.f32 -1.442695, %v7058_v28  ;;  %8544 = vst [vmem:[#allocation10_spill] sm:$0xff] %v7088_v13  ;;  %v7092_v47 = vrot.slane %v8466_v2, 7  ;;  %v7127_v54 = vpop.permute.xlu1 %1360 }
 0x381   : > { %6615 = vpow2.f32 %v5710_v21  ;;  %8547 = vst [vmem:[#allocation13_spill] sm:$0xff] %v7127_v54  ;;  %vm1373_vm11 = vcmp.eq.s32.totalorder %v7127_v54, 1  ;;  %vm8513_vm5 = vcmp.eq.s32.totalorder %v7086_v12, 1  ;;  %vm1630_vm2 = vcmp.eq.s32.totalorder %v7088_v13, 1 }
 0x382   : > { %6617 = vpow2.f32 %v5711_v22  ;;  %8545 = vst [vmem:[#allocation11_spill] sm:$0xff] %v7092_v47 }
 0x383   : > { %6619 = vpow2.f32 %v5708_v50 }
 0x384   : > { %6621 = vpow2.f32 %v5712_v59  ;;  %v7129_v59 = vpop.permute.xlu0 %1357 }
 0x385   : > { %6623 = vpow2.f32 %v5713_v25  ;;  %8548 = vst [vmem:[#allocation14_spill] sm:$0xff] %v7129_v59  ;;  %vm1372_vm12 = vcmp.eq.s32.totalorder %v7129_v59, 1 }
 0x386   : > { %6625 = vpow2.f32 %v5714_v27  ;;  %v7142_v27 = vld [vmem:[%s8534_s6 + $0x20] sm:$0xff]  }
 0x387   : > { %6627 = vpow2.f32 %v5715_v29 }
 0x38d   : > { %v6614_v63 = vpop.eup %6613 }
 0x38e   : > { %v6616_v30 = vpop.eup %6615  ;;  %v1288_v31 = vadd.f32 1.0, %v6614_v63 }
 0x38f   : > { %v6618_v32 = vpop.eup %6617  ;;  %v1289_v33 = vadd.f32 1.0, %v6616_v30 }
 0x390   : > { %v6620_v34 = vpop.eup %6619  ;;  %v1290_v35 = vadd.f32 1.0, %v6618_v32  ;;  %6629 = vrcp.f32 %v1288_v31 }
 0x391   : > { %v6622_v36 = vpop.eup %6621  ;;  %6631 = vrcp.f32 %v1289_v33  ;;  %v1287_v37 = vadd.f32 1.0, %v6620_v34  ;;  %v7165_v33 = vrot.slane %v8466_v2, 1 }
 0x392   : > { %6633 = vrcp.f32 %v1290_v35  ;;  %v1291_v40 = vadd.f32 1.0, %v6622_v36  ;;  %v6624_v41 = vpop.eup %6623 }
 0x393   : > { %6635 = vrcp.f32 %v1287_v37  ;;  %v6626_v43 = vpop.eup %6625  ;;  %v1292_v44 = vadd.f32 1.0, %v6624_v41  ;;  %8549 = vst [vmem:[#allocation15_spill] sm:$0xff] %v7165_v33  ;;  %v7182_v41 = vpop.permute.xlu1 %1366 }
 0x394   : > { %6637 = vrcp.f32 %v1291_v40  ;;  %v1293_v52 = vadd.f32 1.0, %v6626_v43  ;;  %v6628_v53 = vpop.eup %6627  ;;  %8550 = vst [vmem:[#allocation16_spill] sm:$0xff] %v7182_v41  ;;  %v7184_v43 = vpop.permute.xlu0 %1363  ;;  %vm1375_vm3 = vcmp.eq.s32.totalorder %v7182_v41, 1 }
 0x395   : > { %6639 = vrcp.f32 %v1292_v44  ;;  %v1294_v4 = vadd.f32 1.0, %v6628_v53  ;;  %8551 = vst [vmem:[#allocation17_spill] sm:$0xff] %v7184_v43  ;;  %vm1374_vm4 = vcmp.eq.s32.totalorder %v7184_v43, 1 }
 0x396   : > { %6641 = vrcp.f32 %v1293_v52 }
 0x397   : > { %6643 = vrcp.f32 %v1294_v4 }
 0x39d   : > { %v6630_v55 = vpop.eup %6629 }
 0x39e   : > { %v6632_v56 = vpop.eup %6631  ;;  %v7069_v57 = vmul.f32 %v6630_v55, %v1256_v49 }
 0x39f   : > { %v6634_v0 = vpop.eup %6633  ;;  %v7075_v1 = vmul.f32 %v6632_v56, %v1257_v17 }
 0x3a0   : > { %v6636_v3 = vpop.eup %6635  ;;  %v7077_v6 = vmul.f32 %v6634_v0, %v1258_v46  ;;  %v1389_v8 = vrot.slane %v7069_v57, 7  ;;  %v1641_v29 = vrot.slane %v7069_v57, 1 }
 0x3a1   : > { %v6638_v5 = vpop.eup %6637  ;;  %v7079_v7 = vmul.f32 %v6636_v3, %v1255_v18  ;;  %v1391_v9 = vrot.slane %v7075_v1, 7  ;;  %v7110_v18 = vsel %vm8465_vm7, %v7092_v47, 0.0  ;;  %v7117_v20 = vpack.c.bf16 %v7075_v1, %v7069_v57 }
 0x3a2   : > { %v7083_v10 = vmul.f32 %v6638_v5, %v1259_v19  ;;  %v1393_v14 = vrot.slane %v7077_v6, 7  ;;  %v6640_v49 = vpop.eup %6639  ;;  %8546 = vst [vmem:[#allocation12_spill] sm:$0xff] %v7110_v18  ;;  %v1643_v36 = vrot.slane %v7075_v1, 1  ;;  %v1645_v37 = vrot.slane %v7077_v6, 1 }
 0x3a3   : > { %v1387_v11 = vrot.slane %v7079_v7, 7  ;;  %v7095_v15 = vsel %vm1384_vm6, %v1389_v8, %v1391_v9  ;;  %v6642_v17 = vpop.eup %6641  ;;  %v1423_v25 = vpack.c.bf16 %v7079_v7, %v8466_v2  ;;  %v7135_v26 = vmul.f32 %v6640_v49, %v7051_v23 }
 0x3a4   : > { %v1395_v48 = vrot.slane %v7083_v10, 7  ;;  %v7105_v46 = vsel %vm1384_vm6, %v1391_v9, %v1393_v14  ;;  %v1412_v19 = vsel %vm8462_vm9, %v7095_v15, 0.0  ;;  %v7146_v63 = vmul.f32 %v6642_v17, %v7054_v24  ;;  %v6644_v56 = vpop.eup %6643 }
 0x3a5   : > { %v7100_v16 = vsel %vm1384_vm6, %v1387_v11, %v1389_v8  ;;  %v1388_v21 = vsel %vm1384_vm6, %v7092_v47, %v1387_v11  ;;  %6183 = vmatprep.mubr.msk.bf16.mxu1 %vm863_vm1, %v1423_v25  ;;  %v7151_v23 = vpack.c.bf16 %v7083_v10, %v7077_v6  ;;  %v1413_v32 = vsel %vm1372_vm12, %v7105_v46, 0.0 }
 0x3a6   : > { %v1411_v22 = vsel %vm8463_vm8, %v7100_v16, 0.0  ;;  %v7125_v50 = vsel %vm1384_vm6, %v1393_v14, %v1395_v48  ;;  %6184 = vmatmul.mubr.msk.bf16.vlgmr.msra.gmra.mxu1 %vm863_vm1, %v7117_v20  ;;  %v1410_v31 = vsel %vm8461_vm10, %v1388_v21, 0.0  ;;  %v1639_v35 = vrot.slane %v7079_v7, 1 }
 0x3a7   : > { %v1418_v30 = vpack.c.bf16 %v1412_v19, %v1411_v22  ;;  %v1414_v24 = vsel %vm1373_vm11, %v7125_v50, 0.0  ;;  %6202 = vmatpush3.bf16.msra.mxu1 %v7028_v60  ;;  %6187 = vmatprep.mubr.msk.bf16.mxu1 %vm863_vm1, %v7151_v23  ;;  %v1417_v34 = vpack.c.bf16 %v1410_v31, %v7110_v18  ;;  %v1397_v40 = vrot.slane %v7135_v26, 7  ;;  %v7180_v60 = vld [vmem:[%s8534_s6 + $0x28] sm:$0xff]  }
 0x3a8   : > { %6221 = vmatprep.subr.bf16.mxu1 %v7142_v27  ;;  %v1419_v44 = vpack.c.bf16 %v1414_v24, %v1413_v32  ;;  %v1640_v52 = vsel %vm1637_vm13, %v7165_v33, %v1639_v35  ;;  %v7190_v53 = vsel %vm1637_vm13, %v1639_v35, %v1641_v29  ;;  %v1399_v55 = vrot.slane %v7146_v63, 7 }
 0x3a9   : > { %6193 = vmatprep.mubr.msk.bf16.mxu0 %vm863_vm1, %v1417_v34  ;;  %v1663_v0 = vsel %vm1628_vm15, %v1640_v52, 0.0  ;;  %v1664_v3 = vsel %vm1629_vm14, %v7190_v53, 0.0  ;;  %v7200_v4 = vsel %vm1384_vm6, %v1395_v48, %v1397_v40  ;;  %v1647_v5 = vrot.slane %v7083_v10, 1  ;;  %v6592_v52 = vld [vmem:[%s8534_s6 + $0x30] sm:$0xff]  }
 0x3aa   : > { %6194 = vmatmul.mubr.msk.bf16.vlgmr.msra.gmra.mxu0 %vm863_vm1, %v1418_v30  ;;  %v1649_v8 = vrot.slane %v7135_v26, 1  ;;  %v7208_v9 = vsel %vm1384_vm6, %v1397_v40, %v1399_v55  ;;  %v7212_v11 = vsel %vm1637_vm13, %v1643_v36, %v1645_v37  ;;  %v7218_v14 = vpack.c.bf16 %v7146_v63, %v7135_v26 }
 0x3ab   : > { %6197 = vmatprep.mubr.msk.bf16.mxu0 %vm863_vm1, %v1419_v44  ;;  %6212 = vmatpush3.bf16.msra.mxu0 %v7034_v61  ;;  %v7222_v48 = vmul.f32 %v6644_v56, %v7058_v28  ;;  %v1671_v49 = vpack.c.bf16 %v1664_v3, %v1663_v0  ;;  %v1415_v61 = vsel %vm1374_vm4, %v7200_v4, 0.0  ;;  %v1416_v17 = vsel %vm1375_vm3, %v7208_v9, 0.0 }
 0x3ac   : > { %6231 = vmatprep.subr.bf16.mxu0 %v7180_v60  ;;  %v1772_v19 = vsel %vm8465_vm7, %v1388_v21, 0.0  ;;  %v7233_v22 = vsel %vm1637_vm13, %v1641_v29, %v1643_v36  ;;  %v1773_v28 = vsel %vm8461_vm10, %v7100_v16, 0.0  ;;  %v7242_v25 = vsel %vm1637_vm13, %v1645_v37, %v1647_v5  ;;  %v7248_v21 = vpop.permute.xlu1 %1620  ;;  %v7250_v29 = vpop.permute.xlu0 %1617 }
 0x3ad   : > { %v7245_v30 = vsel %vm1637_vm13, %v1647_v5, %v1649_v8  ;;  %8552 = vst [vmem:[#allocation18_spill] sm:$0xff] %v7248_v21  ;;  %8553 = vst [vmem:[#allocation19_spill] sm:$0xff] %v7250_v29  ;;  %v1666_v31 = vsel %vm8513_vm5, %v7212_v11, 0.0  ;;  %vm1633_vm0 = vcmp.eq.s32.totalorder %v7248_v21, 1  ;;  %vm8464_vm10 = vcmp.eq.s32.totalorder %v7250_v29, 1 }
 0x3ae   : > { %6188 = vmatmul.mubr.msk.bf16.gmra.mxu1 %vm863_vm1, %v7218_v14  ;;  %v1420_v32 = vpack.c.bf16 %v1416_v17, %v1415_v61  ;;  %v1665_v24 = vsel %vm1630_vm2, %v7233_v22, 0.0  ;;  %v1651_v34 = vrot.slane %v7146_v63, 1  ;;  %v1653_v35 = vrot.slane %v7222_v48, 1 }
 0x3af   : > { %6203 = vmatprep.mubr.msk.bf16.mxu1 %vm863_vm1, %v1671_v49  ;;  %v1780_v36 = vpack.c.bf16 %v1773_v28, %v1772_v19  ;;  %v1667_v37 = vsel %vm8464_vm10, %v7242_v25, 0.0  ;;  %v1668_v40 = vsel %vm1633_vm0, %v7245_v30, 0.0  ;;  %v1672_v44 = vpack.c.bf16 %v1666_v31, %v1665_v24  ;;  %v6593_v24 = vld [vmem:[%s8534_s6 + $0x38] sm:$0xff]  }
 0x3b0   : > { %v1774_v56 = vsel %vm8463_vm8, %v7095_v15, 0.0  ;;  %v1775_v0 = vsel %vm8462_vm9, %v7105_v46, 0.0  ;;  %v7280_v3 = vpop.permute.xlu1 %1626  ;;  %v7283_v5 = vsel %vm1637_vm13, %v1651_v34, %v1653_v35  ;;  %v7285_v49 = vpop.permute.xlu0 %1623  ;;  %v1673_v61 = vpack.c.bf16 %v1668_v40, %v1667_v37 }
 0x3b1   : > { %8554 = vst [vmem:[#allocation20_spill] sm:$0xff] %v7280_v3  ;;  %8555 = vst [vmem:[#allocation21_spill] sm:$0xff] %v7285_v49  ;;  %v1776_v17 = vsel %vm1372_vm12, %v7125_v50, 0.0  ;;  %v1777_v19 = vsel %vm1373_vm11, %v7200_v4, 0.0  ;;  %v7295_v28 = vsel %vm1637_vm13, %v1649_v8, %v1651_v34  ;;  %v1769_v31 = vrot.slane %v7222_v48, 7 }
 0x3b2   : > { %6198 = vmatmul.mubr.msk.bf16.gmra.mxu0 %vm863_vm1, %v1420_v32  ;;  %v1781_v32 = vpack.c.bf16 %v1775_v0, %v1774_v56  ;;  %vm8512_vm9 = vcmp.eq.s32.totalorder %v7280_v3, 1  ;;  %vm1634_vm8 = vcmp.eq.s32.totalorder %v7285_v49, 1  ;;  %v1782_v34 = vpack.c.bf16 %v1777_v19, %v1776_v17 }
 0x3b3   : > { %6213 = vmatprep.mubr.msk.bf16.mxu0 %vm863_vm1, %v1780_v36  ;;  %v1670_v8 = vsel %vm8512_vm9, %v7283_v5, 0.0  ;;  %v1770_v36 = vsel %vm1384_vm6, %v1399_v55, %v1769_v31  ;;  %v1878_v40 = vpack.c.bf16 %v7069_v57, %v7079_v7  ;;  %v1978_v55 = vsel %vm1628_vm15, %v7190_v53, 0.0 }
 0x3b4   : > { %v1779_v56 = vsel %vm1375_vm3, %v1770_v36, 0.0  ;;  %v1879_v0 = vpack.c.bf16 %v7077_v6, %v7075_v1  ;;  %v1981_v53 = vsel %vm8513_vm5, %v7242_v25, 0.0  ;;  %v1980_v17 = vsel %vm1630_vm2, %v7212_v11, 0.0 }
 0x3b5   : > { %v1880_v19 = vpack.c.bf16 %v7135_v26, %v7083_v10  ;;  %v1982_v1 = vsel %vm8464_vm10, %v7245_v30, 0.0  ;;  %v1983_v6 = vsel %vm1633_vm0, %v7295_v28, 0.0  ;;  %v2086_v10 = vsel %vm8465_vm7, %v7100_v16, 0.0 }
 0x3b6   : > { %6204 = vmatmul.mubr.msk.bf16.vlgmr.msra.gmra.mxu1 %vm863_vm1, %v1672_v44  ;;  %v1778_v44 = vsel %vm1374_vm4, %v7208_v9, 0.0  ;;  %v1976_v26 = vsel %vm1637_vm13, %v1653_v35, %v7165_v33  ;;  %vm8556_vm10 = vcmp.eq.s32.totalorder %v7067_v51, 1  ;;  %v1984_v35 = vsel %vm1634_vm8, %v7283_v5, 0.0 }
 0x3b7   : > { %6222 = vmatpush3.bf16.msra.mxu1 %v7142_v27  ;;  %6207 = vmatprep.mubr.msk.bf16.mxu1 %vm863_vm1, %v1673_v61  ;;  %v1669_v27 = vsel %vm1634_vm8, %v7295_v28, 0.0  ;;  %v1783_v57 = vpack.c.bf16 %v1779_v56, %v1778_v44  ;;  %v6594_v61 = vld [vmem:[%s8534_s6 + $0x40] sm:$0xff]   ;;  %v1985_v16 = vsel %vm8512_vm9, %v1976_v26, 0.0  ;;  %vm8558_vm7 = vcmp.eq.s32.totalorder %v7065_v45, 1 }
 0x3b8   : > { %6241 = vmatprep.subr.bf16.mxu1 %v6592_v52  ;;  %v1674_v37 = vpack.c.bf16 %v1670_v8, %v1669_v27  ;;  %v1988_v8 = vpack.c.bf16 %v1983_v6, %v1982_v1 }
 0x3ba   : > { %6214 = vmatmul.mubr.msk.bf16.vlgmr.msra.gmra.mxu0 %vm863_vm1, %v1781_v32  ;;  %v1987_v32 = vpack.c.bf16 %v1981_v53, %v1980_v17 }
 0x3bb   : > { %6217 = vmatprep.mubr.msk.bf16.mxu0 %vm863_vm1, %v1782_v34  ;;  %6232 = vmatpush3.bf16.msra.mxu0 %v7180_v60  ;;  %v1979_v60 = vsel %vm1629_vm14, %v7233_v22, 0.0  ;;  %v2087_v34 = vsel %vm8556_vm10, %v7095_v15, 0.0  ;;  %v1989_v15 = vpack.c.bf16 %v1985_v16, %v1984_v35  ;;  %vm8557_vm10 = vcmp.eq.s32.totalorder %v7061_v38, 1 }
 0x3bc   : > { %6251 = vmatprep.subr.bf16.mxu0 %v6593_v24  ;;  %v1986_v7 = vpack.c.bf16 %v1979_v60, %v1978_v55  ;;  %v2094_v27 = vpack.c.bf16 %v2087_v34, %v2086_v10 }
 0x3be   : > { %6208 = vmatmul.mubr.msk.bf16.gmra.mxu1 %vm863_vm1, %v1674_v37  ;;  %v2090_v37 = vsel %vm1372_vm12, %v7200_v4, 0.0 }
 0x3bf   : > { %6223 = vmatprep.mubr.msk.bf16.mxu1 %vm863_vm1, %v1878_v40  ;;  %v2091_v40 = vsel %vm1373_vm11, %v7208_v9, 0.0  ;;  %v2281_v9 = vsel %vm1629_vm14, %v7212_v11, 0.0  ;;  %v2282_v11 = vsel %vm1630_vm2, %v7242_v25, 0.0  ;;  %v2286_v25 = vsel %vm1634_vm8, %v1976_v26, 0.0 }
 0x3c0   : > { %v2096_v56 = vpack.c.bf16 %v2091_v40, %v2090_v37 }
 0x3c2   : > { %6218 = vmatmul.mubr.msk.bf16.gmra.mxu0 %vm863_vm1, %v1783_v57  ;;  %v7450_v57 = vld [vmem:[%s8562_s30] sm:$0xff] }
 0x3c3   : > { %6233 = vmatprep.mubr.msk.bf16.mxu0 %vm863_vm1, %v1986_v7  ;;  %8564 = vst [vmem:[#allocation24_spill] sm:$0xff] %v7450_v57 }
 0x3c6   : > { %6224 = vmatmul.mubr.msk.bf16.vlgmr.msra.gmra.mxu1 %vm863_vm1, %v1879_v0 }
 0x3c7   : > { %6242 = vmatpush3.bf16.msra.mxu1 %v6592_v52  ;;  %6227 = vmatprep.mubr.msk.bf16.mxu1 %vm863_vm1, %v1880_v19  ;;  %v1881_v52 = vpack.c.bf16 %v7222_v48, %v7146_v63  ;;  %v2089_v63 = vsel %vm8558_vm7, %v7125_v50, 0.0  ;;  %v2092_v50 = vsel %vm1374_vm4, %v1770_v36, 0.0  ;;  %vm8559_vm7 = vcmp.eq.s32.totalorder %v7250_v29, 1 }
 0x3c8   : > { %6261 = vmatprep.subr.bf16.mxu1 %v6594_v61  ;;  %v2285_v36 = vsel %vm1633_vm0, %v7283_v5, 0.0  ;;  %v7445_v5 = vld [vmem:[%s8562_s30 + $0x8] sm:$0xff] }
 0x3c9   : > { %8563 = vst [vmem:[#allocation23_spill] sm:$0xff] %v7445_v5 }
 0x3ca   : > { %6234 = vmatmul.mubr.msk.bf16.vlgmr.msra.gmra.mxu0 %vm863_vm1, %v1987_v32 }
 0x3cb   : > { %6237 = vmatprep.mubr.msk.bf16.mxu0 %vm863_vm1, %v1988_v8  ;;  %6252 = vmatpush3.bf16.msra.mxu0 %v6593_v24  ;;  %v2088_v24 = vsel %vm8557_vm10, %v7105_v46, 0.0  ;;  %v2084_v46 = vsel %vm1384_vm6, %v1769_v31, %v7092_v47  ;;  %vm8560_vm10 = vmmov 0  }
 0x3cc   : > { %6271 = vmatprep.subr.mxu0 %v8466_v2  ;;  %v2095_v44 = vpack.c.bf16 %v2089_v63, %v2088_v24  ;;  %v2093_v4 = vsel %vm1375_vm3, %v2084_v46, 0.0 }
 0x3cd   : > { %v2097_v31 = vpack.c.bf16 %v2093_v4, %v2092_v50 }
 0x3ce   : > { %6228 = vmatmul.mubr.msk.bf16.gmra.mxu1 %vm863_vm1, %v1881_v52 }
 0x3cf   : > { %6243 = vmatprep.mubr.msk.bf16.mxu1 %vm863_vm1, %v2094_v27 }
 0x3d2   : > { %6238 = vmatmul.mubr.msk.bf16.gmra.mxu0 %vm863_vm1, %v1989_v15 }
 0x3d3   : > { %6253 = vmatprep.mubr.msk.bf16.mxu0 %vm863_vm1, %v7117_v20  ;;  %v2280_v20 = vsel %vm1628_vm15, %v7233_v22, 0.0  ;;  %v2283_v22 = vsel %vm8513_vm5, %v7245_v30, 0.0  ;;  %v7438_v30 = vsel %vm8512_vm9, %v7165_v33, 0.0 }
 0x3d4   : > { %v2288_v55 = vpack.c.bf16 %v2281_v9, %v2280_v20  ;;  %8561 = vst [vmem:[#allocation22_spill] sm:$0xff] %v7438_v30 }
 0x3d6   : > { %6244 = vmatmul.mubr.msk.bf16.vlgmr.msra.gmra.mxu1 %vm863_vm1, %v2095_v44 }
 0x3d7   : > { %6262 = vmatpush3.bf16.msra.mxu1 %v6594_v61  ;;  %6247 = vmatprep.mubr.msk.bf16.mxu1 %vm863_vm1, %v2096_v56 }
 0x3da   : > { %6254 = vmatmul.mubr.msk.bf16.vlgmr.msra.gmra.mxu0 %vm863_vm1, %v7151_v23  ;;  %v2192_v23 = vpack.c.bf16 %v8466_v2, %v7222_v48  ;;  %v2289_v48 = vpack.c.bf16 %v2283_v22, %v2282_v11 }
 0x3db   : > { %6257 = vmatprep.mubr.msk.bf16.mxu0 %vm863_vm1, %v7218_v14  ;;  %v2284_v14 = vsel %vm8559_vm7, %v7295_v28, 0.0  ;;  %v2291_v28 = vpack.c.bf16 %v7438_v30, %v2286_v25  ;;  %6272 = vmatpush3.msra.mxu0 %v7445_v5  ;;  %vm8584_vm7 = vcmask 64512  }
 0x3dc   : > { %v2290_v60 = vpack.c.bf16 %v2285_v36, %v2284_v14  ;;  %6273 = vmatprep.subr.mxu0 %v8466_v2 }
 0x3dd   : > { %6274 = vmatpush3.msra.mxu0 %v7450_v57 }
 0x3de   : > { %6248 = vmatmul.mubr.msk.bf16.gmra.mxu1 %vm863_vm1, %v2097_v31  ;;  %6278 = vmatprep.subr.mxu0 %v8466_v2 }
 0x3df   : > { %6263 = vmatprep.mubr.msk.bf16.mxu1 %vm863_vm1, %v2288_v55 }
 0x3e2   : > { %6258 = vmatmul.mubr.msk.bf16.gmra.mxu0 %vm863_vm1, %v2192_v23 }
 0x3e3   : > { %6275 = vmatprep.mubr.msk.f32.mxu0 %vm8560_vm10, %v8466_v2 }
 0x3e6   : > { %6264 = vmatmul.mubr.msk.bf16.vlgmr.msra.gmra.mxu1 %vm863_vm1, %v2289_v48 }
 0x3e7   : > { %6267 = vmatprep.mubr.msk.bf16.mxu1 %vm863_vm1, %v2290_v60 }
 0x3ee   : > { %6268 = vmatmul.mubr.msk.bf16.gmra.mxu1 %vm863_vm1, %v2291_v28 }
 0x466   : > { %v6185_v7 = vpop.f32.mrf.mxu1 }
 0x468   : > { %v1482_v0 = vpop.f32.mrf.mxu1 }
 0x46a   : > { %v6186_v61 = vpop.f32.mrf.mxu1  ;;  %v6195_v53 = vpop.f32.mrf.mxu0 }
 0x46b   : > { %v1574_v62 = vadd.f32 %v6195_v53, %v6185_v7 }
 0x46c   : > { %v1485_v17 = vpop.f32.mrf.mxu1  ;;  %v1565_v19 = vpop.f32.mrf.mxu0 }
 0x46d   : > { %v1566_v33 = vadd.f32 %v1565_v19, %v1482_v0 }
 0x46e   : > { %v7456_v1 = vpop.f32.mrf.mxu1  ;;  %v6196_v6 = vpop.f32.mrf.mxu0 }
 0x46f   : > { %v1577_v45 = vadd.f32 %v6196_v6, %v6186_v61 }
 0x470   : > { %v7458_v32 = vpop.f32.mrf.mxu1  ;;  %v1568_v8 = vpop.f32.mrf.mxu0 }
 0x471   : > { %v1569_v42 = vadd.f32 %v1568_v8, %v1485_v17 }
 0x472   : > { %v7460_v10 = vpop.f32.mrf.mxu1  ;;  %v6199_v26 = vpop.f32.mrf.mxu0 }
 0x473   : > { %v1590_v7 = vadd.f32 %v6199_v26, %v7456_v1 }
 0x474   : > { %v7462_v34 = vpop.f32.mrf.mxu1  ;;  %v1581_v52 = vpop.f32.mrf.mxu0 }
 0x475   : > { %v1582_v0 = vadd.f32 %v1581_v52, %v7458_v32 }
 0x476   : > { %v7464_v16 = vpop.f32.mrf.mxu0  ;;  %v6205_v27 = vpop.f32.mrf.mxu1 }
 0x477   : > { %v1763_v38 = vadd.f32 %v6205_v27, %v1574_v62 }
 0x478   : > { %v7466_v35 = vpop.f32.mrf.mxu0  ;;  %v1730_v15 = vpop.f32.mrf.mxu1 }
 0x479   : > { %v1761_v18 = vadd.f32 %v1730_v15, %v1566_v33  ;;  %v1585_v1 = vadd.f32 %v7466_v35, %v7462_v34 }
 0x47a   : > { %v6206_v24 = vpop.f32.mrf.mxu1  ;;  %v6215_v63 = vpop.f32.mrf.mxu0 }
 0x47b   : > { %v1764_v57 = vadd.f32 %v6206_v24, %v1577_v45  ;;  %v1872_v5 = vadd.f32 %v6215_v63, %v1763_v38  ;;  %v1593_v38 = vadd.f32 %v7464_v16, %v7460_v10 }
 0x47c   : > { %v1733_v37 = vpop.f32.mrf.mxu1  ;;  %v1839_v40 = vpop.f32.mrf.mxu0 }
 0x47e   : > { %v6209_v44 = vpop.f32.mrf.mxu1  ;;  %v6216_v56 = vpop.f32.mrf.mxu0 }
 0x47f   : > { %v1767_v45 = vadd.f32 %v6209_v44, %v1590_v7 }
 0x480   : > { %v1746_v46 = vpop.f32.mrf.mxu1  ;;  %v1842_v50 = vpop.f32.mrf.mxu0 }
 0x482   : > { %v6210_v4 = vpop.f32.mrf.mxu1  ;;  %v6219_v20 = vpop.f32.mrf.mxu0 }
 0x483   : > { %v1768_v32 = vadd.f32 %v6210_v4, %v1593_v38  ;;  %v1876_v8 = vadd.f32 %v6219_v20, %v1767_v45 }
 0x484   : > { %v7468_v9 = vpop.f32.mrf.mxu1  ;;  %v1855_v31 = vpop.f32.mrf.mxu0 }
 0x485   : > { %v1766_v16 = vadd.f32 %v7468_v9, %v1585_v1 }
 0x486   : > { %v7470_v55 = vpop.f32.mrf.mxu0  ;;  %v6225_v23 = vpop.f32.mrf.mxu1 }
 0x487   : > { %v1877_v15 = vadd.f32 %v7470_v55, %v1768_v32 }
 0x488   : > { %v7472_v22 = vpop.f32.mrf.mxu0  ;;  %v1937_v11 = vpop.f32.mrf.mxu1 }
 0x489   : > { %8565 = vst [vmem:[#allocation25_spill] sm:$0xff] %v7472_v22 }
 0x48a   : > { %v6226_v14 = vpop.f32.mrf.mxu1  ;;  %v6235_v36 = vpop.f32.mrf.mxu0 }
 0x48c   : > { %v1940_v48 = vpop.f32.mrf.mxu1  ;;  %v2045_v60 = vpop.f32.mrf.mxu0 }
 0x48e   : > { %v6229_v25 = vpop.f32.mrf.mxu1  ;;  %v6236_v28 = vpop.f32.mrf.mxu0 }
 0x48f   : > { %v1974_v24 = vadd.f32 %v6229_v25, %v1876_v8 }
 0x490   : > { %v1953_v2 = vpop.f32.mrf.mxu1  ;;  %v2048_v30 = vpop.f32.mrf.mxu0 }
 0x492   : > { %v7474_v3 = vpop.f32.mrf.mxu1  ;;  %v7476_v49 = vpop.f32.mrf.mxu0 }
 0x493   : > { %8566 = vst [vmem:[#allocation26_spill] sm:$0xff] %v7474_v3  ;;  %8567 = vst [vmem:[#allocation27_spill] sm:$0xff] %v7476_v49  ;;  %v1762_v49 = vadd.f32 %v1733_v37, %v1569_v42  ;;  %v1970_v3 = vadd.f32 %v6225_v23, %v1872_v5 }
 0x494   : > { %v7478_v21 = vpop.f32.mrf.mxu1  ;;  %v7480_v29 = vpop.f32.mrf.mxu0 }
 0x495   : > { %8568 = vst [vmem:[#allocation28_spill] sm:$0xff] %v7478_v21  ;;  %8569 = vst [vmem:[#allocation29_spill] sm:$0xff] %v7480_v29  ;;  %v1870_v21 = vadd.f32 %v1839_v40, %v1761_v18  ;;  %v1871_v61 = vadd.f32 %v1842_v50, %v1762_v49  ;;  %v2078_v33 = vadd.f32 %v6235_v36, %v1970_v3  ;;  %v8572_v40 = vld [vmem:[#allocation25_spill] sm:$0xff] }
 0x496   : > { %v7482_v12 = vpop.f32.mrf.mxu0  ;;  %v6245_v13 = vpop.f32.mrf.mxu1  ;;  %v1765_v18 = vadd.f32 %v1746_v46, %v1582_v0  ;;  %v1875_v44 = vadd.f32 %v8572_v40, %v1766_v16 }
 0x497   : > { %8570 = vst [vmem:[#allocation30_spill] sm:$0xff] %v7482_v12  ;;  %v1968_v22 = vadd.f32 %v1937_v11, %v1870_v21  ;;  %v1969_v42 = vadd.f32 %v1940_v48, %v1871_v61  ;;  %v2186_v5 = vadd.f32 %v6245_v13, %v2078_v33  ;;  %v5778_v48 = vld [vmem:[%s827_s11] ss:$0 sm:$0xff]  ;;  %s8588_s11 = sld [smem:[#allocation43_spill]] }
 0x498   : > { %v7484_v41 = vpop.f32.mrf.mxu0  ;;  %v2153_v43 = vpop.f32.mrf.mxu1  ;;  %v1874_v49 = vadd.f32 %v1855_v31, %v1765_v18 }
 0x499   : > { %8571 = vst [vmem:[#allocation31_spill] sm:$0xff] %v7484_v41  ;;  %v1873_v41 = vadd.f32 %v6216_v56, %v1764_v57  ;;  %v2076_v19 = vadd.f32 %v2045_v60, %v1968_v22  ;;  %v2077_v3 = vadd.f32 %v2048_v30, %v1969_v42 }
 0x49a   : > { %v6246_v39 = vpop.f32.mrf.mxu1  ;;  %v6255_v58 = vpop.f32.mrf.mxu0  ;;  %v1972_v13 = vadd.f32 %v1953_v2, %v1874_v49  ;;  %v8573_v56 = vld [vmem:[#allocation26_spill] sm:$0xff] }
 0x49b   : > { %v1971_v62 = vadd.f32 %v6226_v14, %v1873_v41  ;;  %v2184_v21 = vadd.f32 %v2153_v43, %v2076_v19  ;;  %v2272_v52 = vadd.f32 %v6255_v58, %v2186_v5  ;;  %v1975_v30 = vadd.f32 %v8573_v56, %v1877_v15  ;;  %v5777_v58 = vld [vmem:[%s8576_s8] ss:$0 sm:$0xff]  ;;  %s5940_s8 = sshll.u32 %s8681_s4, 6 }
 0x49c   : > { %v2156_v54 = vpop.f32.mrf.mxu1  ;;  %v2239_v59 = vpop.f32.mrf.mxu0  ;;  %v8578_v9 = vld [vmem:[#allocation28_spill] sm:$0xff]  ;;  %s8386_s29 = scalar_lea.vmem %s8452_s27, %s5940_s8 }
 0x49d   : > { %v2079_v57 = vadd.f32 %v6236_v28, %v1971_v62  ;;  %v2270_v27 = vadd.f32 %v2239_v59, %v2184_v21  ;;  %v2185_v63 = vadd.f32 %v2156_v54, %v2077_v3  ;;  %v8577_v59 = vld [vmem:[#allocation29_spill] sm:$0xff]  ;;  %v1973_v31 = vadd.f32 %v8578_v9, %v1875_v44 }
 0x49e   : > { %v6249_v51 = vpop.f32.mrf.mxu1  ;;  %v6256_v47 = vpop.f32.mrf.mxu0  ;;  %v2080_v54 = vadd.f32 %v8577_v59, %v1972_v13  ;;  %v8579_v55 = vld [vmem:[#allocation30_spill] sm:$0xff] }
 0x49f   : > { %v2187_v26 = vadd.f32 %v6246_v39, %v2079_v57  ;;  %v8574_v39 = vld [vmem:[#allocation27_spill] sm:$0xff]  ;;  %v2083_v23 = vadd.f32 %v8579_v55, %v1975_v30 }
 0x4a0   : > { %v2169_v12 = vpop.f32.mrf.mxu1  ;;  %v2242_v29 = vpop.f32.mrf.mxu0  ;;  %v2082_v46 = vadd.f32 %v8574_v39, %v1974_v24  ;;  %v8580_v25 = vld [vmem:[#allocation31_spill] sm:$0xff] }
 0x4a1   : > { %v2273_v37 = vadd.f32 %v6256_v47, %v2187_v26  ;;  %v2271_v47 = vadd.f32 %v2242_v29, %v2185_v63  ;;  %v2188_v14 = vadd.f32 %v2169_v12, %v2080_v54  ;;  %v2081_v28 = vadd.f32 %v8580_v25, %v1973_v31 }
 0x4a2   : > { %v6250_v53 = vpop.f32.mrf.mxu1  ;;  %v6259_v6 = vpop.f32.mrf.mxu0  ;;  %v2190_v11 = vadd.f32 %v6249_v51, %v2082_v46 }
 0x4a3   : > { %v2191_v7 = vadd.f32 %v6250_v53, %v2083_v23  ;;  %v8585_v23 = vld [vmem:[#allocation23_spill] sm:$0xff] }
 0x4a4   : > { %v2172_v17 = vpop.f32.mrf.mxu1  ;;  %v2255_v10 = vpop.f32.mrf.mxu0  ;;  %v2276_v29 = vadd.f32 %v6259_v6, %v2190_v11 }
 0x4a5   : > { %v2274_v62 = vadd.f32 %v2255_v10, %v2188_v14  ;;  %v2189_v45 = vadd.f32 %v2172_v17, %v2081_v28  ;;  %v8587_v14 = vld [vmem:[#allocation2_spill] sm:$0xff] }
 0x4a6   : > { %v6265_v41 = vpop.f32.mrf.mxu1  ;;  %v6260_v50 = vpop.f32.mrf.mxu0 }
 0x4a7   : > { %v2380_v34 = vadd.f32 %v6265_v41, %v2272_v52  ;;  %v2277_v18 = vadd.f32 %v6260_v50, %v2191_v7 }
 0x4a8   : > { %v2347_v43 = vpop.f32.mrf.mxu1  ;;  %v2258_v33 = vpop.f32.mrf.mxu0 }
 0x4a9   : > { %v2378_v35 = vadd.f32 %v2347_v43, %v2270_v27  ;;  %v2394_v36 = vadd.f32 %v5777_v58, %v2380_v34  ;;  %v2275_v21 = vadd.f32 %v2258_v33, %v2189_v45 }
 0x4aa   : > { %v6266_v2 = vpop.f32.mrf.mxu1 }
 0x4ab   : > { %v2392_v4 = vadd.f32 %v5777_v58, %v2378_v35  ;;  %v2381_v20 = vadd.f32 %v6266_v2, %v2273_v37  ;;  %v2409_v57 = vadd.f32 %v5778_v48, %v2394_v36 }
 0x4ac   : > { %v2350_v22 = vpop.f32.mrf.mxu1 }
 0x4ad   : > { %v2379_v60 = vadd.f32 %v2350_v22, %v2271_v47  ;;  %v7508_v0 = vadd.f32 %v5778_v48, %v2392_v4  ;;  %v2395_v19 = vadd.f32 %v5777_v58, %v2381_v20  ;;  %v2423_v17 = vsel %vm863_vm1, %v2409_v57, 0.0  ;;  %v7522_v4 = vld [vmem:[%s8581_s10] sm:$0xff]  ;;  %v8586_v22 = vld [vmem:[#allocation24_spill] sm:$0xff] }
 0x4ae   : > { %v6269_v61 = vpop.f32.mrf.mxu1  ;;  %8582 = vst [vmem:[#allocation25_spill] sm:$0xff] %v7522_v4  ;;  %v8583_v20 = vmov 0.0  }
 0x4af   : > { %v2393_v38 = vadd.f32 %v5777_v58, %v2379_v60  ;;  %v2384_v12 = vadd.f32 %v6269_v61, %v2276_v29  ;;  %v2420_v1 = vsel %vm863_vm1, %v7508_v0, 0.0  ;;  %v2410_v32 = vadd.f32 %v5778_v48, %v2395_v19 }
 0x4b0   : > { %v2363_v42 = vpop.f32.mrf.mxu1 }
 0x4b1   : > { %v2408_v51 = vadd.f32 %v5778_v48, %v2393_v38  ;;  %v2382_v5 = vadd.f32 %v2363_v42, %v2274_v62  ;;  %v2398_v26 = vadd.f32 %v5777_v58, %v2384_v12  ;;  %v2425_v16 = vsel %vm863_vm1, %v2410_v32, 0.0 }
 0x4b2   : > { %v6270_v53 = vpop.f32.mrf.mxu1 }
 0x4b3   : > { %v2421_v8 = vsel %vm863_vm1, %v2408_v51, 0.0  ;;  %v2396_v6 = vadd.f32 %v5777_v58, %v2382_v5  ;;  %v2385_v49 = vadd.f32 %v6270_v53, %v2277_v18  ;;  %v2413_v43 = vadd.f32 %v5778_v48, %v2398_v26 }
 0x4b4   : > { %v2422_v41 = vadd.f32 %v2421_v8, %v2420_v1  ;;  %v2366_v3 = vpop.f32.mrf.mxu1 }
 0x4b5   : > { %v2411_v52 = vadd.f32 %v5778_v48, %v2396_v6  ;;  %v2383_v27 = vadd.f32 %v2366_v3, %v2275_v21  ;;  %v2399_v15 = vadd.f32 %v5777_v58, %v2385_v49  ;;  %v2431_v56 = vsel %vm863_vm1, %v2413_v43, 0.0 }
 0x4b6   : > { %v2424_v10 = vadd.f32 %v2423_v17, %v2422_v41 }
 0x4b7   : > { %v2397_v24 = vadd.f32 %v5777_v58, %v2383_v27  ;;  %v2427_v63 = vsel %vm863_vm1, %v2411_v52, 0.0  ;;  %v2414_v35 = vadd.f32 %v5778_v48, %v2399_v15 }
 0x4b8   : > { %v2426_v13 = vadd.f32 %v2425_v16, %v2424_v10 }
 0x4b9   : > { %v2412_v37 = vadd.f32 %v5778_v48, %v2397_v24  ;;  %v2433_v39 = vsel %vm863_vm1, %v2414_v35, 0.0 }
 0x4ba   : > { %v2428_v34 = vadd.f32 %v2427_v63, %v2426_v13 }
 0x4bb   : > { %v2429_v40 = vsel %vm863_vm1, %v2412_v37, 0.0 }
 0x4bc   : > { %v2430_v44 = vadd.f32 %v2429_v40, %v2428_v34 }
 0x4be   : > { %v2432_v30 = vadd.f32 %v2431_v56, %v2430_v44  ;;  %v6595_v44 = vld [vmem:[%s8438_s13 + $0x8] sm:$0xff]   ;;  %v7557_v56 = vld [vmem:[%s8438_s13 + $0x10] sm:$0xff]  }
 0x4bf   : > { %6295 = vmatprep.subr.bf16.mxu1 %v6595_v44 }
 0x4c0   : > { %v2434_v46 = vadd.f32 %v2433_v39, %v2432_v30  ;;  %6296 = vmatpush3.bf16.msra.mxu1 %v6595_v44  ;;  %v6597_v30 = vld [vmem:[%s8438_s13] sm:$0xff]   ;;  %v7566_v39 = vld [vmem:[%s8438_s13 + $0x18] sm:$0xff]  }
 0x4c1   : > { %6315 = vmatprep.subr.bf16.mxu1 %v7557_v56 }
 0x4c2   : > { %v2435_v2 = vrot.slane %v2434_v46, 4 }
 0x4c4   : > { %v2436_v59 = vadd.f32 %v2435_v2, %v2434_v46 }
 0x4c6   : > { %v2437_v54 = vrot.slane %v2436_v59, 2 }
 0x4c8   : > { %v2438_v58 = vadd.f32 %v2437_v54, %v2436_v59  ;;  %v5783_v54 = vld [vmem:[%s8588_s11] ss:$0 sm:$0xff] }
 0x4ca   : > { %v2439_v47 = vrot.slane %v2438_v58, 1 }
 0x4cc   : > { %v2440_v50 = vadd.f32 %v2439_v47, %v2438_v58 }
 0x4ce   : > { %6276 = vmatmul.mubr.msk.f32.vlgmr.msra.gmra.mxu0 %vm863_vm1, %v2440_v50 }
 0x4cf   : > { %6279 = vmatpush3.msra.mxu0 %v7522_v4  ;;  %6280 = vmatprep.mubr.msk.f32.mxu0 %vm8560_vm10, %v8583_v20 }
 0x4d0   : > { %6283 = vmatprep.subr.mxu0 %v8583_v20 }
 0x58e   : > { %v2510_v9 = vpop.f32.mrf.mxu0 }
 0x58f   : > { %v2514_v31 = vmul.f32 0.0078125, %v2510_v9 }
 0x590   : > { %v6277_v55 = vpop.f32.mrf.mxu0 }
 0x591   : > { %6281 = vmatmul.mubr.msk.f32.vlgmr.msra.gmra.mxu0 %vm8584_vm7, %v2514_v31  ;;  %v5784_v31 = vld [vmem:[%s8437_s12] ss:$0 sm:$0xff] }
 0x592   : > { %6284 = vmatpush3.msra.mxu0 %v8585_v23  ;;  %6287 = vmatprep.mubr.msk.f32.mxu0 %vm8560_vm10, %v8583_v20 }
 0x593   : > { %6285 = vmatprep.subr.mxu0 %v8583_v20 }
 0x594   : > { %6286 = vmatpush3.msra.mxu0 %v8586_v22 }
 0x595   : > { %6290 = vmatprep.subr.mxu0 %v8583_v20 }
 0x651   : > { %v2584_v11 = vpop.f32.mrf.mxu0 }
 0x652   : > { %v2591_v36 = vrot.slane %v2584_v11, %v8587_v14 }
 0x653   : > { %v6282_v48 = vpop.f32.mrf.mxu0 }
 0x654   : > { %v2592_v60 = vsub.f32 %v7508_v0, %v2591_v36  ;;  %v2593_v25 = vsub.f32 %v2408_v51, %v2591_v36  ;;  %v2594_v28 = vsub.f32 %v2409_v57, %v2591_v36  ;;  %v2595_v7 = vsub.f32 %v2410_v32, %v2591_v36 }
 0x655   : > { %v2596_v61 = vsub.f32 %v2411_v52, %v2591_v36  ;;  %v2597_v19 = vsub.f32 %v2412_v37, %v2591_v36  ;;  %v2598_v12 = vsub.f32 %v2413_v43, %v2591_v36  ;;  %v2599_v0 = vsub.f32 %v2414_v35, %v2591_v36 }
 0x656   : > { %v2600_v29 = vmul.f32 %v2592_v60, %v2592_v60  ;;  %v2601_v62 = vmul.f32 %v2593_v25, %v2593_v25  ;;  %v2602_v33 = vmul.f32 %v2594_v28, %v2594_v28  ;;  %v2603_v38 = vmul.f32 %v2595_v7, %v2595_v7 }
 0x657   : > { %v2604_v5 = vmul.f32 %v2596_v61, %v2596_v61  ;;  %v2605_v51 = vmul.f32 %v2597_v19, %v2597_v19  ;;  %v2606_v32 = vmul.f32 %v2598_v12, %v2598_v12  ;;  %v2607_v49 = vmul.f32 %v2599_v0, %v2599_v0 }
 0x658   : > { %v2608_v45 = vsel %vm863_vm1, %v2600_v29, 0.0  ;;  %v2609_v18 = vsel %vm863_vm1, %v2601_v62, 0.0  ;;  %v2611_v21 = vsel %vm863_vm1, %v2602_v33, 0.0  ;;  %v2613_v57 = vsel %vm863_vm1, %v2603_v38, 0.0 }
 0x659   : > { %v2610_v42 = vadd.f32 %v2609_v18, %v2608_v45  ;;  %v2615_v8 = vsel %vm863_vm1, %v2604_v5, 0.0  ;;  %v2617_v41 = vsel %vm863_vm1, %v2605_v51, 0.0  ;;  %v2619_v17 = vsel %vm863_vm1, %v2606_v32, 0.0 }
 0x65a   : > { %v2621_v52 = vsel %vm863_vm1, %v2607_v49, 0.0 }
 0x65b   : > { %v2612_v1 = vadd.f32 %v2611_v21, %v2610_v42 }
 0x65d   : > { %v2614_v53 = vadd.f32 %v2613_v57, %v2612_v1 }
 0x65f   : > { %v2616_v6 = vadd.f32 %v2615_v8, %v2614_v53 }
 0x661   : > { %v2618_v3 = vadd.f32 %v2617_v41, %v2616_v6 }
 0x663   : > { %v2620_v26 = vadd.f32 %v2619_v17, %v2618_v3 }
 0x665   : > { %v2622_v27 = vadd.f32 %v2621_v52, %v2620_v26 }
 0x667   : > { %v2623_v10 = vrot.slane %v2622_v27, 4 }
 0x669   : > { %v2624_v16 = vadd.f32 %v2623_v10, %v2622_v27 }
 0x66b   : > { %v2625_v15 = vrot.slane %v2624_v16, 2 }
 0x66d   : > { %v2626_v24 = vadd.f32 %v2625_v15, %v2624_v16 }
 0x66f   : > { %v2627_v13 = vrot.slane %v2626_v24, 1 }
 0x671   : > { %v2628_v43 = vadd.f32 %v2627_v13, %v2626_v24 }
 0x673   : > { %6288 = vmatmul.mubr.msk.f32.vlgmr.msra.gmra.mxu0 %vm863_vm1, %v2628_v43 }
 0x674   : > { %6291 = vmatpush3.msra.mxu0 %v7522_v4  ;;  %6292 = vmatprep.mubr.msk.f32.mxu0 %vm8560_vm10, %v8583_v20 }
 0x675   : > { %6305 = vmatprep.subr.bf16.mxu0 %v6597_v30 }
 0x733   : > { %v2698_v63 = vpop.f32.mrf.mxu0 }
 0x734   : > { %v2702_v37 = vmul.f32 0.0078125, %v2698_v63 }
 0x735   : > { %v6289_v34 = vpop.f32.mrf.mxu0 }
 0x736   : > { %v2703_v35 = vadd.f32 1e-05, %v2702_v37 }
 0x738   : > { %6645 = vrsqrt.f32 %v2703_v35 }
 0x745   : > { %v6646_v40 = vpop.eup %6645 }
 0x746   : > { %6293 = vmatmul.mubr.msk.f32.vlgmr.msra.gmra.mxu0 %vm8584_vm7, %v6646_v40 }
 0x747   : > { %6306 = vmatpush3.bf16.msra.mxu0 %v6597_v30 }
 0x748   : > { %6325 = vmatprep.subr.bf16.mxu0 %v7566_v39 }
 0x806   : > { %v2774_v46 = vpop.f32.mrf.mxu0 }
 0x807   : > { %v2781_v2 = vrot.slane %v2774_v46, %v8587_v14 }
 0x808   : > { %v6294_v59 = vpop.f32.mrf.mxu0 }
 0x809   : > { %v2782_v58 = vmul.f32 %v2781_v2, %v2592_v60  ;;  %v2783_v47 = vmul.f32 %v2781_v2, %v2593_v25  ;;  %v2784_v50 = vmul.f32 %v2781_v2, %v2594_v28  ;;  %v2785_v9 = vmul.f32 %v2781_v2, %v2595_v7 }
 0x80a   : > { %v2786_v55 = vmul.f32 %v2781_v2, %v2596_v61  ;;  %v2787_v11 = vmul.f32 %v2781_v2, %v2597_v19  ;;  %v2788_v36 = vmul.f32 %v2781_v2, %v2598_v12  ;;  %v2789_v42 = vmul.f32 %v2781_v2, %v2599_v0 }
 0x80b   : > { %v2796_v48 = vmul.f32 %v5783_v54, %v2782_v58  ;;  %v2797_v29 = vmul.f32 %v5783_v54, %v2783_v47  ;;  %v2798_v62 = vmul.f32 %v5783_v54, %v2784_v50  ;;  %v2799_v33 = vmul.f32 %v5783_v54, %v2785_v9 }
 0x80c   : > { %v2800_v38 = vmul.f32 %v5783_v54, %v2786_v55  ;;  %v2801_v45 = vmul.f32 %v5783_v54, %v2787_v11  ;;  %v2802_v18 = vmul.f32 %v5783_v54, %v2788_v36  ;;  %v2803_v57 = vmul.f32 %v5783_v54, %v2789_v42  ;;  %v8589_v36 = vld [vmem:[#allocation11_spill] sm:$0xff] }
 0x80d   : > { %v2810_v5 = vadd.f32 %v5784_v31, %v2796_v48  ;;  %v2811_v60 = vadd.f32 %v5784_v31, %v2797_v29  ;;  %v2812_v25 = vadd.f32 %v5784_v31, %v2798_v62  ;;  %v2813_v28 = vadd.f32 %v5784_v31, %v2799_v33  ;;  %v8590_v33 = vld [vmem:[#allocation6_spill] sm:$0xff] }
 0x80e   : > { %v2814_v7 = vadd.f32 %v5784_v31, %v2800_v38  ;;  %v7576_v21 = vadd.f32 %v5784_v31, %v2801_v45  ;;  %v7578_v19 = vadd.f32 %v5784_v31, %v2802_v18  ;;  %v7582_v8 = vadd.f32 %v5784_v31, %v2803_v57 }
 0x80f   : > { %v5785_v1 = vmul.f32 -1.442695, %v2810_v5  ;;  %v5786_v51 = vmul.f32 -1.442695, %v2811_v60  ;;  %v5787_v61 = vmul.f32 -1.442695, %v2812_v25 }
 0x810   : > { %v5788_v12 = vmul.f32 -1.442695, %v2813_v28  ;;  %v5789_v53 = vmul.f32 -1.442695, %v2814_v7  ;;  %v5790_v32 = vmul.f32 -1.442695, %v7576_v21 }
 0x811   : > { %6647 = vpow2.f32 %v5785_v1  ;;  %v5791_v0 = vmul.f32 -1.442695, %v7578_v19  ;;  %v5792_v6 = vmul.f32 -1.442695, %v7582_v8  ;;  %vm8591_vm7 = vcmp.eq.s32.totalorder %v8590_v33, 1 }
 0x812   : > { %6649 = vpow2.f32 %v5786_v51  ;;  %v8593_v51 = vld [vmem:[#allocation3_spill] sm:$0xff] }
 0x813   : > { %6651 = vpow2.f32 %v5787_v61 }
 0x814   : > { %6653 = vpow2.f32 %v5788_v12  ;;  %v8595_v12 = vld [vmem:[#allocation5_spill] sm:$0xff] }
 0x815   : > { %6655 = vpow2.f32 %v5789_v53  ;;  %vm8596_vm9 = vcmp.eq.s32.totalorder %v8595_v12, 1 }
 0x816   : > { %6657 = vpow2.f32 %v5790_v32 }
 0x817   : > { %6659 = vpow2.f32 %v5791_v0 }
 0x818   : > { %6661 = vpow2.f32 %v5792_v6 }
 0x81e   : > { %v6648_v49 = vpop.eup %6647 }
 0x81f   : > { %v6650_v41 = vpop.eup %6649  ;;  %v2842_v3 = vadd.f32 1.0, %v6648_v49 }
 0x820   : > { %v6652_v17 = vpop.eup %6651  ;;  %v2843_v26 = vadd.f32 1.0, %v6650_v41 }
 0x821   : > { %v6654_v52 = vpop.eup %6653  ;;  %6663 = vrcp.f32 %v2842_v3  ;;  %v2844_v27 = vadd.f32 1.0, %v6652_v17 }
 0x822   : > { %v6656_v10 = vpop.eup %6655  ;;  %6665 = vrcp.f32 %v2843_v26  ;;  %v2845_v16 = vadd.f32 1.0, %v6654_v52 }
 0x823   : > { %v6658_v15 = vpop.eup %6657  ;;  %6667 = vrcp.f32 %v2844_v27  ;;  %v2846_v24 = vadd.f32 1.0, %v6656_v10  ;;  %v8599_v10 = vld [vmem:[#allocation15_spill] sm:$0xff] }
 0x824   : > { %v6660_v13 = vpop.eup %6659  ;;  %6669 = vrcp.f32 %v2845_v16  ;;  %v2847_v43 = vadd.f32 1.0, %v6658_v15 }
 0x825   : > { %6671 = vrcp.f32 %v2846_v24  ;;  %v2848_v63 = vadd.f32 1.0, %v6660_v13  ;;  %v6662_v37 = vpop.eup %6661 }
 0x826   : > { %6673 = vrcp.f32 %v2847_v43  ;;  %v2849_v34 = vadd.f32 1.0, %v6662_v37 }
 0x827   : > { %6675 = vrcp.f32 %v2848_v63 }
 0x828   : > { %6677 = vrcp.f32 %v2849_v34 }
 0x82e   : > { %v6664_v35 = vpop.eup %6663 }
 0x82f   : > { %v6666_v40 = vpop.eup %6665  ;;  %v7585_v44 = vmul.f32 %v6664_v35, %v2810_v5  ;;  %v7618_v5 = vld [vmem:[%s8438_s13 + $0x20] sm:$0xff]  }
 0x830   : > { %v6668_v30 = vpop.eup %6667  ;;  %v7587_v46 = vmul.f32 %v6666_v40, %v2811_v60 }
 0x831   : > { %v6670_v2 = vpop.eup %6669  ;;  %v2916_v59 = vpack.c.bf16 %v7585_v44, %v8583_v20  ;;  %v7591_v54 = vmul.f32 %v6668_v30, %v2812_v25  ;;  %v2882_v58 = vrot.slane %v7585_v44, 7  ;;  %v3090_v31 = vrot.slane %v7585_v44, 1 }
 0x832   : > { %v6672_v47 = vpop.eup %6671  ;;  %v7594_v50 = vmul.f32 %v6670_v2, %v2813_v28  ;;  %v2884_v9 = vrot.slane %v7587_v46, 7  ;;  %v3092_v42 = vrot.slane %v7587_v46, 1  ;;  %v8592_v28 = vld [vmem:[#allocation12_spill] sm:$0xff] }
 0x833   : > { %6297 = vmatprep.mubr.msk.bf16.mxu1 %vm863_vm1, %v2916_v59  ;;  %v7601_v55 = vpack.c.bf16 %v7591_v54, %v7587_v46  ;;  %v7603_v11 = vmul.f32 %v6672_v47, %v2814_v7  ;;  %v2883_v48 = vsel %vm1384_vm6, %v8589_v36, %v2882_v58  ;;  %v2886_v29 = vrot.slane %v7591_v54, 7  ;;  %v6674_v62 = vpop.eup %6673 }
 0x834   : > { %v2903_v38 = vsel %vm8591_vm7, %v2883_v48, 0.0  ;;  %v7611_v45 = vsel %vm1384_vm6, %v2882_v58, %v2884_v9  ;;  %v2888_v18 = vrot.slane %v7594_v50, 7  ;;  %v6676_v60 = vpop.eup %6675  ;;  %vm8594_vm7 = vcmp.eq.s32.totalorder %v8593_v51, 1 }
 0x835   : > { %6298 = vmatmul.mubr.msk.bf16.vlgmr.msra.gmra.mxu1 %vm863_vm1, %v7601_v55  ;;  %v7624_v25 = vpack.c.bf16 %v7603_v11, %v7594_v50  ;;  %v2910_v7 = vpack.c.bf16 %v2903_v38, %v8592_v28  ;;  %v7628_v1 = vsel %vm1384_vm6, %v2884_v9, %v2886_v29  ;;  %v2904_v61 = vsel %vm8594_vm7, %v7611_v45, 0.0  ;;  %v6678_v59 = vpop.eup %6677 }
 0x836   : > { %6316 = vmatpush3.bf16.msra.mxu1 %v7557_v56  ;;  %v2905_v57 = vsel %vm8596_vm9, %v7628_v1, 0.0  ;;  %v7638_v53 = vsel %vm1384_vm6, %v2886_v29, %v2888_v18  ;;  %v2890_v32 = vrot.slane %v7603_v11, 7  ;;  %v7650_v56 = vld [vmem:[%s8438_s13 + $0x28] sm:$0xff]   ;;  %v7656_v3 = vmul.f32 %v6674_v62, %v7576_v21 }
 0x837   : > { %6301 = vmatprep.mubr.msk.bf16.mxu1 %vm863_vm1, %v7624_v25  ;;  %6307 = vmatprep.mubr.msk.bf16.mxu0 %vm863_vm1, %v2910_v7  ;;  %v2911_v0 = vpack.c.bf16 %v2905_v57, %v2904_v61  ;;  %v2906_v49 = vsel %vm1372_vm12, %v7638_v53, 0.0  ;;  %v7659_v17 = vmul.f32 %v6676_v60, %v7578_v19  ;;  %v3096_v26 = vrot.slane %v7594_v50, 1  ;;  %v8608_v57 = vld [vmem:[#allocation9_spill] sm:$0xff] }
 0x838   : > { %v7653_v41 = vsel %vm1384_vm6, %v2888_v18, %v2890_v32  ;;  %6335 = vmatprep.subr.bf16.mxu1 %v7618_v5  ;;  %v3091_v16 = vsel %vm1637_vm13, %v8599_v10, %v3090_v31  ;;  %v7670_v15 = vsel %vm1637_vm13, %v3090_v31, %v3092_v42  ;;  %v3094_v24 = vrot.slane %v7591_v54, 1 }
 0x839   : > { %6308 = vmatmul.mubr.msk.bf16.vlgmr.msra.gmra.mxu0 %vm863_vm1, %v2911_v0  ;;  %v2907_v27 = vsel %vm1373_vm11, %v7653_v41, 0.0  ;;  %v7674_v19 = vpack.c.bf16 %v7659_v17, %v7656_v3  ;;  %v3114_v43 = vsel %vm1628_vm15, %v3091_v16, 0.0  ;;  %v3115_v37 = vsel %vm1629_vm14, %v7670_v15, 0.0 }
 0x83a   : > { %v2912_v21 = vpack.c.bf16 %v2907_v27, %v2906_v49  ;;  %6326 = vmatpush3.bf16.msra.mxu0 %v7566_v39  ;;  %v2892_v34 = vrot.slane %v7656_v3, 7  ;;  %v2894_v35 = vrot.slane %v7659_v17, 7  ;;  %v7688_v40 = vsel %vm1637_vm13, %v3092_v42, %v3094_v24  ;;  %v8602_v39 = vld [vmem:[#allocation4_spill] sm:$0xff] }
 0x83b   : > { %6345 = vmatprep.subr.bf16.mxu0 %v7650_v56  ;;  %v3122_v30 = vpack.c.bf16 %v3115_v37, %v3114_v43  ;;  %vm8603_vm9 = vcmp.eq.s32.totalorder %v8602_v39, 1  ;;  %vm8604_vm7 = vcmp.eq.s32.totalorder %v8590_v33, 1  ;;  %v7704_v31 = vsel %vm1637_vm13, %v3094_v24, %v3096_v26 }
 0x83c   : > { %6311 = vmatprep.mubr.msk.bf16.mxu0 %vm863_vm1, %v2912_v21  ;;  %v3223_v2 = vsel %vm8603_vm9, %v2883_v48, 0.0  ;;  %v7695_v58 = vsel %vm1384_vm6, %v2890_v32, %v2892_v34  ;;  %v7698_v47 = vsel %vm1384_vm6, %v2892_v34, %v2894_v35  ;;  %v3224_v9 = vsel %vm8604_vm7, %v7611_v45, 0.0  ;;  %v8609_v21 = vld [vmem:[#allocation19_spill] sm:$0xff]  ;;  %v8626_v48 = vld [vmem:[#allocation22_spill] sm:$0xff] }
 0x83d   : > { %6302 = vmatmul.mubr.msk.bf16.gmra.mxu1 %vm863_vm1, %v7674_v19  ;;  %v2908_v29 = vsel %vm1374_vm4, %v7695_v58, 0.0  ;;  %v2909_v38 = vsel %vm1375_vm3, %v7698_v47, 0.0  ;;  %v3098_v42 = vrot.slane %v7603_v11, 1  ;;  %v3100_v60 = vrot.slane %v7656_v3, 1 }
 0x83e   : > { %6317 = vmatprep.mubr.msk.bf16.mxu1 %vm863_vm1, %v3122_v30  ;;  %v2913_v18 = vpack.c.bf16 %v2909_v38, %v2908_v29  ;;  %v3231_v28 = vpack.c.bf16 %v3224_v9, %v3223_v2  ;;  %v3116_v61 = vsel %vm1630_vm2, %v7688_v40, 0.0  ;;  %v3117_v32 = vsel %vm8513_vm5, %v7704_v31, 0.0 }
 0x83f   : > { %v7722_v0 = vmul.f32 %v6678_v59, %v7582_v8  ;;  %v7726_v49 = vsel %vm1637_vm13, %v3096_v26, %v3098_v42  ;;  %v7729_v27 = vsel %vm1637_vm13, %v3098_v42, %v3100_v60  ;;  %v3102_v16 = vrot.slane %v7659_v17, 1  ;;  %v6601_v26 = vld [vmem:[%s8438_s13 + $0x30] sm:$0xff]  }
 0x840   : > { %vm8610_vm9 = vcmp.eq.s32.totalorder %v8609_v21, 1  ;;  %v3119_v8 = vsel %vm1633_vm0, %v7729_v27, 0.0  ;;  %v3123_v37 = vpack.c.bf16 %v3117_v32, %v3116_v61  ;;  %vm8612_vm7 = vcmp.eq.s32.totalorder %v8593_v51, 1  ;;  %v6602_v61 = vld [vmem:[%s8438_s13 + $0x38] sm:$0xff]  }
 0x841   : > { %6312 = vmatmul.mubr.msk.bf16.gmra.mxu0 %vm863_vm1, %v2913_v18  ;;  %v3118_v24 = vsel %vm8610_vm9, %v7726_v49, 0.0  ;;  %v3225_v34 = vsel %vm8612_vm7, %v7628_v1, 0.0  ;;  %vm8613_vm5 = vcmp.eq.s32.totalorder %v8595_v12, 1  ;;  %v3104_v59 = vrot.slane %v7722_v0, 1 }
 0x842   : > { %6327 = vmatprep.mubr.msk.bf16.mxu0 %vm863_vm1, %v3231_v28  ;;  %v3226_v30 = vsel %vm8613_vm5, %v7638_v53, 0.0  ;;  %v3124_v2 = vpack.c.bf16 %v3119_v8, %v3118_v24  ;;  %v3227_v9 = vsel %vm1372_vm12, %v7653_v41, 0.0  ;;  %v3228_v29 = vsel %vm1373_vm11, %v7695_v58, 0.0  ;;  %v8615_v8 = vld [vmem:[#allocation20_spill] sm:$0xff] }
 0x843   : > { %v7757_v38 = vsel %vm1637_vm13, %v3100_v60, %v3102_v16  ;;  %v3220_v18 = vrot.slane %v7722_v0, 7  ;;  %v7763_v42 = vsel %vm1637_vm13, %v3102_v16, %v3104_v59  ;;  %v3232_v28 = vpack.c.bf16 %v3226_v30, %v3225_v34 }
 0x844   : > { %v3233_v32 = vpack.c.bf16 %v3228_v29, %v3227_v9  ;;  %v3120_v60 = vsel %vm1634_vm8, %v7757_v38, 0.0  ;;  %vm8616_vm5 = vcmp.eq.s32.totalorder %v8615_v8, 1  ;;  %v3329_v34 = vpack.c.bf16 %v7587_v46, %v7585_v44  ;;  %v6603_v29 = vld [vmem:[%s8438_s13 + $0x40] sm:$0xff]  }
 0x845   : > { %6318 = vmatmul.mubr.msk.bf16.vlgmr.msra.gmra.mxu1 %vm863_vm1, %v3123_v37  ;;  %v3221_v16 = vsel %vm1384_vm6, %v2894_v35, %v3220_v18  ;;  %v3229_v30 = vsel %vm1374_vm4, %v7698_v47, 0.0  ;;  %v3429_v35 = vsel %vm1628_vm15, %v7670_v15, 0.0  ;;  %v3330_v9 = vpack.c.bf16 %v7594_v50, %v7591_v54 }
 0x846   : > { %6336 = vmatpush3.bf16.msra.mxu1 %v7618_v5  ;;  %6321 = vmatprep.mubr.msk.bf16.mxu1 %vm863_vm1, %v3124_v2  ;;  %v3121_v5 = vsel %vm8616_vm5, %v7763_v42, 0.0  ;;  %v3230_v2 = vsel %vm1375_vm3, %v3221_v16, 0.0  ;;  %v3431_v15 = vsel %vm1630_vm2, %v7704_v31, 0.0  ;;  %vm8617_vm9 = vcmp.eq.s32.totalorder %v8608_v57, 1 }
 0x847   : > { %6355 = vmatprep.subr.bf16.mxu1 %v6601_v26  ;;  %v3125_v37 = vpack.c.bf16 %v3121_v5, %v3120_v60  ;;  %v3234_v44 = vpack.c.bf16 %v3230_v2, %v3229_v30  ;;  %vm8618_vm7 = vcmp.eq.s32.totalorder %v8609_v21, 1  ;;  %v3434_v50 = vsel %vm1633_vm0, %v7757_v38, 0.0 }
 0x848   : > { %v3433_v54 = vsel %vm8618_vm7, %v7729_v27, 0.0  ;;  %vm8619_vm5 = vcmp.eq.s32.totalorder %v8602_v39, 1  ;;  %v3435_v30 = vsel %vm1634_vm8, %v7763_v42, 0.0  ;;  %vm8621_vm7 = vcmp.eq.s32.totalorder %v8615_v8, 1 }
 0x849   : > { %6328 = vmatmul.mubr.msk.bf16.vlgmr.msra.gmra.mxu0 %vm863_vm1, %v3232_v28  ;;  %v3432_v28 = vsel %vm8617_vm9, %v7726_v49, 0.0  ;;  %v3439_v5 = vpack.c.bf16 %v3434_v50, %v3433_v54  ;;  %vm8620_vm9 = vcmp.eq.s32.totalorder %v8590_v33, 1  ;;  %v3542_v39 = vsel %vm1373_vm11, %v7698_v47, 0.0 }
 0x84a   : > { %6331 = vmatprep.mubr.msk.bf16.mxu0 %vm863_vm1, %v3233_v32  ;;  %6346 = vmatpush3.bf16.msra.mxu0 %v7650_v56  ;;  %v3430_v56 = vsel %vm1629_vm14, %v7688_v40, 0.0  ;;  %v3331_v32 = vpack.c.bf16 %v7656_v3, %v7603_v11  ;;  %v3438_v60 = vpack.c.bf16 %v3432_v28, %v3431_v15  ;;  %v3537_v11 = vsel %vm8619_vm5, %v7611_v45, 0.0 }
 0x84b   : > { %6365 = vmatprep.subr.bf16.mxu0 %v6602_v61  ;;  %v3437_v46 = vpack.c.bf16 %v3430_v56, %v3429_v35  ;;  %v3538_v3 = vsel %vm8620_vm9, %v7628_v1, 0.0  ;;  %vm8623_vm5 = vcmp.eq.s32.totalorder %v8595_v12, 1  ;;  %v3535_v12 = vsel %vm1384_vm6, %v3220_v18, %v8589_v36 }
 0x84c   : > { %v3729_v6 = vsel %vm1628_vm15, %v7688_v40, 0.0  ;;  %v3730_v36 = vsel %vm1629_vm14, %v7704_v31, 0.0  ;;  %v3731_v13 = vsel %vm1630_vm2, %v7726_v49, 0.0  ;;  %vm8624_vm6 = vcmp.eq.s32.totalorder %v8608_v57, 1 }
 0x84d   : > { %6322 = vmatmul.mubr.msk.bf16.gmra.mxu1 %vm863_vm1, %v3125_v37  ;;  %v3427_v37 = vsel %vm1637_vm13, %v3104_v59, %v8599_v10  ;;  %vm8622_vm13 = vcmp.eq.s32.totalorder %v8593_v51, 1  ;;  %v3541_v10 = vsel %vm1372_vm12, %v7695_v58, 0.0  ;;  %v3736_v52 = vpack.c.bf16 %v3730_v36, %v3729_v6 }
 0x84e   : > { %6337 = vmatprep.mubr.msk.bf16.mxu1 %vm863_vm1, %v3329_v34  ;;  %v3545_v34 = vpack.c.bf16 %v3538_v3, %v3537_v11  ;;  %v3436_v45 = vsel %vm8621_vm7, %v3427_v37, 0.0  ;;  %v3539_v1 = vsel %vm8622_vm13, %v7638_v53, 0.0  ;;  %v3547_v51 = vpack.c.bf16 %v3542_v39, %v3541_v10 }
 0x84f   : > { %v3440_v33 = vpack.c.bf16 %v3436_v45, %v3435_v30  ;;  %v3543_v53 = vsel %vm1374_vm4, %v3221_v16, 0.0  ;;  %v3732_v63 = vsel %vm8624_vm6, %v7729_v27, 0.0  ;;  %vm8625_vm11 = vcmp.eq.s32.totalorder %v8609_v21, 1 }
 0x850   : > { %v3734_v40 = vsel %vm1633_vm0, %v7763_v42, 0.0  ;;  %v3737_v58 = vpack.c.bf16 %v3732_v63, %v3731_v13  ;;  %v3735_v31 = vsel %vm1634_vm8, %v3427_v37, 0.0  ;;  %vm8647_vm0 = vcmask 64512  }
 0x851   : > { %6332 = vmatmul.mubr.msk.bf16.gmra.mxu0 %vm863_vm1, %v3234_v44  ;;  %v3739_v62 = vpack.c.bf16 %v8626_v48, %v3735_v31  ;;  %vm8649_vm2 = vmmov %vm8647_vm0 }
 0x852   : > { %6347 = vmatprep.mubr.msk.bf16.mxu0 %vm863_vm1, %v3437_v46  ;;  %vm8650_vm8 = vmmov %vm8647_vm0 }
 0x853   : > { %vm8651_vm12 = vmmov %vm8647_vm0 }
 0x854   : > { %vm8652_vm14 = vmmov %vm8647_vm0 }
 0x855   : > { %6338 = vmatmul.mubr.msk.bf16.vlgmr.msra.gmra.mxu1 %vm863_vm1, %v3330_v9  ;;  %vm8653_vm15 = vmmov %vm8647_vm0 }
 0x856   : > { %6356 = vmatpush3.bf16.msra.mxu1 %v6601_v26  ;;  %6341 = vmatprep.mubr.msk.bf16.mxu1 %vm863_vm1, %v3331_v32  ;;  %v3332_v26 = vpack.c.bf16 %v7722_v0, %v7659_v17  ;;  %v3540_v17 = vsel %vm8623_vm5, %v7653_v41, 0.0  ;;  %vm8655_vm4 = vmmov %vm8647_vm0 }
 0x857   : > { %6375 = vmatprep.subr.bf16.mxu1 %v6603_v29  ;;  %v3546_v59 = vpack.c.bf16 %v3540_v17, %v3539_v1  ;;  %vm8657_vm9 = vmmov %vm8647_vm0 }
 0x858   : > { %vm8658_vm7 = vmmov %vm8647_vm0 }
 0x859   : > { %6348 = vmatmul.mubr.msk.bf16.vlgmr.msra.gmra.mxu0 %vm863_vm1, %v3438_v60  ;;  %vm8659_vm13 = vmmov %vm8647_vm0 }
 0x85a   : > { %6351 = vmatprep.mubr.msk.bf16.mxu0 %vm863_vm1, %v3439_v5  ;;  %6366 = vmatpush3.bf16.msra.mxu0 %v6602_v61  ;;  %vm8660_vm5 = vmmov %vm8647_vm0 }
 0x85b   : > { %vm8661_vm6 = vmmov %vm8647_vm0 }
 0x85d   : > { %6342 = vmatmul.mubr.msk.bf16.gmra.mxu1 %vm863_vm1, %v3332_v26 }
 0x85e   : > { %6357 = vmatprep.mubr.msk.bf16.mxu1 %vm863_vm1, %v3545_v34 }
 0x861   : > { %6352 = vmatmul.mubr.msk.bf16.gmra.mxu0 %vm863_vm1, %v3440_v33 }
 0x862   : > { %6367 = vmatprep.mubr.msk.bf16.mxu0 %vm863_vm1, %v7601_v55  ;;  %v3544_v55 = vsel %vm1375_vm3, %v3535_v12, 0.0  ;;  %vm8654_vm3 = vmmov %vm8647_vm0 }
 0x863   : > { %v3548_v41 = vpack.c.bf16 %v3544_v55, %v3543_v53 }
 0x865   : > { %6358 = vmatmul.mubr.msk.bf16.vlgmr.msra.gmra.mxu1 %vm863_vm1, %v3546_v59 }
 0x866   : > { %6376 = vmatpush3.bf16.msra.mxu1 %v6603_v29  ;;  %6361 = vmatprep.mubr.msk.bf16.mxu1 %vm863_vm1, %v3547_v51 }
 0x867   : > { %6395 = vmatprep.subr.mxu1 %v8583_v20 }
 0x869   : > { %6368 = vmatmul.mubr.msk.bf16.vlgmr.msra.gmra.mxu0 %vm863_vm1, %v7624_v25  ;;  %v3643_v25 = vpack.c.bf16 %v8583_v20, %v7722_v0 }
 0x86a   : > { %6371 = vmatprep.mubr.msk.bf16.mxu0 %vm863_vm1, %v7674_v19  ;;  %v3733_v19 = vsel %vm8625_vm11, %v7757_v38, 0.0  ;;  %vm8662_vm11 = vmmov %vm8647_vm0 }
 0x86b   : > { %v3738_v47 = vpack.c.bf16 %v3734_v40, %v3733_v19 }
 0x86d   : > { %6362 = vmatmul.mubr.msk.bf16.gmra.mxu1 %vm863_vm1, %v3548_v41 }
 0x86e   : > { %6377 = vmatprep.mubr.msk.bf16.mxu1 %vm863_vm1, %v3736_v52 }
 0x871   : > { %6372 = vmatmul.mubr.msk.bf16.gmra.mxu0 %vm863_vm1, %v3643_v25 }
 0x875   : > { %6378 = vmatmul.mubr.msk.bf16.vlgmr.msra.gmra.mxu1 %vm863_vm1, %v3737_v58 }
 0x876   : > { %6381 = vmatprep.mubr.msk.bf16.mxu1 %vm863_vm1, %v3738_v47  ;;  %6396 = vmatpush3.msra.mxu1 %v8585_v23  ;;  %v6604_v23 = vld [vmem:[%s8440_s15] sm:$0xff]  }
 0x877   : > { %6397 = vmatprep.subr.mxu1 %v8583_v20  ;;  %6385 = vmatprep.subr.bf16.mxu0 %v6604_v23 }
 0x878   : > { %6398 = vmatpush3.msra.mxu1 %v8586_v22  ;;  %6386 = vmatpush3.bf16.msra.mxu0 %v6604_v23 }
 0x879   : > { %6407 = vmatprep.subr.mxu1 %v8583_v20  ;;  %6402 = vmatprep.subr.mxu0 %v8583_v20 }
 0x87d   : > { %6382 = vmatmul.mubr.msk.bf16.gmra.mxu1 %vm863_vm1, %v3739_v62 }
 0x87e   : > { %6399 = vmatprep.mubr.msk.f32.mxu1 %vm8560_vm10, %v8583_v20 }
 0x8f5   : > { %v6299_v7 = vpop.f32.mrf.mxu1 }
 0x8f7   : > { %v2975_v57 = vpop.f32.mrf.mxu1 }
 0x8f9   : > { %v6300_v22 = vpop.f32.mrf.mxu1  ;;  %v6309_v0 = vpop.f32.mrf.mxu0 }
 0x8fa   : > { %v3067_v47 = vadd.f32 %v6309_v0, %v6299_v7 }
 0x8fb   : > { %v2978_v49 = vpop.f32.mrf.mxu1  ;;  %v3058_v27 = vpop.f32.mrf.mxu0 }
 0x8fc   : > { %v3059_v40 = vadd.f32 %v3058_v27, %v2975_v57 }
 0x8fd   : > { %v7906_v21 = vpop.f32.mrf.mxu1  ;;  %v6310_v43 = vpop.f32.mrf.mxu0 }
 0x8fe   : > { %v3070_v58 = vadd.f32 %v6310_v43, %v6300_v22 }
 0x8ff   : > { %v7908_v38 = vpop.f32.mrf.mxu1  ;;  %v3061_v18 = vpop.f32.mrf.mxu0 }
 0x900   : > { %v3062_v62 = vadd.f32 %v3061_v18, %v2978_v49 }
 0x901   : > { %v7910_v42 = vpop.f32.mrf.mxu1  ;;  %v7912_v61 = vpop.f32.mrf.mxu0 }
 0x903   : > { %v7914_v24 = vpop.f32.mrf.mxu1  ;;  %v3074_v8 = vpop.f32.mrf.mxu0 }
 0x904   : > { %v3075_v57 = vadd.f32 %v3074_v8, %v7908_v38 }
 0x905   : > { %v7916_v16 = vpop.f32.mrf.mxu0  ;;  %v6319_v2 = vpop.f32.mrf.mxu1 }
 0x906   : > { %v3214_v20 = vadd.f32 %v6319_v2, %v3067_v47  ;;  %v3086_v49 = vadd.f32 %v7916_v16, %v7910_v42  ;;  %v3083_v2 = vadd.f32 %v7912_v61, %v7906_v21 }
 0x907   : > { %v7918_v35 = vpop.f32.mrf.mxu0  ;;  %v3181_v56 = vpop.f32.mrf.mxu1 }
 0x908   : > { %v3212_v23 = vadd.f32 %v3181_v56, %v3059_v40 }
 0x909   : > { %v6320_v44 = vpop.f32.mrf.mxu1  ;;  %v6329_v46 = vpop.f32.mrf.mxu0 }
 0x90a   : > { %v3215_v14 = vadd.f32 %v6320_v44, %v3070_v58 }
 0x90b   : > { %v3184_v9 = vpop.f32.mrf.mxu1  ;;  %v3290_v29 = vpop.f32.mrf.mxu0 }
 0x90d   : > { %v7920_v15 = vpop.f32.mrf.mxu1  ;;  %v6330_v28 = vpop.f32.mrf.mxu0 }
 0x90f   : > { %v3197_v32 = vpop.f32.mrf.mxu1  ;;  %v3293_v54 = vpop.f32.mrf.mxu0 }
 0x911   : > { %v6324_v50 = vpop.f32.mrf.mxu1  ;;  %v7922_v60 = vpop.f32.mrf.mxu0 }
 0x912   : > { %8627 = vst [vmem:[#allocation26_spill] sm:$0xff] %v7922_v60 }
 0x913   : > { %v7924_v5 = vpop.f32.mrf.mxu1  ;;  %v7926_v11 = vpop.f32.mrf.mxu0 }
 0x915   : > { %v7928_v3 = vpop.f32.mrf.mxu0  ;;  %v6339_v37 = vpop.f32.mrf.mxu1 }
 0x917   : > { %v7930_v26 = vpop.f32.mrf.mxu0  ;;  %v3388_v34 = vpop.f32.mrf.mxu1 }
 0x918   : > { %8628 = vst [vmem:[#allocation27_spill] sm:$0xff] %v7930_v26 }
 0x919   : > { %v6340_v30 = vpop.f32.mrf.mxu1  ;;  %v6349_v45 = vpop.f32.mrf.mxu0 }
 0x91b   : > { %v3391_v33 = vpop.f32.mrf.mxu1  ;;  %v3496_v1 = vpop.f32.mrf.mxu0 }
 0x91d   : > { %v7932_v17 = vpop.f32.mrf.mxu1  ;;  %v6350_v10 = vpop.f32.mrf.mxu0 }
 0x91e   : > { %8629 = vst [vmem:[#allocation29_spill] sm:$0xff] %v7932_v17 }
 0x91f   : > { %v3404_v39 = vpop.f32.mrf.mxu1  ;;  %v3499_v59 = vpop.f32.mrf.mxu0 }
 0x921   : > { %v7934_v51 = vpop.f32.mrf.mxu1  ;;  %v7936_v12 = vpop.f32.mrf.mxu0 }
 0x922   : > { %8630 = vst [vmem:[#allocation28_spill] sm:$0xff] %v7934_v51  ;;  %8631 = vst [vmem:[#allocation30_spill] sm:$0xff] %v7936_v12 }
 0x923   : > { %v7938_v53 = vpop.f32.mrf.mxu1  ;;  %v7940_v55 = vpop.f32.mrf.mxu0 }
 0x924   : > { %8632 = vst [vmem:[#allocation31_spill] sm:$0xff] %v7938_v53  ;;  %8633 = vst [vmem:[#allocation23_spill] sm:$0xff] %v7940_v55  ;;  %v3321_v55 = vadd.f32 %v3290_v29, %v3212_v23  ;;  %v3323_v53 = vadd.f32 %v6329_v46, %v3214_v20  ;;  %v3078_v20 = vadd.f32 %v7918_v35, %v7914_v24 }
 0x925   : > { %v7942_v6 = vpop.f32.mrf.mxu0  ;;  %v6359_v36 = vpop.f32.mrf.mxu1  ;;  %v3219_v46 = vadd.f32 %v6324_v50, %v3086_v49  ;;  %v3218_v29 = vadd.f32 %v7920_v15, %v3083_v2  ;;  %v8637_v50 = vld [vmem:[#allocation27_spill] sm:$0xff] }
 0x926   : > { %8634 = vst [vmem:[#allocation24_spill] sm:$0xff] %v7942_v6  ;;  %v3213_v6 = vadd.f32 %v3184_v9, %v3062_v62  ;;  %v3419_v26 = vadd.f32 %v3388_v34, %v3321_v55  ;;  %v3421_v7 = vadd.f32 %v6339_v37, %v3323_v53  ;;  %v3217_v42 = vadd.f32 %v7924_v5, %v3078_v20 }
 0x927   : > { %v7944_v41 = vpop.f32.mrf.mxu0  ;;  %v3604_v52 = vpop.f32.mrf.mxu1  ;;  %v3328_v21 = vadd.f32 %v7928_v3, %v3219_v46 }
 0x928   : > { %8635 = vst [vmem:[#allocation11_spill] sm:$0xff] %v7944_v41  ;;  %v3324_v41 = vadd.f32 %v6330_v28, %v3215_v14  ;;  %v3322_v51 = vadd.f32 %v3293_v54, %v3213_v6  ;;  %v3527_v43 = vadd.f32 %v3496_v1, %v3419_v26  ;;  %v3216_v14 = vadd.f32 %v3197_v32, %v3075_v57  ;;  %v8636_v32 = vld [vmem:[#allocation26_spill] sm:$0xff] }
 0x929   : > { %v6360_v25 = vpop.f32.mrf.mxu1  ;;  %v6369_v13 = vpop.f32.mrf.mxu0  ;;  %v3529_v56 = vadd.f32 %v6349_v45, %v3421_v7  ;;  %v3327_v37 = vadd.f32 %v8636_v32, %v3218_v29  ;;  %v3326_v26 = vadd.f32 %v8637_v50, %v3217_v42  ;;  %v8638_v15 = vld [vmem:[#allocation28_spill] sm:$0xff]  ;;  %v8645_v29 = vld [vmem:[#allocation25_spill] sm:$0xff] }
 0x92a   : > { %v3422_v60 = vadd.f32 %v6340_v30, %v3324_v41  ;;  %v3420_v27 = vadd.f32 %v3391_v33, %v3322_v51  ;;  %v3635_v8 = vadd.f32 %v3604_v52, %v3527_v43  ;;  %v3325_v16 = vadd.f32 %v7926_v11, %v3216_v14 }
 0x92b   : > { %v3607_v63 = vpop.f32.mrf.mxu1  ;;  %v3690_v19 = vpop.f32.mrf.mxu0  ;;  %v3637_v28 = vadd.f32 %v6359_v36, %v3529_v56  ;;  %v3426_v33 = vadd.f32 %v8638_v15, %v3328_v21  ;;  %v8640_v51 = vld [vmem:[#allocation31_spill] sm:$0xff] }
 0x92c   : > { %v3530_v18 = vadd.f32 %v6350_v10, %v3422_v60  ;;  %v3528_v38 = vadd.f32 %v3499_v59, %v3420_v27  ;;  %v3721_v24 = vadd.f32 %v3690_v19, %v3635_v8  ;;  %v3423_v34 = vadd.f32 %v3404_v39, %v3325_v16  ;;  %v8639_v10 = vld [vmem:[#allocation29_spill] sm:$0xff]  ;;  %v8641_v36 = vld [vmem:[#allocation23_spill] sm:$0xff]  ;;  %v5854_v39 = vld [vmem:[%s8439_s14] ss:$0 sm:$0xff] }
 0x92d   : > { %v7946_v31 = vpop.f32.mrf.mxu1  ;;  %v6370_v48 = vpop.f32.mrf.mxu0  ;;  %v3723_v30 = vadd.f32 %v6369_v13, %v3637_v28  ;;  %v3425_v59 = vadd.f32 %v8639_v10, %v3327_v37  ;;  %v3424_v53 = vadd.f32 %v8640_v51, %v3326_v26  ;;  %v8642_v52 = vld [vmem:[#allocation24_spill] sm:$0xff] }
 0x92e   : > { %v3638_v9 = vadd.f32 %v6360_v25, %v3530_v18  ;;  %v3636_v61 = vadd.f32 %v3607_v63, %v3528_v38  ;;  %v3531_v41 = vadd.f32 %v8641_v36, %v3423_v34  ;;  %v3534_v25 = vadd.f32 %v8642_v52, %v3426_v33  ;;  %v8643_v63 = vld [vmem:[#allocation30_spill] sm:$0xff] }
 0x92f   : > { %v3620_v4 = vpop.f32.mrf.mxu1  ;;  %v3693_v12 = vpop.f32.mrf.mxu0  ;;  %v8644_v19 = vld [vmem:[#allocation11_spill] sm:$0xff] }
 0x930   : > { %v3724_v35 = vadd.f32 %v6370_v48, %v3638_v9  ;;  %v3722_v5 = vadd.f32 %v3693_v12, %v3636_v61  ;;  %v3533_v12 = vadd.f32 %v8643_v63, %v3425_v59  ;;  %v3532_v40 = vadd.f32 %v8644_v19, %v3424_v53  ;;  %v5855_v61 = vld [vmem:[%s8441_s16] ss:$0 sm:$0xff] }
 0x931   : > { %v6364_v17 = vpop.f32.mrf.mxu1  ;;  %v6373_v22 = vpop.f32.mrf.mxu0  ;;  %v3639_v48 = vadd.f32 %v3620_v4, %v3531_v41 }
 0x932   : > { %v3642_v62 = vadd.f32 %v6364_v17, %v3534_v25  ;;  %v3641_v7 = vadd.f32 %v7946_v31, %v3533_v12 }
 0x933   : > { %v3623_v0 = vpop.f32.mrf.mxu1  ;;  %v3706_v54 = vpop.f32.mrf.mxu0 }
 0x934   : > { %v3640_v18 = vadd.f32 %v3623_v0, %v3532_v40  ;;  %v3725_v2 = vadd.f32 %v3706_v54, %v3639_v48  ;;  %v3727_v56 = vadd.f32 %v6373_v22, %v3641_v7  ;;  %v8646_v0 = vmov 0.0  }
 0x935   : > { %v6379_v44 = vpop.f32.mrf.mxu1  ;;  %v6374_v3 = vpop.f32.mrf.mxu0 }
 0x936   : > { %v3828_v55 = vadd.f32 %v6379_v44, %v3723_v30  ;;  %v3728_v20 = vadd.f32 %v6374_v3, %v3642_v62 }
 0x937   : > { %v3795_v60 = vpop.f32.mrf.mxu1  ;;  %v3709_v27 = vpop.f32.mrf.mxu0 }
 0x938   : > { %v3826_v1 = vadd.f32 %v3795_v60, %v3721_v24  ;;  %v3842_v49 = vadd.f32 %v5854_v39, %v3828_v55  ;;  %v3726_v38 = vadd.f32 %v3709_v27, %v3640_v18 }
 0x939   : > { %v6380_v45 = vpop.f32.mrf.mxu1 }
 0x93a   : > { %v3829_v11 = vadd.f32 %v6380_v45, %v3724_v35  ;;  %v3840_v23 = vadd.f32 %v5854_v39, %v3826_v1 }
 0x93b   : > { %v3798_v6 = vpop.f32.mrf.mxu1 }
 0x93c   : > { %v3827_v13 = vadd.f32 %v3798_v6, %v3722_v5  ;;  %v3843_v58 = vadd.f32 %v5854_v39, %v3829_v11 }
 0x93d   : > { %v6383_v47 = vpop.f32.mrf.mxu1 }
 0x93e   : > { %v3841_v57 = vadd.f32 %v5854_v39, %v3827_v13  ;;  %v3849_v44 = vpack.c.bf16 %v3843_v58, %v3842_v49  ;;  %v3832_v4 = vadd.f32 %v6383_v47, %v3727_v56  ;;  %v6746_v56 = vld [vmem:[%s8562_s30] sm:$0xff] }
 0x93f   : > { %v3811_v43 = vpop.f32.mrf.mxu1 }
 0x940   : > { %v3848_v14 = vpack.c.bf16 %v3841_v57, %v3840_v23  ;;  %v3830_v8 = vadd.f32 %v3811_v43, %v3725_v2  ;;  %v3846_v22 = vadd.f32 %v5854_v39, %v3832_v4  ;;  %v8648_v4 = vld [vmem:[#allocation2_spill] sm:$0xff] }
 0x941   : > { %v6384_v46 = vpop.f32.mrf.mxu1 }
 0x942   : > { %v3833_v9 = vadd.f32 %v6384_v46, %v3728_v20  ;;  %6387 = vmatprep.mubr.msk.bf16.mxu0 %vm863_vm1, %v3848_v14  ;;  %v3844_v16 = vadd.f32 %v5854_v39, %v3830_v8  ;;  %v6745_v14 = vld [vmem:[%s8562_s30 + $0x8] sm:$0xff]  ;;  %v6747_v8 = vld [vmem:[%s8581_s10] sm:$0xff] }
 0x943   : > { %v3814_v17 = vpop.f32.mrf.mxu1  ;;  %6388 = vmatmul.mubr.msk.bf16.vlgmr.msra.gmra.mxu0 %vm863_vm1, %v3849_v44 }
 0x944   : > { %v3831_v31 = vadd.f32 %v3814_v17, %v3726_v38  ;;  %6403 = vmatpush3.msra.mxu0 %v8645_v29  ;;  %v3847_v42 = vadd.f32 %v5854_v39, %v3833_v9 }
 0x945   : > { %6414 = vmatprep.subr.mxu0 %v8646_v0 }
 0x946   : > { %v3845_v28 = vadd.f32 %v5854_v39, %v3831_v31  ;;  %v3851_v60 = vpack.c.bf16 %v3847_v42, %v3846_v22 }
 0x948   : > { %v3850_v54 = vpack.c.bf16 %v3845_v28, %v3844_v16 }
 0x94a   : > { %6391 = vmatprep.mubr.msk.bf16.mxu0 %vm863_vm1, %v3850_v54 }
 0x94b   : > { %6392 = vmatmul.mubr.msk.bf16.gmra.mxu0 %vm863_vm1, %v3851_v60 }
 0x94c   : > { %6404 = vmatprep.mubr.msk.f32.mxu0 %vm8560_vm10, %v8646_v0 }
 0xa03   : > { %v6389_v21 = vpop.f32.mrf.mxu0 }
 0xa04   : > { %v3922_v37 = vadd.f32 %v6389_v21, %v5855_v61 }
 0xa05   : > { %v3913_v24 = vpop.f32.mrf.mxu0 }
 0xa06   : > { %v3914_v35 = vadd.f32 %v5855_v61, %v3913_v24  ;;  %v7985_v15 = vadd.f32 %v3922_v37, %v3842_v49 }
 0xa07   : > { %v6390_v32 = vpop.f32.mrf.mxu0 }
 0xa08   : > { %v7983_v26 = vadd.f32 %v3914_v35, %v3840_v23  ;;  %v3925_v34 = vadd.f32 %v6390_v32, %v5855_v61  ;;  %v3957_v3 = vsel %vm863_vm1, %v7985_v15, 0.0 }
 0xa09   : > { %v3916_v50 = vpop.f32.mrf.mxu0 }
 0xa0a   : > { %v3917_v30 = vadd.f32 %v5855_v61, %v3916_v50  ;;  %v3954_v1 = vsel %vm863_vm1, %v7983_v26, 0.0  ;;  %v7991_v11 = vadd.f32 %v3925_v34, %v3843_v58 }
 0xa0b   : > { %v6393_v45 = vpop.f32.mrf.mxu0 }
 0xa0c   : > { %v7987_v33 = vadd.f32 %v3917_v30, %v3841_v57  ;;  %v3938_v55 = vadd.f32 %v6393_v45, %v5855_v61  ;;  %v3959_v52 = vsel %vm863_vm1, %v7991_v11, 0.0 }
 0xa0d   : > { %v3929_v5 = vpop.f32.mrf.mxu0 }
 0xa0e   : > { %v3955_v10 = vsel %vm863_vm1, %v7987_v33, 0.0  ;;  %v3930_v59 = vadd.f32 %v5855_v61, %v3929_v5  ;;  %v8001_v63 = vadd.f32 %v3938_v55, %v3846_v22 }
 0xa0f   : > { %v3956_v51 = vadd.f32 %v3955_v10, %v3954_v1  ;;  %v6394_v53 = vpop.f32.mrf.mxu0 }
 0xa10   : > { %v7997_v6 = vadd.f32 %v3930_v59, %v3844_v16  ;;  %v3941_v25 = vadd.f32 %v6394_v53, %v5855_v61  ;;  %v3965_v62 = vsel %vm863_vm1, %v8001_v63, 0.0 }
 0xa11   : > { %v3958_v36 = vadd.f32 %v3957_v3, %v3956_v51  ;;  %v3932_v41 = vpop.f32.mrf.mxu0 }
 0xa12   : > { %v3933_v39 = vadd.f32 %v5855_v61, %v3932_v41  ;;  %v3961_v12 = vsel %vm863_vm1, %v7997_v6, 0.0  ;;  %v8007_v58 = vadd.f32 %v3941_v25, %v3847_v42 }
 0xa13   : > { %v3960_v13 = vadd.f32 %v3959_v52, %v3958_v36 }
 0xa14   : > { %v8005_v19 = vadd.f32 %v3933_v39, %v3845_v28  ;;  %v3967_v57 = vsel %vm863_vm1, %v8007_v58, 0.0 }
 0xa15   : > { %v3962_v40 = vadd.f32 %v3961_v12, %v3960_v13 }
 0xa16   : > { %v3963_v47 = vsel %vm863_vm1, %v8005_v19, 0.0 }
 0xa17   : > { %v3964_v48 = vadd.f32 %v3963_v47, %v3962_v40 }
 0xa19   : > { %v3966_v23 = vadd.f32 %v3965_v62, %v3964_v48 }
 0xa1b   : > { %v3968_v7 = vadd.f32 %v3967_v57, %v3966_v23 }
 0xa1d   : > { %v3969_v49 = vrot.slane %v3968_v7, 4 }
 0xa1f   : > { %v3970_v27 = vadd.f32 %v3969_v49, %v3968_v7 }
 0xa21   : > { %v3971_v43 = vrot.slane %v3970_v27, 2 }
 0xa23   : > { %v3972_v18 = vadd.f32 %v3971_v43, %v3970_v27  ;;  %v6605_v43 = vld [vmem:[%s8444_s19] sm:$0xff]  }
 0xa25   : > { %v3973_v2 = vrot.slane %v3972_v18, 1 }
 0xa27   : > { %v3974_v20 = vadd.f32 %v3973_v2, %v3972_v18  ;;  %v6606_v18 = vld [vmem:[%s8445_s20] sm:$0xff]  }
 0xa28   : > { %v6607_v2 = vld [vmem:[%s8446_s21] sm:$0xff]  }
 0xa29   : > { %6400 = vmatmul.mubr.msk.f32.vlgmr.msra.gmra.mxu1 %vm863_vm1, %v3974_v20  ;;  %v6608_v20 = vld [vmem:[%s8444_s19 + $0x8] sm:$0xff]  }
 0xa2a   : > { %6408 = vmatpush3.msra.mxu1 %v6745_v14  ;;  %6411 = vmatprep.mubr.msk.f32.mxu1 %vm8560_vm10, %v8646_v0 }
 0xa2b   : > { %6409 = vmatprep.subr.mxu1 %v8646_v0 }
 0xa2c   : > { %6410 = vmatpush3.msra.mxu1 %v6746_v56 }
 0xa2d   : > { %6419 = vmatprep.subr.bf16.mxu1 %v6605_v43 }
 0xae9   : > { %v4044_v44 = vpop.f32.mrf.mxu1 }
 0xaea   : > { %v4048_v46 = vmul.f32 0.0078125, %v4044_v44 }
 0xaeb   : > { %v6401_v38 = vpop.f32.mrf.mxu1 }
 0xaec   : > { %6405 = vmatmul.mubr.msk.f32.vlgmr.msra.gmra.mxu0 %vm8647_vm0, %v4048_v46  ;;  %v5865_v46 = vld [vmem:[%s8442_s17] ss:$0 sm:$0xff] }
 0xaed   : > { %6415 = vmatpush3.msra.mxu0 %v6747_v8  ;;  %6416 = vmatprep.mubr.msk.f32.mxu0 %vm8560_vm10, %v8646_v0  ;;  %vm8656_vm10 = vmmov %vm8647_vm0 }
 0xaee   : > { %6429 = vmatprep.subr.bf16.mxu0 %v6606_v18 }
 0xbac   : > { %v4118_v9 = vpop.f32.mrf.mxu0 }
 0xbad   : > { %v4125_v17 = vrot.slane %v4118_v9, %v8648_v4 }
 0xbae   : > { %v6406_v31 = vpop.f32.mrf.mxu0 }
 0xbaf   : > { %v4126_v29 = vsub.f32 %v7983_v26, %v4125_v17  ;;  %v4127_v42 = vsub.f32 %v7987_v33, %v4125_v17  ;;  %v4128_v16 = vsub.f32 %v7985_v15, %v4125_v17  ;;  %v4129_v28 = vsub.f32 %v7991_v11, %v4125_v17  ;;  %v5866_v31 = vld [vmem:[%s8443_s18] ss:$0 sm:$0xff] }
 0xbb0   : > { %v4130_v22 = vsub.f32 %v7997_v6, %v4125_v17  ;;  %v4131_v61 = vsub.f32 %v8005_v19, %v4125_v17  ;;  %v4132_v37 = vsub.f32 %v8001_v63, %v4125_v17  ;;  %v4133_v45 = vsub.f32 %v8007_v58, %v4125_v17 }
 0xbb1   : > { %v4134_v54 = vmul.f32 %v4126_v29, %v4126_v29  ;;  %v4135_v60 = vmul.f32 %v4127_v42, %v4127_v42  ;;  %v4136_v21 = vmul.f32 %v4128_v16, %v4128_v16  ;;  %v4137_v0 = vmul.f32 %v4129_v28, %v4129_v28 }
 0xbb2   : > { %v4138_v50 = vmul.f32 %v4130_v22, %v4130_v22  ;;  %v4139_v5 = vmul.f32 %v4131_v61, %v4131_v61  ;;  %v4140_v59 = vmul.f32 %v4132_v37, %v4132_v37  ;;  %v4141_v3 = vmul.f32 %v4133_v45, %v4133_v45 }
 0xbb3   : > { %v4142_v24 = vsel %vm863_vm1, %v4134_v54, 0.0  ;;  %v4143_v35 = vsel %vm863_vm1, %v4135_v60, 0.0  ;;  %v4145_v34 = vsel %vm863_vm1, %v4136_v21, 0.0  ;;  %v4147_v1 = vsel %vm863_vm1, %v4137_v0, 0.0 }
 0xbb4   : > { %v4144_v32 = vadd.f32 %v4143_v35, %v4142_v24  ;;  %v4149_v51 = vsel %vm863_vm1, %v4138_v50, 0.0  ;;  %v4151_v55 = vsel %vm863_vm1, %v4139_v5, 0.0  ;;  %v4153_v41 = vsel %vm863_vm1, %v4140_v59, 0.0 }
 0xbb5   : > { %v4155_v25 = vsel %vm863_vm1, %v4141_v3, 0.0 }
 0xbb6   : > { %v4146_v30 = vadd.f32 %v4145_v34, %v4144_v32 }
 0xbb8   : > { %v4148_v10 = vadd.f32 %v4147_v1, %v4146_v30 }
 0xbba   : > { %v4150_v53 = vadd.f32 %v4149_v51, %v4148_v10 }
 0xbbc   : > { %v4152_v36 = vadd.f32 %v4151_v55, %v4150_v53 }
 0xbbe   : > { %v4154_v52 = vadd.f32 %v4153_v41, %v4152_v36 }
 0xbc0   : > { %v4156_v39 = vadd.f32 %v4155_v25, %v4154_v52 }
 0xbc2   : > { %v4157_v13 = vrot.slane %v4156_v39, 4 }
 0xbc4   : > { %v4158_v12 = vadd.f32 %v4157_v13, %v4156_v39  ;;  %v8106_v13 = vld [vmem:[%s8447_s22] ss:$0 sm:$0xff] }
 0xbc6   : > { %v4159_v40 = vrot.slane %v4158_v12, 2 }
 0xbc8   : > { %v4160_v47 = vadd.f32 %v4159_v40, %v4158_v12 }
 0xbca   : > { %v4161_v48 = vrot.slane %v4160_v47, 1 }
 0xbcc   : > { %v4162_v62 = vadd.f32 %v4161_v48, %v4160_v47 }
 0xbce   : > { %6412 = vmatmul.mubr.msk.f32.vlgmr.msra.gmra.mxu1 %vm863_vm1, %v4162_v62 }
 0xbcf   : > { %6420 = vmatpush3.bf16.msra.mxu1 %v6605_v43 }
 0xbd0   : > { %6439 = vmatprep.subr.bf16.mxu1 %v6607_v2 }
 0xc8e   : > { %v4232_v23 = vpop.f32.mrf.mxu1 }
 0xc8f   : > { %v4236_v57 = vmul.f32 0.0078125, %v4232_v23 }
 0xc90   : > { %v6413_v7 = vpop.f32.mrf.mxu1 }
 0xc91   : > { %v4237_v49 = vadd.f32 1e-05, %v4236_v57 }
 0xc93   : > { %6679 = vrsqrt.f32 %v4237_v49 }
 0xca0   : > { %v6680_v27 = vpop.eup %6679 }
 0xca1   : > { %6417 = vmatmul.mubr.msk.f32.vlgmr.msra.gmra.mxu0 %vm8649_vm2, %v6680_v27  ;;  %v5873_v27 = vld [vmem:[%s8448_s23] ss:$0 sm:$0xff]  ;;  %vm8663_vm2 = vmmov %vm8647_vm0 }
 0xca2   : > { %6430 = vmatpush3.bf16.msra.mxu0 %v6606_v18 }
 0xca3   : > { %6449 = vmatprep.subr.bf16.mxu0 %v6608_v20 }
 0xd61   : > { %v4308_v14 = vpop.f32.mrf.mxu0 }
 0xd62   : > { %v4315_v56 = vrot.slane %v4308_v14, %v8648_v4 }
 0xd63   : > { %v6418_v44 = vpop.f32.mrf.mxu0 }
 0xd64   : > { %v4316_v38 = vmul.f32 %v4315_v56, %v4126_v29  ;;  %v4317_v8 = vmul.f32 %v4315_v56, %v4127_v42  ;;  %v4318_v9 = vmul.f32 %v4315_v56, %v4128_v16  ;;  %v4319_v17 = vmul.f32 %v4315_v56, %v4129_v28 }
 0xd65   : > { %v4320_v54 = vmul.f32 %v4315_v56, %v4130_v22  ;;  %v4321_v60 = vmul.f32 %v4315_v56, %v4131_v61  ;;  %v4322_v50 = vmul.f32 %v4315_v56, %v4132_v37  ;;  %v4323_v34 = vmul.f32 %v4315_v56, %v4133_v45  ;;  %v6609_v61 = vld [vmem:[%s8445_s20 + $0x8] sm:$0xff]  }
 0xd66   : > { %v4330_v21 = vmul.f32 %v5865_v46, %v4316_v38  ;;  %v4331_v0 = vmul.f32 %v5865_v46, %v4317_v8  ;;  %v4332_v24 = vmul.f32 %v5865_v46, %v4318_v9  ;;  %v4333_v35 = vmul.f32 %v5865_v46, %v4319_v17  ;;  %v6610_v37 = vld [vmem:[%s8446_s21 + $0x8] sm:$0xff]  }
 0xd67   : > { %v4334_v4 = vmul.f32 %v5865_v46, %v4320_v54  ;;  %v4335_v32 = vmul.f32 %v5865_v46, %v4321_v60  ;;  %v4336_v59 = vmul.f32 %v5865_v46, %v4322_v50  ;;  %v4337_v51 = vmul.f32 %v5865_v46, %v4323_v34 }
 0xd68   : > { %v4344_v30 = vadd.f32 %v5866_v31, %v4330_v21  ;;  %v4345_v5 = vadd.f32 %v5866_v31, %v4331_v0  ;;  %v4346_v29 = vadd.f32 %v5866_v31, %v4332_v24  ;;  %v4347_v42 = vadd.f32 %v5866_v31, %v4333_v35  ;;  %v8136_v35 = vld [vmem:[%s8447_s22 + $0x1] ss:$0 sm:$0xff] }
 0xd69   : > { %v4348_v16 = vadd.f32 %v5866_v31, %v4334_v4  ;;  %v4349_v28 = vadd.f32 %v5866_v31, %v4335_v32  ;;  %v4350_v45 = vadd.f32 %v5866_v31, %v4336_v59  ;;  %v4351_v53 = vadd.f32 %v5866_v31, %v4337_v51 }
 0xd6a   : > { %v4352_v1 = vpack.c.bf16 %v4345_v5, %v4344_v30  ;;  %v4353_v10 = vpack.c.bf16 %v4347_v42, %v4346_v29 }
 0xd6b   : > { %v4354_v22 = vpack.c.bf16 %v4349_v28, %v4348_v16  ;;  %v4355_v3 = vpack.c.bf16 %v4351_v53, %v4350_v45 }
 0xd6c   : > { %6421 = vmatprep.mubr.msk.bf16.mxu1 %vm863_vm1, %v4352_v1  ;;  %6431 = vmatprep.mubr.msk.bf16.mxu0 %vm863_vm1, %v4352_v1 }
 0xd6d   : > { %6422 = vmatmul.mubr.msk.bf16.vlgmr.msra.gmra.mxu1 %vm863_vm1, %v4353_v10  ;;  %6432 = vmatmul.mubr.msk.bf16.vlgmr.msra.gmra.mxu0 %vm863_vm1, %v4353_v10 }
 0xd6e   : > { %6440 = vmatpush3.bf16.msra.mxu1 %v6607_v2  ;;  %6425 = vmatprep.mubr.msk.bf16.mxu1 %vm863_vm1, %v4354_v22 }
 0xd6f   : > { %6435 = vmatprep.mubr.msk.bf16.mxu0 %vm863_vm1, %v4354_v22  ;;  %6450 = vmatpush3.bf16.msra.mxu0 %v6608_v20 }
 0xd70   : > { %6459 = vmatprep.subr.bf16.mxu1 %v6609_v61  ;;  %6469 = vmatprep.subr.bf16.mxu0 %v6610_v37 }
 0xd75   : > { %6426 = vmatmul.mubr.msk.bf16.gmra.mxu1 %vm863_vm1, %v4355_v3  ;;  %6436 = vmatmul.mubr.msk.bf16.gmra.mxu0 %vm863_vm1, %v4355_v3 }
 0xd76   : > { %6441 = vmatprep.mubr.msk.bf16.mxu1 %vm863_vm1, %v4352_v1  ;;  %6451 = vmatprep.mubr.msk.bf16.mxu0 %vm863_vm1, %v4352_v1 }
 0xd7d   : > { %6442 = vmatmul.mubr.msk.bf16.vlgmr.msra.gmra.mxu1 %vm863_vm1, %v4353_v10  ;;  %6452 = vmatmul.mubr.msk.bf16.vlgmr.msra.gmra.mxu0 %vm863_vm1, %v4353_v10 }
 0xd7e   : > { %6460 = vmatpush3.bf16.msra.mxu1 %v6609_v61  ;;  %6445 = vmatprep.mubr.msk.bf16.mxu1 %vm863_vm1, %v4354_v22 }
 0xd7f   : > { %6455 = vmatprep.mubr.msk.bf16.mxu0 %vm863_vm1, %v4354_v22  ;;  %6470 = vmatpush3.bf16.msra.mxu0 %v6610_v37 }
 0xd85   : > { %6446 = vmatmul.mubr.msk.bf16.gmra.mxu1 %vm863_vm1, %v4355_v3  ;;  %6456 = vmatmul.mubr.msk.bf16.gmra.mxu0 %vm863_vm1, %v4355_v3 }
 0xd86   : > { %6461 = vmatprep.mubr.msk.bf16.mxu1 %vm863_vm1, %v4352_v1  ;;  %6471 = vmatprep.mubr.msk.bf16.mxu0 %vm863_vm1, %v4352_v1 }
 0xd8d   : > { %6462 = vmatmul.mubr.msk.bf16.vlgmr.msra.gmra.mxu1 %vm863_vm1, %v4353_v10  ;;  %6472 = vmatmul.mubr.msk.bf16.vlgmr.msra.gmra.mxu0 %vm863_vm1, %v4353_v10 }
 0xd8e   : > { %6465 = vmatprep.mubr.msk.bf16.mxu1 %vm863_vm1, %v4354_v22  ;;  %6475 = vmatprep.mubr.msk.bf16.mxu0 %vm863_vm1, %v4354_v22 }
 0xd95   : > { %6466 = vmatmul.mubr.msk.bf16.gmra.mxu1 %vm863_vm1, %v4355_v3  ;;  %6476 = vmatmul.mubr.msk.bf16.gmra.mxu0 %vm863_vm1, %v4355_v3 }
 0xe2d   : > { %v8099_v55 = vpop.f32.mrf.mxu1  ;;  %v6433_v36 = vpop.f32.mrf.mxu0 }
 0xe2e   : > { %v4506_v30 = vadd.f32 %v6433_v36, %v5873_v27 }
 0xe2f   : > { %v4417_v41 = vpop.f32.mrf.mxu1  ;;  %v4497_v52 = vpop.f32.mrf.mxu0 }
 0xe30   : > { %v4418_v47 = vadd.f32 %v8106_v13, %v4417_v41  ;;  %v4498_v61 = vadd.f32 %v5873_v27, %v4497_v52 }
 0xe31   : > { %v8101_v25 = vpop.f32.mrf.mxu1  ;;  %v6434_v39 = vpop.f32.mrf.mxu0 }
 0xe32   : > { %v4509_v24 = vadd.f32 %v6434_v39, %v5873_v27  ;;  %v5879_v39 = vld [vmem:[%s8449_s24] ss:$0 sm:$0xff] }
 0xe33   : > { %v4420_v12 = vpop.f32.mrf.mxu1  ;;  %v4500_v40 = vpop.f32.mrf.mxu0 }
 0xe34   : > { %v4421_v48 = vadd.f32 %v8106_v13, %v4420_v12  ;;  %v4863_v42 = vpack.c.bf16 %v4509_v24, %v4506_v30  ;;  %v4501_v59 = vadd.f32 %v5873_v27, %v4500_v40 }
 0xe35   : > { %v8110_v62 = vpop.f32.mrf.mxu1  ;;  %v6437_v23 = vpop.f32.mrf.mxu0 }
 0xe36   : > { %v4854_v57 = vpack.c.bf16 %v4421_v48, %v4418_v47  ;;  %v4522_v2 = vadd.f32 %v6437_v23, %v5873_v27  ;;  %v4862_v45 = vpack.c.bf16 %v4501_v59, %v4498_v61  ;;  %v4886_v36 = vsel %vm8657_vm9, %v4863_v42, 0  ;;  %vm8671_vm9 = vmmov %vm8647_vm0 }
 0xe37   : > { %v8112_v7 = vpop.f32.mrf.mxu1  ;;  %v4513_v49 = vpop.f32.mrf.mxu0 }
 0xe38   : > { %6487 = vmatprep.mubr.msk.bf16.mxu1 %vm8650_vm8, %v4854_v57  ;;  %v4514_v44 = vadd.f32 %v5873_v27, %v4513_v49  ;;  %vm8664_vm8 = vmmov %vm8647_vm0 }
 0xe39   : > { %v8118_v43 = vpop.f32.mrf.mxu1  ;;  %v6438_v18 = vpop.f32.mrf.mxu0 }
 0xe3a   : > { %v4525_v20 = vadd.f32 %v6438_v18, %v5873_v27  ;;  %v4429_v18 = vadd.f32 %v8101_v25, %v8106_v13  ;;  %v4434_v25 = vadd.f32 %v8106_v13, %v8112_v7  ;;  %v4445_v7 = vadd.f32 %v8118_v43, %v8106_v13 }
 0xe3b   : > { %v4436_v14 = vpop.f32.mrf.mxu1  ;;  %v4516_v56 = vpop.f32.mrf.mxu0 }
 0xe3c   : > { %v4865_v46 = vpack.c.bf16 %v4525_v20, %v4522_v2  ;;  %v4517_v38 = vadd.f32 %v5873_v27, %v4516_v56  ;;  %v4883_v27 = vsel %vm8659_vm13, %v4862_v45, 0  ;;  %v5897_v2 = vld [vmem:[%s8448_s23 + $0x1] ss:$0 sm:$0xff]  ;;  %v4437_v56 = vadd.f32 %v8106_v13, %v4436_v14 }
 0xe3d   : > { %v8120_v8 = vpop.f32.mrf.mxu1  ;;  %v8122_v9 = vpop.f32.mrf.mxu0  ;;  %vm5048_vm13 = vcmask 523264  }
 0xe3e   : > { %v4864_v17 = vpack.c.bf16 %v4517_v38, %v4514_v44  ;;  %6563 = vmatprep.subr.msk.bf16.mxu1 %vm8651_vm12, %v4865_v46  ;;  %v4892_v60 = vsel %vm8652_vm14, %v4865_v46, 0  ;;  %v4426_v38 = vadd.f32 %v8099_v55, %v8106_v13  ;;  %vm8665_vm12 = vmmov %vm8647_vm0 }
 0xe3f   : > { %v8125_v31 = vpop.f32.mrf.mxu1  ;;  %v4659_v54 = vpop.f32.mrf.mxu0  ;;  %6480 = vmatpush3.bf16.xpose.msra.mxu1 %v4892_v60  ;;  %vm8666_vm14 = vmmov %vm8647_vm0 }
 0xe40   : > { %6564 = vmatprep.subr.msk.bf16.mxu1 %vm8653_vm15, %v4864_v17  ;;  %v4660_v50 = vadd.f32 %v8136_v35, %v4659_v54  ;;  %v4889_v1 = vsel %vm8654_vm3, %v4864_v17, 0  ;;  %vm8667_vm15 = vmmov %vm8647_vm0 }
 0xe41   : > { %v8129_v21 = vpop.f32.mrf.mxu1  ;;  %v8131_v0 = vpop.f32.mrf.mxu0  ;;  %vm8668_vm3 = vmmov %vm8647_vm0 }
 0xe42   : > { %v4589_v55 = vadd.f32 %v8129_v21, %v5879_v39  ;;  %v4442_v21 = vadd.f32 %v8110_v62, %v8106_v13 }
 0xe43   : > { %v8138_v4 = vpop.f32.mrf.mxu1  ;;  %v4662_v32 = vpop.f32.mrf.mxu0 }
 0xe44   : > { %v4663_v34 = vadd.f32 %v8136_v35, %v4662_v32 }
 0xe45   : > { %v6447_v5 = vpop.f32.mrf.mxu1  ;;  %v8142_v16 = vpop.f32.mrf.mxu0 }
 0xe46   : > { %v4858_v29 = vpack.c.bf16 %v4663_v34, %v4660_v50  ;;  %v4602_v47 = vadd.f32 %v6447_v5, %v5879_v39  ;;  %v4855_v34 = vpack.c.bf16 %v4429_v18, %v4426_v38  ;;  %v4856_v5 = vpack.c.bf16 %v4437_v56, %v4434_v25 }
 0xe47   : > { %v4593_v28 = vpop.f32.mrf.mxu1  ;;  %6482 = vmatpush3.bf16.xpose.msra.mxu1 %v4889_v1  ;;  %v8147_v51 = vpop.f32.mrf.mxu0 }
 0xe48   : > { %6503 = vmatprep.mubr.msk.bf16.mxu0 %vm8655_vm4, %v4858_v29  ;;  %6565 = vmatprep.subr.msk.bf16.mxu1 %vm8656_vm10, %v4863_v42  ;;  %v4594_v30 = vadd.f32 %v5879_v39, %v4593_v28  ;;  %v4586_v28 = vadd.f32 %v8120_v8, %v5879_v39  ;;  %vm8669_vm4 = vmmov %vm8647_vm0 }
 0xe49   : > { %v6448_v10 = vpop.f32.mrf.mxu1  ;;  %v8149_v53 = vpop.f32.mrf.mxu0  ;;  %vm8670_vm10 = vmmov %vm8647_vm0 }
 0xe4a   : > { %v4605_v12 = vadd.f32 %v6448_v10, %v5879_v39  ;;  %v5234_v59 = vpack.c.bf16 %v4589_v55, %v4586_v28 }
 0xe4b   : > { %v4596_v22 = vpop.f32.mrf.mxu1  ;;  %v8158_v40 = vpop.f32.mrf.mxu0 }
 0xe4c   : > { %v5236_v23 = vpack.c.bf16 %v4605_v12, %v4602_v47  ;;  %v4597_v17 = vadd.f32 %v5879_v39, %v4596_v22  ;;  %v4581_v22 = vadd.f32 %v5879_v39, %v8138_v4  ;;  %v4578_v12 = vadd.f32 %v5879_v39, %v8125_v31  ;;  %v5906_v39 = vld [vmem:[%s8449_s24 + $0x1] ss:$0 sm:$0xff] }
 0xe4d   : > { %v6463_v37 = vpop.f32.mrf.mxu1  ;;  %v8160_v57 = vpop.f32.mrf.mxu0 }
 0xe4e   : > { %v5235_v42 = vpack.c.bf16 %v4597_v17, %v4594_v30  ;;  %v5233_v47 = vpack.c.bf16 %v4581_v22, %v4578_v12 }
 0xe4f   : > { %v8151_v3 = vpop.f32.mrf.mxu1  ;;  %6484 = vmatpush3.bf16.xpose.msra.mxu1 %v4886_v36  ;;  %v8171_v54 = vpop.f32.mrf.mxu0  ;;  %v4857_v36 = vpack.c.bf16 %v4445_v7, %v4442_v21 }
 0xe50   : > { %6566 = vmatprep.subr.msk.bf16.mxu1 %vm8658_vm7, %v4862_v45  ;;  %v4750_v45 = vadd.f32 %v6463_v37, %v5897_v2  ;;  %v4742_v4 = vadd.f32 %v5897_v2, %v8151_v3  ;;  %v4671_v3 = vadd.f32 %v8131_v0, %v8136_v35  ;;  %v4687_v0 = vadd.f32 %v8149_v53, %v8136_v35  ;;  %vm8672_vm7 = vmmov %vm8647_vm0 }
 0xe51   : > { %v6464_v41 = vpop.f32.mrf.mxu1  ;;  %v6474_v1 = vpop.f32.mrf.mxu0 }
 0xe52   : > { %v4753_v10 = vadd.f32 %v6464_v41, %v5897_v2 }
 0xe53   : > { %v4744_v52 = vpop.f32.mrf.mxu1  ;;  %v4826_v61 = vpop.f32.mrf.mxu0 }
 0xe54   : > { %v4867_v43 = vpack.c.bf16 %v4753_v10, %v4750_v45  ;;  %v4745_v13 = vadd.f32 %v5897_v2, %v4744_v52 }
 0xe55   : > { %v6467_v48 = vpop.f32.mrf.mxu1 }
 0xe56   : > { %v4766_v44 = vadd.f32 %v6467_v48, %v5897_v2  ;;  %v6477_v48 = vpop.f32.mrf.mxu0  ;;  %v4866_v37 = vpack.c.bf16 %v4745_v13, %v4742_v4  ;;  %v4975_v31 = vsel %vm8667_vm15, %v4867_v43, 0  ;;  %vm8679_vm15 = vmmov %vm8647_vm0 }
 0xe57   : > { %v4757_v49 = vpop.f32.mrf.mxu1  ;;  %6486 = vmatpush3.bf16.xpose.msra.mxu1 %v4883_v27 }
 0xe58   : > { %6511 = vmatprep.subr.bf16.mxu1 %v5236_v23  ;;  %v4758_v24 = vadd.f32 %v5897_v2, %v4757_v49  ;;  %v4839_v62 = vpop.f32.mrf.mxu0  ;;  %v4848_v49 = vadd.f32 %v6477_v48, %v5906_v39  ;;  %v4972_v52 = vsel %vm8669_vm4, %v4866_v37, 0 }
 0xe59   : > { %v6468_v20 = vpop.f32.mrf.mxu1  ;;  %v4840_v38 = vadd.f32 %v5906_v39, %v4839_v62 }
 0xe5a   : > { %v4769_v46 = vadd.f32 %v6468_v20, %v5897_v2  ;;  %v6478_v41 = vpop.f32.mrf.mxu0  ;;  %v4668_v20 = vadd.f32 %v8122_v9, %v8136_v35  ;;  %v4684_v9 = vadd.f32 %v8142_v16, %v8136_v35 }
 0xe5b   : > { %v4760_v60 = vpop.f32.mrf.mxu1 }
 0xe5c   : > { %v4869_v32 = vpack.c.bf16 %v4769_v46, %v4766_v44  ;;  %v4761_v50 = vadd.f32 %v5897_v2, %v4760_v60  ;;  %v4842_v18 = vpop.f32.mrf.mxu0  ;;  %v4679_v2 = vadd.f32 %v8136_v35, %v8158_v40  ;;  %v4676_v44 = vadd.f32 %v8136_v35, %v8147_v51 }
 0xe5d   : > { %v4843_v56 = vadd.f32 %v5906_v39, %v4842_v18  ;;  %v4859_v46 = vpack.c.bf16 %v4671_v3, %v4668_v20  ;;  %v4835_v60 = vadd.f32 %v6474_v1, %v5906_v39  ;;  %v4832_v40 = vadd.f32 %v8160_v57, %v5906_v39 }
 0xe5e   : > { %v4868_v29 = vpack.c.bf16 %v4761_v50, %v4758_v24  ;;  %6567 = vmatprep.subr.msk.bf16.mxu0 %vm8660_vm5, %v4869_v32  ;;  %v4981_v14 = vsel %vm8661_vm6, %v4869_v32, 0  ;;  %6488 = vmatmul.mubr.msk.bf16.vlgmr.msra.gmra.mxu1 %vm8662_vm11, %v4855_v34  ;;  %v4860_v17 = vpack.c.bf16 %v4679_v2, %v4676_v44  ;;  %v4827_v24 = vadd.f32 %v5906_v39, %v4826_v61  ;;  %vm8673_vm6 = vmmov %vm8647_vm0 }
 0xe5f   : > { %6496 = vmatpush3.bf16.xpose.msra.mxu0 %v4981_v14  ;;  %6491 = vmatprep.mubr.msk.bf16.mxu1 %vm8647_vm0, %v4856_v5  ;;  %v5239_v25 = vpack.c.bf16 %v4843_v56, %v4840_v38  ;;  %v5238_v51 = vpack.c.bf16 %v4835_v60, %v4832_v40  ;;  %v4861_v32 = vpack.c.bf16 %v4687_v0, %v4684_v9  ;;  %vm5417_vm5 = vcmask 1043456   ;;  %vm8674_vm11 = vmmov %vm8647_vm0 }
 0xe60   : > { %6512 = vmatpush3.bf16.msra.mxu1 %v5236_v23  ;;  %6568 = vmatprep.subr.msk.bf16.mxu0 %vm8663_vm2, %v4868_v29  ;;  %v4978_v8 = vsel %vm8664_vm8, %v4868_v29, 0  ;;  %v4851_v23 = vadd.f32 %v6478_v41, %v5906_v39  ;;  %v4824_v50 = vadd.f32 %v5906_v39, %v8171_v54  ;;  %vm8675_vm2 = vmmov %vm8647_vm0 }
 0xe61   : > { %6513 = vmatprep.subr.bf16.mxu1 %v5235_v42  ;;  %vm8676_vm8 = vmmov %vm8647_vm0 }
 0xe62   : > { %v5240_v27 = vpack.c.bf16 %v4851_v23, %v4848_v49  ;;  %v5237_v34 = vpack.c.bf16 %v4827_v24, %v4824_v50 }
 0xe64   : > { %6514 = vmatpush3.bf16.msra.mxu1 %v5235_v42 }
 0xe65   : > { %6515 = vmatprep.subr.bf16.mxu1 %v5234_v59 }
 0xe66   : > { %6492 = vmatmul.mubr.msk.bf16.gmra.mxu1 %vm8665_vm12, %v4857_v36  ;;  %vm8677_vm12 = vmmov %vm8647_vm0 }
 0xe67   : > { %6498 = vmatpush3.bf16.xpose.msra.mxu0 %v4978_v8 }
 0xe68   : > { %6516 = vmatpush3.bf16.msra.mxu1 %v5234_v59  ;;  %6569 = vmatprep.subr.msk.bf16.mxu0 %vm8666_vm14, %v4867_v43  ;;  %vm8678_vm14 = vmmov %vm8647_vm0 }
 0xe69   : > { %6517 = vmatprep.subr.bf16.mxu1 %v5233_v47 }
 0xe6c   : > { %6518 = vmatpush3.bf16.msra.mxu1 %v5233_v47 }
 0xe6f   : > { %6500 = vmatpush3.bf16.xpose.msra.mxu0 %v4975_v31 }
 0xe70   : > { %6570 = vmatprep.subr.msk.bf16.mxu0 %vm8668_vm3, %v4866_v37 }
 0xe77   : > { %6502 = vmatpush3.bf16.xpose.msra.mxu0 %v4972_v52 }
 0xe78   : > { %6527 = vmatprep.subr.bf16.mxu0 %v5240_v27 }
 0xe7e   : > { %6504 = vmatmul.mubr.msk.bf16.vlgmr.msra.gmra.mxu0 %vm8670_vm10, %v4859_v46 }
 0xe7f   : > { %6507 = vmatprep.mubr.msk.bf16.mxu0 %vm8671_vm9, %v4860_v17  ;;  %6528 = vmatpush3.bf16.msra.mxu0 %v5240_v27 }
 0xe80   : > { %6529 = vmatprep.subr.bf16.mxu0 %v5239_v25 }
 0xe83   : > { %6530 = vmatpush3.bf16.msra.mxu0 %v5239_v25 }
 0xe84   : > { %6531 = vmatprep.subr.bf16.mxu0 %v5238_v51 }
 0xe86   : > { %6508 = vmatmul.mubr.msk.bf16.gmra.mxu0 %vm8672_vm7, %v4861_v32 }
 0xe87   : > { %6532 = vmatpush3.bf16.msra.mxu0 %v5238_v51 }
 0xe88   : > { %6533 = vmatprep.subr.bf16.mxu0 %v5237_v34 }
 0xe8b   : > { %6534 = vmatpush3.bf16.msra.mxu0 %v5237_v34 }
 0xf1e   : > { %v6489_v53 = vpop.f32.mrf.mxu1 }
 0xf1f   : > { %v5055_v57 = vsel %vm5048_vm13, %v6489_v53, -inf }
 0xf20   : > { %5056 = vmax.xlane.f32.xlu1 %v5055_v57  ;;  %v4928_v30 = vpop.f32.mrf.mxu1 }
 0xf21   : > { %v5049_v35 = vsel %vm5048_vm13, %v4928_v30, -inf }
 0xf22   : > { %5050 = vmax.xlane.f32.xlu0 %v5049_v35  ;;  %v6490_v16 = vpop.f32.mrf.mxu1 }
 0xf23   : > { %v5058_v54 = vsel %vm5048_vm13, %v6490_v16, -inf }
 0xf24   : > { %v4931_v5 = vpop.f32.mrf.mxu1 }
 0xf25   : > { %v5052_v29 = vsel %vm5048_vm13, %v4931_v5, -inf }
 0xf26   : > { %5059 = vmax.xlane.f32.xlu0 %v5058_v54  ;;  %5053 = vmax.xlane.f32.xlu1 %v5052_v29  ;;  %v8219_v14 = vpop.f32.mrf.mxu1 }
 0xf27   : > { %v5067_v42 = vsel %vm5048_vm13, %v8219_v14, -inf }
 0xf28   : > { %v4944_v55 = vpop.f32.mrf.mxu1 }
 0xf29   : > { %v5061_v28 = vsel %vm5048_vm13, %v4944_v55, -inf }
 0xf2a   : > { %5068 = vmax.xlane.f32.xlu1 %v5067_v42  ;;  %v8223_v1 = vpop.f32.mrf.mxu1 }
 0xf2b   : > { %v5070_v4 = vsel %vm5048_vm13, %v8223_v1, -inf }
 0xf2c   : > { %v4947_v7 = vpop.f32.mrf.mxu1 }
 0xf2d   : > { %v5064_v10 = vsel %vm5048_vm13, %v4947_v7, -inf }
 0xf2e   : > { %5062 = vmax.xlane.f32.xlu1 %v5061_v28  ;;  %5065 = vmax.xlane.f32.xlu0 %v5064_v10 }
 0xf3e   : > { %v8227_v21 = vpop.f32.mrf.mxu0 }
 0xf3f   : > { %v5079_v59 = vsel %vm5048_vm13, %v8227_v21, -inf }
 0xf40   : > { %v8231_v22 = vpop.f32.mrf.mxu0  ;;  %5080 = vmax.xlane.f32.xlu1 %v5079_v59 }
 0xf41   : > { %v5073_v61 = vsel %vm5048_vm13, %v8231_v22, -inf }
 0xf42   : > { %v8235_v45 = vpop.f32.mrf.mxu0  ;;  %5074 = vmax.xlane.f32.xlu0 %v5073_v61 }
 0xf43   : > { %v5082_v12 = vsel %vm5048_vm13, %v8235_v45, -inf }
 0xf44   : > { %v8237_v36 = vpop.f32.mrf.mxu0 }
 0xf45   : > { %v5076_v48 = vsel %vm5048_vm13, %v8237_v36, -inf }
 0xf46   : > { %v8241_v43 = vpop.f32.mrf.mxu0  ;;  %5083 = vmax.xlane.f32.xlu0 %v5082_v12 }
 0xf47   : > { %v5091_v62 = vsel %vm5048_vm13, %v8241_v43, -inf }
 0xf48   : > { %v8243_v8 = vpop.f32.mrf.mxu0 }
 0xf49   : > { %v5085_v47 = vsel %vm5048_vm13, %v8243_v8, -inf }
 0xf4a   : > { %v8249_v13 = vpop.f32.mrf.mxu0  ;;  %5086 = vmax.xlane.f32.xlu1 %v5085_v47  ;;  %5077 = vmax.xlane.f32.xlu0 %v5076_v48 }
 0xf4b   : > { %v5094_v41 = vsel %vm5048_vm13, %v8249_v13, -inf }
 0xf4c   : > { %v8255_v37 = vpop.f32.mrf.mxu0 }
 0xf4d   : > { %v5088_v31 = vsel %vm5048_vm13, %v8255_v37, -inf }
 0xf4e   : > { %5092 = vmax.xlane.f32.xlu1 %v5091_v62  ;;  %5071 = vmax.xlane.f32.xlu0 %v5070_v4 }
 0xf52   : > { %5089 = vmax.xlane.f32.xlu0 %v5088_v31 }
 0xf56   : > { %5095 = vmax.xlane.f32.xlu0 %v5094_v41 }
 0xfa9   : > { %v5057_v39 = vpop.xlane.xlu1 %5056 }
 0xfaa   : > { %v5099_v23 = vsub.f32 %v6489_v53, %v5057_v39 }
 0xfab   : > { %v5051_v49 = vpop.xlane.xlu0 %5050 }
 0xfac   : > { %v5117_v27 = vmul.f32 1.442695, %v5099_v23  ;;  %v5097_v52 = vsub.f32 %v4928_v30, %v5051_v49 }
 0xfae   : > { %6681 = vpow2.f32 %v5117_v27  ;;  %v5113_v18 = vmul.f32 1.442695, %v5097_v52 }
 0xfaf   : > { %v5060_v3 = vpop.xlane.xlu0 %5059  ;;  %v5054_v2 = vpop.xlane.xlu1 %5053 }
 0xfb0   : > { %6683 = vpow2.f32 %v5113_v18  ;;  %v5100_v20 = vsub.f32 %v6490_v16, %v5060_v3  ;;  %v5098_v56 = vsub.f32 %v4931_v5, %v5054_v2 }
 0xfb2   : > { %v5119_v44 = vmul.f32 1.442695, %v5100_v20  ;;  %v5115_v46 = vmul.f32 1.442695, %v5098_v56 }
 0xfb3   : > { %v5069_v38 = vpop.xlane.xlu1 %5068 }
 0xfb4   : > { %6685 = vpow2.f32 %v5119_v44  ;;  %v5103_v29 = vsub.f32 %v8219_v14, %v5069_v38 }
 0xfb5   : > { %6687 = vpow2.f32 %v5115_v46 }
 0xfb6   : > { %v5125_v61 = vmul.f32 1.442695, %v5103_v29 }
 0xfb7   : > { %v5063_v17 = vpop.xlane.xlu1 %5062  ;;  %v5066_v60 = vpop.xlane.xlu0 %5065 }
 0xfb8   : > { %v5101_v25 = vsub.f32 %v4944_v55, %v5063_v17  ;;  %v5102_v0 = vsub.f32 %v4947_v7, %v5066_v60 }
 0xfba   : > { %v5121_v40 = vmul.f32 1.442695, %v5101_v25  ;;  %v5123_v9 = vmul.f32 1.442695, %v5102_v0 }
 0xfbb   : > { %v8261_v51 = vpop.eup %6681 }
 0xfbc   : > { %6689 = vpow2.f32 %v5121_v40  ;;  %v5151_v24 = vsel %vm5048_vm13, %v8261_v51, 0.0 }
 0xfbd   : > { %v8265_v32 = vpop.eup %6683  ;;  %6691 = vpow2.f32 %v5123_v9  ;;  %5152 = vadd.xlane.f32.xlu1 %v5151_v24 }
 0xfbe   : > { %v5145_v50 = vsel %vm5048_vm13, %v8265_v32, 0.0 }
 0xfc1   : > { %v8269_v34 = vpop.eup %6685  ;;  %5146 = vadd.xlane.f32.xlu1 %v5145_v50 }
 0xfc2   : > { %v5154_v53 = vsel %vm5048_vm13, %v8269_v34, 0.0  ;;  %v8273_v57 = vpop.eup %6687 }
 0xfc3   : > { %5155 = vadd.xlane.f32.xlu0 %v5154_v53  ;;  %v5148_v30 = vsel %vm5048_vm13, %v8273_v57, 0.0 }
 0xfc7   : > { %5149 = vadd.xlane.f32.xlu0 %v5148_v30 }
 0xfc9   : > { %v5081_v35 = vpop.xlane.xlu1 %5080  ;;  %v8277_v16 = vpop.eup %6689 }
 0xfca   : > { %v5107_v5 = vsub.f32 %v8227_v21, %v5081_v35  ;;  %v8280_v54 = vpop.eup %6691  ;;  %v5157_v55 = vsel %vm5048_vm13, %v8277_v16, 0.0 }
 0xfcb   : > { %v5075_v42 = vpop.xlane.xlu0 %5074  ;;  %5158 = vadd.xlane.f32.xlu1 %v5157_v55  ;;  %v5160_v28 = vsel %vm5048_vm13, %v8280_v54, 0.0 }
 0xfcc   : > { %v5133_v7 = vmul.f32 1.442695, %v5107_v5  ;;  %v5105_v10 = vsub.f32 %v8231_v22, %v5075_v42  ;;  %5161 = vadd.xlane.f32.xlu0 %v5160_v28 }
 0xfce   : > { %6693 = vpow2.f32 %v5133_v7  ;;  %v5129_v59 = vmul.f32 1.442695, %v5105_v10 }
 0xfcf   : > { %v5084_v21 = vpop.xlane.xlu0 %5083 }
 0xfd0   : > { %6695 = vpow2.f32 %v5129_v59  ;;  %v5108_v12 = vsub.f32 %v8235_v45, %v5084_v21 }
 0xfd1   : > { %6697 = vpow2.f32 %v5125_v61 }
 0xfd2   : > { %v5135_v14 = vmul.f32 1.442695, %v5108_v12 }
 0xfd3   : > { %v5087_v47 = vpop.xlane.xlu1 %5086  ;;  %v5078_v48 = vpop.xlane.xlu0 %5077 }
 0xfd4   : > { %6699 = vpow2.f32 %v5135_v14  ;;  %v5109_v62 = vsub.f32 %v8243_v8, %v5087_v47  ;;  %v5106_v4 = vsub.f32 %v8237_v36, %v5078_v48 }
 0xfd6   : > { %v5137_v31 = vmul.f32 1.442695, %v5109_v62  ;;  %v5131_v41 = vmul.f32 1.442695, %v5106_v4 }
 0xfd7   : > { %v5093_v22 = vpop.xlane.xlu1 %5092  ;;  %v5072_v39 = vpop.xlane.xlu0 %5071 }
 0xfd8   : > { %6701 = vpow2.f32 %v5137_v31  ;;  %v5111_v23 = vsub.f32 %v8241_v43, %v5093_v22  ;;  %v5104_v49 = vsub.f32 %v8223_v1, %v5072_v39 }
 0xfd9   : > { %6703 = vpow2.f32 %v5131_v41 }
 0xfda   : > { %v5141_v45 = vmul.f32 1.442695, %v5111_v23  ;;  %v5127_v27 = vmul.f32 1.442695, %v5104_v49 }
 0xfdb   : > { %v8293_v52 = vpop.eup %6693  ;;  %v5090_v18 = vpop.xlane.xlu0 %5089 }
 0xfdc   : > { %6705 = vpow2.f32 %v5141_v45  ;;  %v5110_v8 = vsub.f32 %v8255_v37, %v5090_v18  ;;  %v5175_v36 = vsel %vm5048_vm13, %v8293_v52, 0.0 }
 0xfdd   : > { %v8298_v3 = vpop.eup %6695  ;;  %6707 = vpow2.f32 %v5127_v27  ;;  %5176 = vadd.xlane.f32.xlu1 %v5175_v36 }
 0xfde   : > { %v5139_v2 = vmul.f32 1.442695, %v5110_v8  ;;  %v8300_v20 = vpop.eup %6697  ;;  %v5169_v56 = vsel %vm5048_vm13, %v8298_v3, 0.0 }
 0xfdf   : > { %v5096_v43 = vpop.xlane.xlu0 %5095  ;;  %v5163_v38 = vsel %vm5048_vm13, %v8300_v20, 0.0 }
 0xfe0   : > { %6709 = vpow2.f32 %v5139_v2  ;;  %v5112_v1 = vsub.f32 %v8249_v13, %v5096_v43 }
 0xfe1   : > { %v8305_v44 = vpop.eup %6699  ;;  %5170 = vadd.xlane.f32.xlu1 %v5169_v56 }
 0xfe2   : > { %v5143_v37 = vmul.f32 1.442695, %v5112_v1  ;;  %v5178_v46 = vsel %vm5048_vm13, %v8305_v44, 0.0 }
 0xfe3   : > { %5179 = vadd.xlane.f32.xlu0 %v5178_v46 }
 0xfe4   : > { %6711 = vpow2.f32 %v5143_v37 }
 0xfe5   : > { %v8311_v17 = vpop.eup %6701  ;;  %5164 = vadd.xlane.f32.xlu1 %v5163_v38 }
 0xfe6   : > { %v8313_v60 = vpop.eup %6703  ;;  %v5181_v25 = vsel %vm5048_vm13, %v8311_v17, 0.0 }
 0xfe7   : > { %v5172_v13 = vsel %vm5048_vm13, %v8313_v60, 0.0 }
 0xfe8   : > { %5173 = vadd.xlane.f32.xlu0 %v5172_v13 }
 0xfe9   : > { %v8319_v0 = vpop.eup %6705  ;;  %5182 = vadd.xlane.f32.xlu1 %v5181_v25 }
 0xfea   : > { %v8321_v40 = vpop.eup %6707  ;;  %v5187_v24 = vsel %vm5048_vm13, %v8319_v0, 0.0 }
 0xfeb   : > { %v5166_v9 = vsel %vm5048_vm13, %v8321_v40, 0.0 }
 0xfec   : > { %5167 = vadd.xlane.f32.xlu0 %v5166_v9 }
 0xfed   : > { %v8327_v50 = vpop.eup %6709  ;;  %5188 = vadd.xlane.f32.xlu1 %v5187_v24 }
 0xfee   : > { %v5184_v53 = vsel %vm5048_vm13, %v8327_v50, 0.0 }
 0xff0   : > { %5185 = vadd.xlane.f32.xlu0 %v5184_v53 }
 0xff1   : > { %v8331_v30 = vpop.eup %6711 }
 0xff2   : > { %v5190_v35 = vsel %vm5048_vm13, %v8331_v30, 0.0 }
 0xff4   : > { %5191 = vadd.xlane.f32.xlu0 %v5190_v35 }
0x1046   : > { %v5153_v5 = vpop.xlane.xlu1 %5152 }
0x104a   : > { %v5147_v29 = vpop.xlane.xlu1 %5146 }
0x104c   : > { %v5156_v55 = vpop.xlane.xlu0 %5155 }
0x104d   : > { %6713 = vrcp.f32 %v5156_v55 }
0x104e   : > { %6715 = vrcp.f32 %v5147_v29 }
0x104f   : > { %6717 = vrcp.f32 %v5153_v5 }
0x1050   : > { %v5150_v42 = vpop.xlane.xlu0 %5149 }
0x1051   : > { %6719 = vrcp.f32 %v5150_v42 }
0x1054   : > { %v5159_v7 = vpop.xlane.xlu1 %5158 }
0x1055   : > { %6721 = vrcp.f32 %v5159_v7  ;;  %v5162_v28 = vpop.xlane.xlu0 %5161  ;;  %v5403_v7 = vld [vmem:[%s8450_s25] sm:$0xf] }
0x1056   : > { %6723 = vrcp.f32 %v5162_v28  ;;  %6571 = vmatprep.subr.msk.bf16.mxu1 %vm5417_vm5, %v5403_v7 }
0x105a   : > { %v6714_v10 = vpop.eup %6713 }
0x105b   : > { %v6716_v59 = vpop.eup %6715  ;;  %v5212_v12 = vmul.f32 %v6714_v10, %v8269_v34 }
0x105c   : > { %v6718_v61 = vpop.eup %6717  ;;  %v5209_v14 = vmul.f32 %v6716_v59, %v8265_v32 }
0x105d   : > { %v5211_v48 = vmul.f32 %v6718_v61, %v8261_v51 }
0x105e   : > { %v6720_v21 = vpop.eup %6719 }
0x105f   : > { %v5210_v47 = vmul.f32 %v6720_v21, %v8273_v57  ;;  %v5226_v31 = vpack.c.bf16 %v5212_v12, %v5211_v48 }
0x1061   : > { %v5225_v62 = vpack.c.bf16 %v5210_v47, %v5209_v14 }
0x1062   : > { %v6722_v4 = vpop.eup %6721 }
0x1063   : > { %v6724_v41 = vpop.eup %6723  ;;  %6519 = vmatprep.mubr.msk.bf16.mxu1 %vm5048_vm13, %v5225_v62  ;;  %v5213_v22 = vmul.f32 %v6722_v4, %v8277_v16 }
0x1064   : > { %6520 = vmatmul.mubr.msk.bf16.vlgmr.msra.gmra.mxu1 %vm5048_vm13, %v5226_v31  ;;  %v5214_v39 = vmul.f32 %v6724_v41, %v8280_v54 }
0x1066   : > { %v5177_v23 = vpop.xlane.xlu1 %5176  ;;  %v5227_v34 = vpack.c.bf16 %v5214_v39, %v5213_v22 }
0x1068   : > { %6523 = vmatprep.mubr.msk.bf16.mxu1 %vm5048_vm13, %v5227_v34 }
0x106a   : > { %v5171_v32 = vpop.xlane.xlu1 %5170 }
0x106c   : > { %v5180_v57 = vpop.xlane.xlu0 %5179 }
0x106d   : > { %6725 = vrcp.f32 %v5180_v57 }
0x106e   : > { %v5165_v49 = vpop.xlane.xlu1 %5164  ;;  %6727 = vrcp.f32 %v5171_v32 }
0x106f   : > { %6729 = vrcp.f32 %v5177_v23 }
0x1071   : > { %v5174_v51 = vpop.xlane.xlu0 %5173 }
0x1072   : > { %6731 = vrcp.f32 %v5174_v51  ;;  %v5183_v45 = vpop.xlane.xlu1 %5182 }
0x1073   : > { %6733 = vrcp.f32 %v5165_v49 }
0x1075   : > { %v5168_v27 = vpop.xlane.xlu0 %5167 }
0x1076   : > { %6735 = vrcp.f32 %v5168_v27  ;;  %v5189_v16 = vpop.xlane.xlu1 %5188 }
0x1077   : > { %6737 = vrcp.f32 %v5183_v45 }
0x1079   : > { %v5186_v18 = vpop.xlane.xlu0 %5185 }
0x107a   : > { %6739 = vrcp.f32 %v5186_v18  ;;  %v6726_v54 = vpop.eup %6725 }
0x107b   : > { %6741 = vrcp.f32 %v5189_v16  ;;  %v6728_v8 = vpop.eup %6727  ;;  %v5220_v1 = vmul.f32 %v6726_v54, %v8305_v44 }
0x107c   : > { %v6730_v2 = vpop.eup %6729  ;;  %v5217_v56 = vmul.f32 %v6728_v8, %v8298_v3 }
0x107d   : > { %v5192_v36 = vpop.xlane.xlu0 %5191  ;;  %v5219_v38 = vmul.f32 %v6730_v2, %v8293_v52 }
0x107e   : > { %6743 = vrcp.f32 %v5192_v36 }
0x107f   : > { %v6732_v43 = vpop.eup %6731  ;;  %v5230_v9 = vpack.c.bf16 %v5220_v1, %v5219_v38  ;;  %v5936_v1 = vld [vmem:[%s8451_s26] ss:$0 sm:$0xff] }
0x1080   : > { %v5218_v37 = vmul.f32 %v6732_v43, %v8313_v60  ;;  %v6734_v46 = vpop.eup %6733 }
0x1081   : > { %v5215_v24 = vmul.f32 %v6734_v46, %v8300_v20 }
0x1082   : > { %v5229_v13 = vpack.c.bf16 %v5218_v37, %v5217_v56 }
0x1083   : > { %v6736_v25 = vpop.eup %6735 }
0x1084   : > { %6535 = vmatprep.mubr.msk.bf16.mxu0 %vm5048_vm13, %v5229_v13  ;;  %v5216_v53 = vmul.f32 %v6736_v25, %v8321_v40  ;;  %v6738_v35 = vpop.eup %6737 }
0x1085   : > { %6536 = vmatmul.mubr.msk.bf16.vlgmr.msra.gmra.mxu0 %vm5048_vm13, %v5230_v9  ;;  %v5221_v3 = vmul.f32 %v6738_v35, %v8311_v17  ;;  %v5419_v17 = vsel %vm5417_vm5, %v5403_v7, 0 }
0x1086   : > { %v5228_v44 = vpack.c.bf16 %v5216_v53, %v5215_v24  ;;  %6544 = vmatpush3.bf16.msra.mxu1 %v5419_v17 }
0x1087   : > { %v6740_v5 = vpop.eup %6739 }
0x1088   : > { %6524 = vmatmul.mubr.msk.bf16.gmra.mxu1 %vm5048_vm13, %v5228_v44  ;;  %v5222_v52 = vmul.f32 %v6740_v5, %v8327_v50  ;;  %v6742_v60 = vpop.eup %6741  ;;  %v5404_v50 = vld [vmem:[%s8450_s25 + $0x4] sm:$0xf] }
0x1089   : > { %v5223_v42 = vmul.f32 %v6742_v60, %v8319_v0  ;;  %6572 = vmatprep.subr.msk.bf16.mxu0 %vm5417_vm5, %v5404_v50  ;;  %v5499_v0 = vsel %vm5417_vm5, %v5404_v50, 0 }
0x108a   : > { %v5231_v29 = vpack.c.bf16 %v5222_v52, %v5221_v3  ;;  %6554 = vmatpush3.bf16.msra.mxu0 %v5499_v0 }
0x108b   : > { %v6744_v55 = vpop.eup %6743 }
0x108c   : > { %v5224_v20 = vmul.f32 %v6744_v55, %v8331_v30  ;;  %6539 = vmatprep.mubr.msk.bf16.mxu0 %vm5048_vm13, %v5231_v29 }
0x108e   : > { %v5232_v40 = vpack.c.bf16 %v5224_v20, %v5223_v42 }
0x1090   : > { %6540 = vmatmul.mubr.msk.bf16.gmra.mxu0 %vm5048_vm13, %v5232_v40 }
0x1124   : > { %v6521_v30 = vpop.f32.mrf.mxu1 }
0x1126   : > { %v5287_v28 = vpop.f32.mrf.mxu1 }
0x1128   : > { %v6522_v10 = vpop.f32.mrf.mxu1 }
0x1129   : > { %v5396_v21 = vpack.c.bf16 %v6522_v10, %v6521_v30 }
0x112a   : > { %v5290_v59 = vpop.f32.mrf.mxu1 }
0x112b   : > { %v5395_v61 = vpack.c.bf16 %v5290_v59, %v5287_v28 }
0x112d   : > { %6545 = vmatprep.mubr.msk.bf16.mxu1 %vm8673_vm6, %v5395_v61 }
0x112e   : > { %6546 = vmatmul.mubr.msk.bf16.vlgmr.msra.gmra.mxu1 %vm8674_vm11, %v5396_v21 }
0x1145   : > { %v6537_v12 = vpop.f32.mrf.mxu0 }
0x1147   : > { %v5364_v14 = vpop.f32.mrf.mxu0 }
0x1148   : > { %v6525_v47 = vpop.f32.mrf.mxu1 }
0x1149   : > { %v6538_v48 = vpop.f32.mrf.mxu0 }
0x114a   : > { %v5303_v62 = vpop.f32.mrf.mxu1  ;;  %v5400_v22 = vpack.c.bf16 %v6538_v48, %v6537_v12 }
0x114b   : > { %v5367_v4 = vpop.f32.mrf.mxu0 }
0x114c   : > { %v5399_v31 = vpack.c.bf16 %v5367_v4, %v5364_v14  ;;  %v6526_v41 = vpop.f32.mrf.mxu1 }
0x114d   : > { %v5398_v34 = vpack.c.bf16 %v6526_v41, %v6525_v47 }
0x114e   : > { %v5306_v39 = vpop.f32.mrf.mxu1  ;;  %6555 = vmatprep.mubr.msk.bf16.mxu0 %vm8647_vm0, %v5399_v31 }
0x114f   : > { %v5397_v23 = vpack.c.bf16 %v5306_v39, %v5303_v62  ;;  %6556 = vmatmul.mubr.msk.bf16.vlgmr.msra.gmra.mxu0 %vm8675_vm2, %v5400_v22 }
0x1150   : > { %v6541_v32 = vpop.f32.mrf.mxu0 }
0x1151   : > { %6549 = vmatprep.mubr.msk.bf16.mxu1 %vm8676_vm8, %v5397_v23 }
0x1152   : > { %v5380_v57 = vpop.f32.mrf.mxu0  ;;  %6550 = vmatmul.mubr.msk.bf16.gmra.mxu1 %vm8677_vm12, %v5398_v34 }
0x1154   : > { %v6542_v49 = vpop.f32.mrf.mxu0 }
0x1155   : > { %v5402_v27 = vpack.c.bf16 %v6542_v49, %v6541_v32 }
0x1156   : > { %v5383_v51 = vpop.f32.mrf.mxu0 }
0x1157   : > { %v5401_v45 = vpack.c.bf16 %v5383_v51, %v5380_v57 }
0x1159   : > { %6559 = vmatprep.mubr.msk.bf16.mxu0 %vm8678_vm14, %v5401_v45 }
0x115a   : > { %6560 = vmatmul.mubr.msk.bf16.gmra.mxu0 %vm8679_vm15, %v5402_v27 }
0x11ee   : > { %v6547_v16 = vpop.f32.mrf.mxu1 }
0x11ef   : > { %v5572_v36 = vsel %vm863_vm1, %v6547_v16, 0.0 }
0x11f0   : > { %v5455_v18 = vpop.f32.mrf.mxu1 }
0x11f1   : > { %v5566_v46 = vsel %vm863_vm1, %v5455_v18, 0.0 }
0x11f2   : > { %v6548_v54 = vpop.f32.mrf.mxu1 }
0x11f3   : > { %v5575_v53 = vsel %vm863_vm1, %v6548_v54, 0.0 }
0x11f4   : > { %v5458_v2 = vpop.f32.mrf.mxu1 }
0x11f5   : > { %v5569_v60 = vsel %vm863_vm1, %v5458_v2, 0.0 }
0x120f   : > { %v6557_v8 = vpop.f32.mrf.mxu0 }
0x1210   : > { %v5573_v43 = vsel %vm863_vm1, %v6557_v8, 0.0 }
0x1211   : > { %v5574_v56 = vadd.f32 %v5573_v43, %v5572_v36  ;;  %v5535_v37 = vpop.f32.mrf.mxu0 }
0x1212   : > { %v5567_v38 = vsel %vm863_vm1, %v5535_v37, 0.0  ;;  %v6551_v13 = vpop.f32.mrf.mxu1 }
0x1213   : > { %v5599_v25 = vadd.f32 %v5936_v1, %v5574_v56  ;;  %v5568_v9 = vadd.f32 %v5567_v38, %v5566_v46  ;;  %v6558_v24 = vpop.f32.mrf.mxu0  ;;  %v5584_v28 = vsel %vm863_vm1, %v6551_v13, 0.0 }
0x1214   : > { %v5576_v35 = vsel %vm863_vm1, %v6558_v24, 0.0  ;;  %v5471_v29 = vpop.f32.mrf.mxu1 }
0x1215   : > { %v5607_v44 = vadd.f32 %v5599_v25, %v7985_v15  ;;  %v5597_v5 = vadd.f32 %v5936_v1, %v5568_v9  ;;  %v5577_v3 = vadd.f32 %v5576_v35, %v5575_v53  ;;  %v5538_v52 = vpop.f32.mrf.mxu0  ;;  %v5578_v12 = vsel %vm863_vm1, %v5471_v29, 0.0 }
0x1216   : > { %v5570_v55 = vsel %vm863_vm1, %v5538_v52, 0.0  ;;  %v6552_v0 = vpop.f32.mrf.mxu1 }
0x1217   : > { %v5615_v42 = vsel %vm863_vm1, %v5607_v44, 0.0  ;;  %v5605_v20 = vadd.f32 %v5597_v5, %v7983_v26  ;;  %v5600_v40 = vadd.f32 %v5936_v1, %v5577_v3  ;;  %v5571_v7 = vadd.f32 %v5570_v55, %v5569_v60 }
0x1218   : > { %5623 = vst [vmem:[%s8386_s29 + $0x10] sm:$0xff] %v5615_v42  ;;  %v5474_v47 = vpop.f32.mrf.mxu1  ;;  %v5587_v31 = vsel %vm863_vm1, %v6552_v0, 0.0 }
0x1219   : > { %v5613_v17 = vsel %vm863_vm1, %v5605_v20, 0.0  ;;  %v5608_v15 = vadd.f32 %v5600_v40, %v7991_v11  ;;  %v5598_v50 = vadd.f32 %v5936_v1, %v5571_v7  ;;  %v5581_v34 = vsel %vm863_vm1, %v5474_v47, 0.0 }
0x121a   : > { %5621 = vst [vmem:[%s8386_s29] sm:$0xff] %v5613_v17  ;;  %v6561_v30 = vpop.f32.mrf.mxu0 }
0x121b   : > { %v5616_v10 = vsel %vm863_vm1, %v5608_v15, 0.0  ;;  %v5606_v59 = vadd.f32 %v5598_v50, %v7987_v33  ;;  %v5585_v26 = vsel %vm863_vm1, %v6561_v30, 0.0 }
0x121c   : > { %5624 = vst [vmem:[%s8386_s29 + $0x18] sm:$0xff] %v5616_v10  ;;  %v5586_v61 = vadd.f32 %v5585_v26, %v5584_v28  ;;  %v5551_v21 = vpop.f32.mrf.mxu0 }
0x121d   : > { %v5614_v14 = vsel %vm863_vm1, %v5606_v59, 0.0  ;;  %v5579_v11 = vsel %vm863_vm1, %v5551_v21, 0.0 }
0x121e   : > { %5622 = vst [vmem:[%s8386_s29 + $0x8] sm:$0xff] %v5614_v14  ;;  %v5603_v48 = vadd.f32 %v5936_v1, %v5586_v61  ;;  %v5580_v62 = vadd.f32 %v5579_v11, %v5578_v12  ;;  %v6562_v4 = vpop.f32.mrf.mxu0 }
0x121f   : > { %v5588_v33 = vsel %vm863_vm1, %v6562_v4, 0.0 }
0x1220   : > { %v5611_v41 = vadd.f32 %v5603_v48, %v8001_v63  ;;  %v5601_v22 = vadd.f32 %v5936_v1, %v5580_v62  ;;  %v5589_v39 = vadd.f32 %v5588_v33, %v5587_v31  ;;  %v5554_v23 = vpop.f32.mrf.mxu0 }
0x1221   : > { %v5582_v32 = vsel %vm863_vm1, %v5554_v23, 0.0 }
0x1222   : > { %v5619_v57 = vsel %vm863_vm1, %v5611_v41, 0.0  ;;  %v5609_v49 = vadd.f32 %v5601_v22, %v7997_v6  ;;  %v5604_v51 = vadd.f32 %v5936_v1, %v5589_v39  ;;  %v5583_v45 = vadd.f32 %v5582_v32, %v5581_v34 }
0x1223   : > { %5627 = vst [vmem:[%s8386_s29 + $0x30] sm:$0xff] %v5619_v57 }
0x1224   : > { %v5617_v27 = vsel %vm863_vm1, %v5609_v49, 0.0  ;;  %v5612_v63 = vadd.f32 %v5604_v51, %v8007_v58  ;;  %v5602_v16 = vadd.f32 %v5936_v1, %v5583_v45 }
0x1225   : > { %5625 = vst [vmem:[%s8386_s29 + $0x20] sm:$0xff] %v5617_v27 }
0x1226   : > { %v5620_v18 = vsel %vm863_vm1, %v5612_v63, 0.0  ;;  %v5610_v54 = vadd.f32 %v5602_v16, %v8005_v19 }
0x1227   : > { %5628 = vst [vmem:[%s8386_s29 + $0x38] sm:$0xff] %v5620_v18 }
0x1228   : > { %v5618_v8 = vsel %vm863_vm1, %v5610_v54, 0.0 }
0x1229   : > { %5626 = vst [vmem:[%s8386_s29 + $0x28] sm:$0xff] %v5618_v8 }
0x122a PF: > { %s37_s7 = sadd.s32 1, %s6754_s7  }
0x122b   : > { %p34_p4 = scmp.ge.s32.totalorder %s37_s7, 4  }
0x122d   :  { %36 = sbr.rel (!%p34_p4) target bundleno = 13 (0xd), region = 183 }

</bundles_post_ra>
